<compile_context>
chip_gen: v6e
topology: v6e:2x2x1
jax: 0.10.0
libtpu: 0.0.40
codegen_flags: <defaults>
</compile_context>

<pallas_src>
import functools

import jax
import jax.numpy as jnp
from jax.experimental import pallas as pl
from jax.experimental.pallas import tpu as pltpu


# ----------------------------- Pallas kernel ------------------------------ #
def _permute_mlp_kernel(xh_ref, xw_ref, xc_ref, p_ref, wh_ref, wc_ref,
                        wout_ref, bout_ref, o_ref):
    """One (batch, spatial-tile) grid step.

    xh/xw/xc_ref : (1, T, C)  permuted input tiles (compute dtype)
    p_ref        : (1, 3, C)  softmax branch weights, f32 (hoisted gating MLP)
    wh/wc/wout   : (C, C)     1x1-conv weights in (c_in, c_out) layout
    bout_ref     : (1, C)     out_linear bias, f32
    o_ref        : (1, T, C)  output tile (compute dtype)
    """
    # W_H stays resident across the two dots; re-pushing it is negligible at
    # T >= 512 and this avoids the (2T, C) interleave stream v2 materialized.
    yh = jnp.dot(xh_ref[0], wh_ref[...], preferred_element_type=jnp.float32)
    yw = jnp.dot(xw_ref[0], wh_ref[...], preferred_element_type=jnp.float32)
    yc = jnp.dot(xc_ref[0], wc_ref[...], preferred_element_type=jnp.float32)

    p = p_ref[0]                                   # (3, C) f32, one row/branch
    z = yh * p[0:1] + yw * p[1:2] + yc * p[2:3]    # f32 branch weighting

    out = jnp.dot(z.astype(wout_ref.dtype), wout_ref[...],
                  preferred_element_type=jnp.float32) + bout_ref[...]
    o_ref[0] = out.astype(o_ref.dtype)


# ------------------------------- wrapper ----------------------------------- #
def _rearrange_h(x):
    # 'b (p d) h w -> b (h d) p w', p = h
    b, c, h, w = x.shape
    d = c // h
    return x.reshape(b, h, d, h, w).transpose(0, 3, 2, 1, 4).reshape(b, c, h, w)


def _rearrange_w(x):
    # 'b (p d) h w -> b (w d) h p', p = w
    b, c, h, w = x.shape
    d = c // w
    return x.reshape(b, w, d, h, w).transpose(0, 4, 2, 3, 1).reshape(b, c, h, w)


def _nchw_to_flat_nlc(x):
    b, c, h, w = x.shape
    return x.transpose(0, 2, 3, 1).reshape(b, h * w, c)


_VMEM_LIMIT = 32 * 1024 * 1024        # explicit scoped VMEM request (v7x-safe)
_TILE_BUDGET = _VMEM_LIMIT // 2       # keep ~half free (measured guidance)


def _choose_spatial_tile(hw, c, in_bytes):
    """Largest spatial tile within the VMEM budget.

    Prefers tiles that divide HW exactly; otherwise returns the largest
    fitting candidate and relies on pl.cdiv + Pallas boundary masking for the
    ragged last block (typical ViP resolutions: HW = 196, 784).
    """
    def footprint(t):
        db = 2                                      # double-buffered slots
        io = db * 4 * t * c * in_bytes              # x_h + x_w + x_c + out tiles
        wgt = 3 * c * c * in_bytes + 32 * c         # single-buffered weights etc.
        tmp = 5 * t * c * 4                         # yh/yw/yc/z/out f32 temps
        return io + wgt + tmp

    fitting = [t for t in (1024, 512, 256, 128, 64, 32, 16, 8)
               if t <= hw and footprint(t) <= _TILE_BUDGET]
    for t in fitting:
        if hw % t == 0:
            return t                                # even split: no masked block
    if fitting:
        return fitting[0]                           # ragged last block (masked)
    return hw if hw < 8 else 8                      # tiny / VMEM-starved fallback


@functools.partial(jax.jit, static_argnames=("compute_dtype",))
def permute_mlp_forward(x, params, compute_dtype=jnp.bfloat16):
    """x: (B, C, H, W) float32 (NCHW, like PyTorch). Returns (B, C, H, W)."""
    b, c, h, w = x.shape
    hw = h * w
    d_h, d_w = c // h, c // w
    in_bytes = jnp.dtype(compute_dtype).itemsize

    # --- Hoisted gating MLP, all f32, straight from the original x --------- #
    # mean_hw(conv(x_h)+conv(x_w)+conv(x_c)) == (mean(x_h)+mean(x_w)) @ W_H^T
    # + mean(x_c) @ W_C^T for the bias-free 1x1 convs, and the per-branch
    # spatial means of x_h / x_w are partial reductions of x itself, so no f32
    # permuted stream is ever materialized.
    hi = jax.lax.Precision.HIGHEST
    m_w = x.mean(axis=3)                                        # (B, C, H)
    m_h = x.mean(axis=2)                                        # (B, C, W)
    mean_xc = m_w.mean(axis=2)                                  # (B, C)
    mean_xh = (m_w.reshape(b, h, d_h, h).mean(axis=1)
               .transpose(0, 2, 1).reshape(b, c))               # (B, C)
    mean_xw = (m_h.reshape(b, w, d_w, w).mean(axis=1)
               .transpose(0, 2, 1).reshape(b, c))               # (B, C)

    s = (jnp.dot(mean_xh + mean_xw, params["W_H"].T, precision=hi)
         + jnp.dot(mean_xc, params["W_C"].T, precision=hi))                # (B, C)
    hdn = jax.nn.gelu(jnp.dot(s, params["W1"].T, precision=hi) + params["b1"],
                      approximate=False)                                   # (B, C/4)
    wts = jnp.dot(hdn, params["W2"].T, precision=hi) + params["b2"]        # (B, 3C)
    probs = jax.nn.softmax(wts.reshape(b, 3, c), axis=1)                   # (B, 3, C)

    # --- Kernel inputs: cast FIRST, permute in the compute dtype ----------- #
    x_lp = x.astype(compute_dtype)
    xh = _nchw_to_flat_nlc(_rearrange_h(x_lp))                  # (B, HW, C)
    xw = _nchw_to_flat_nlc(_rearrange_w(x_lp))
    xc = _nchw_to_flat_nlc(x_lp)

    wh_k = params["W_H"].T.astype(compute_dtype)                # (c_in, c_out)
    wc_k = params["W_C"].T.astype(compute_dtype)
    wout_k = params["W_out"].T.astype(compute_dtype)
    bout = params["b_out"].reshape(1, c).astype(jnp.float32)

    t_hw = _choose_spatial_tile(hw, c, in_bytes)
    n_t = pl.cdiv(hw, t_hw)                     # ragged last tile write-masked
    # v7x has 2 TensorCores sharding the parallel grid axes: make sure there
    # are >= 2 grid steps so neither core idles when B == 1.
    if b * n_t < 2 and t_hw >= 16:
        t_hw = t_hw // 2
        n_t = pl.cdiv(hw, t_hw)

    flops = 8 * b * hw * c * c                  # 4 (T,C)@(C,C) matmuls / tile
    bytes_accessed = (4 * b * hw * c * in_bytes            # 3 inputs + output
                      + 3 * c * c * in_bytes + 4 * c * (3 * b + 1))
    cost = pl.CostEstimate(flops=flops, transcendentals=0,
                           bytes_accessed=bytes_accessed)

    # Grid-invariant weights / bias: single buffer (never refetched), so the
    # reclaimed VMEM goes to bigger activation tiles (matters on v7x).  probs
    # varies along the batch axis, so it keeps the default 2-deep pipeline
    # (it is only 3*C*4 bytes).
    def wgt_spec(shape):
        return pl.BlockSpec(shape, lambda i, j: (0, 0),
                            pipeline_mode=pl.Buffered(1))

    y_flat = pl.pallas_call(
        _permute_mlp_kernel,
        out_shape=jax.ShapeDtypeStruct((b, hw, c), compute_dtype),
        grid_spec=pltpu.PrefetchScalarGridSpec(
            num_scalar_prefetch=0,
            grid=(b, n_t),
            in_specs=[
                pl.BlockSpec((1, t_hw, c), lambda i, j: (i, j, 0)),   # x_h
                pl.BlockSpec((1, t_hw, c), lambda i, j: (i, j, 0)),   # x_w
                pl.BlockSpec((1, t_hw, c), lambda i, j: (i, j, 0)),   # x_c
                pl.BlockSpec((1, 3, c), lambda i, j: (i, 0, 0)),      # probs
                wgt_spec((c, c)),                                     # W_H^T
                wgt_spec((c, c)),                                     # W_C^T
                wgt_spec((c, c)),                                     # W_out^T
                wgt_spec((1, c)),                                     # b_out
            ],
            out_specs=pl.BlockSpec((1, t_hw, c), lambda i, j: (i, j, 0)),
        ),
        compiler_params=pltpu.CompilerParams(
            dimension_semantics=("parallel", "parallel"),
            vmem_limit_bytes=_VMEM_LIMIT),
        cost_estimate=cost,
    )(xh, xw, xc, probs, wh_k, wc_k, wout_k, bout)

    # compute-dtype output + compute-dtype NHWC->NCHW transpose; only the final
    # cast back to the caller dtype touches f32 (drop if bf16 is acceptable).
    y = y_flat.reshape(b, h, w, c).transpose(0, 3, 1, 2)
    return y.astype(x.dtype)


# -------------------------- pure-JAX reference ----------------------------- #
def reference_forward(x, params):
    b, c, h, w = x.shape
    hi = jax.lax.Precision.HIGHEST

    def conv1x1(z, W, bias=None):
        y = jnp.einsum("oc,bchw->bohw", W, z, precision=hi)
        if bias is not None:
            y = y + bias[None, :, None, None]
        return y

    x_h = _rearrange_h(x)
    x_w = _rearrange_w(x)
    yh = conv1x1(x_h, params["W_H"])
    yw = conv1x1(x_w, params["W_H"])   # self.H applied to x_w as well
    yc = conv1x1(x, params["W_C"])

    stacked = jnp.stack([yh, yw, yc], axis=0)
    s = stacked.sum(axis=0).mean(axis=(2, 3))                        # (b, c)
    hdn = jax.nn.gelu(jnp.dot(s, params["W1"].T, precision=hi) + params["b1"],
                      approximate=False)
    wts = jnp.dot(hdn, params["W2"].T, precision=hi) + params["b2"]  # (b, 3c)
    wts = wts.reshape(b, 3, c).transpose(1, 0, 2)                    # 'b (p c) -> p b c'
    wts = jax.nn.softmax(wts, axis=0)[:, :, :, None, None]
    y = (stacked * wts).sum(axis=0)
    y = conv1x1(y, params["W_out"], params["b_out"])
    return y


# --------------------------------- main ------------------------------------ #
if __name__ == "__main__":
    def make_params(key, c):
        c4 = c // 4
        ks = jax.random.split(key, 9)

        def init(k, shape, fan_in):
            return jax.random.normal(k, shape, dtype=jnp.float32) / jnp.sqrt(fan_in)

        return {
            "W_H": init(ks[0], (c, c), c),       # Conv2d(dim, dim, 1, bias=False)
            "W_W": init(ks[1], (c, c), c),       # defined in __init__, unused in forward
            "W_C": init(ks[2], (c, c), c),       # Conv2d(dim, dim, 1, bias=False)
            "W_out": init(ks[3], (c, c), c),     # Conv2d(dim, dim, 1) (bias=True)
            "b_out": 0.1 * jax.random.normal(ks[4], (c,), dtype=jnp.float32),
            "W1": init(ks[5], (c4, c), c),       # MLP proj-in: Linear(dim, dim//4)
            "b1": 0.1 * jax.random.normal(ks[6], (c4,), dtype=jnp.float32),
            "W2": init(ks[7], (3 * c, c4), c4),  # MLP proj-out: Linear(dim//4, 3*dim)
            "b2": 0.1 * jax.random.normal(ks[8], (3 * c,), dtype=jnp.float32),
        }

    key = jax.random.PRNGKey(0)
    k_main, k_rag, kx1, kx2 = jax.random.split(key, 4)

    # --- Main test: lane-dense C=128, HW=1024 (evenly tiled grid) ---------- #
    B, C, H, W = 2, 128, 32, 32
    x = jax.random.normal(kx1, (B, C, H, W), dtype=jnp.float32)
    params = make_params(k_main, C)
    y_ref = reference_forward(x, params)

    # f32 path: tight check against the HIGHEST-precision reference.
    y_f32 = jax.block_until_ready(
        permute_mlp_forward(x, params, compute_dtype=jnp.float32))
    assert y_f32.shape == (B, C, H, W)
    assert jnp.allclose(y_f32, y_ref, rtol=5e-3, atol=5e-3), (
        float(jnp.max(jnp.abs(y_f32 - y_ref))))

    # bf16 path (default optimized path): f32 accumulation, looser tolerance.
    y_bf16 = jax.block_until_ready(
        permute_mlp_forward(x, params, compute_dtype=jnp.bfloat16))
    assert y_bf16.shape == (B, C, H, W)
    assert jnp.allclose(y_bf16, y_ref, rtol=5e-2, atol=5e-2), (
        float(jnp.max(jnp.abs(y_bf16 - y_ref))))

    # --- Ragged test: ViP-style 14x14 (HW=196, no dividing tile -> cdiv) --- #
    Br, Cr, Hr, Wr = 1, 112, 14, 14
    xr = jax.random.normal(kx2, (Br, Cr, Hr, Wr), dtype=jnp.float32)
    params_r = make_params(k_rag, Cr)
    yr_ref = reference_forward(xr, params_r)
    yr = jax.block_until_ready(
        permute_mlp_forward(xr, params_r, compute_dtype=jnp.float32))
    assert yr.shape == (Br, Cr, Hr, Wr)
    assert jnp.allclose(yr, yr_ref, rtol=5e-3, atol=5e-3), (
        float(jnp.max(jnp.abs(yr - yr_ref))))

    print("KERNEL_OK")
</pallas_src>

<mosaic_0001>
module attributes {stable_mosaic.version = 11 : i64} {
  func.func @_permute_mlp_kernel(%arg0: i32, %arg1: i32, %arg2: memref<1x1024x128xf32, #tpu.memory_space<vmem>>, %arg3: memref<1x1024x128xf32, #tpu.memory_space<vmem>>, %arg4: memref<1x1024x128xf32, #tpu.memory_space<vmem>>, %arg5: memref<1x3x128xf32, #tpu.memory_space<vmem>>, %arg6: memref<128x128xf32, #tpu.memory_space<vmem>>, %arg7: memref<128x128xf32, #tpu.memory_space<vmem>>, %arg8: memref<128x128xf32, #tpu.memory_space<vmem>>, %arg9: memref<1x128xf32, #tpu.memory_space<vmem>>, %arg10: memref<1x1024x128xf32, #tpu.memory_space<vmem>>) attributes {dimension_semantics = [#tpu.dimension_semantics<parallel>, #tpu.dimension_semantics<parallel>], iteration_bounds = array<i64: 2, 1>, scalar_prefetch = 0 : i64, scratch_operands = 0 : i64, tpu.core_type = #tpu.core_type<tc>, window_params = [{transform_indices = @transform_0, window_bounds = array<i64: 1, 1024, 128>}, {transform_indices = @transform_1, window_bounds = array<i64: 1, 1024, 128>}, {transform_indices = @transform_2, window_bounds = array<i64: 1, 1024, 128>}, {transform_indices = @transform_3, window_bounds = array<i64: 1, 3, 128>}, {pipeline_mode = #tpu.pipeline_mode<synchronous>, transform_indices = @transform_4, window_bounds = array<i64: 128, 128>}, {pipeline_mode = #tpu.pipeline_mode<synchronous>, transform_indices = @transform_5, window_bounds = array<i64: 128, 128>}, {pipeline_mode = #tpu.pipeline_mode<synchronous>, transform_indices = @transform_6, window_bounds = array<i64: 128, 128>}, {pipeline_mode = #tpu.pipeline_mode<synchronous>, transform_indices = @transform_7, window_bounds = array<i64: 1, 128>}, {transform_indices = @transform_8, window_bounds = array<i64: 1, 1024, 128>}]} {
    %c0 = arith.constant 0 : index
    %c0_0 = arith.constant 0 : index
    %c0_1 = arith.constant 0 : index
    %0 = vector.load %arg2[%c0, %c0_0, %c0_1] : memref<1x1024x128xf32, #tpu.memory_space<vmem>>, vector<1x1024x128xf32>
    %1 = vector.shape_cast %0 : vector<1x1024x128xf32> to vector<1024x128xf32>
    %c0_2 = arith.constant 0 : index
    %c0_3 = arith.constant 0 : index
    %2 = vector.load %arg6[%c0_2, %c0_3] : memref<128x128xf32, #tpu.memory_space<vmem>>, vector<128x128xf32>
    %cst = arith.constant dense<0.000000e+00> : vector<1024x128xf32>
    %3 = tpu.matmul %1, %2, %cst {dimension_numbers = #tpu.dot_dimension_numbers<[1], [0], [0], [1], [0, 0, 1, 1], [], []>} : vector<1024x128xf32>, vector<128x128xf32>, vector<1024x128xf32> -> vector<1024x128xf32>
    %c0_4 = arith.constant 0 : index
    %c0_5 = arith.constant 0 : index
    %c0_6 = arith.constant 0 : index
    %4 = vector.load %arg3[%c0_4, %c0_5, %c0_6] : memref<1x1024x128xf32, #tpu.memory_space<vmem>>, vector<1x1024x128xf32>
    %5 = vector.shape_cast %4 : vector<1x1024x128xf32> to vector<1024x128xf32>
    %c0_7 = arith.constant 0 : index
    %c0_8 = arith.constant 0 : index
    %6 = vector.load %arg6[%c0_7, %c0_8] : memref<128x128xf32, #tpu.memory_space<vmem>>, vector<128x128xf32>
    %cst_9 = arith.constant dense<0.000000e+00> : vector<1024x128xf32>
    %7 = tpu.matmul %5, %6, %cst_9 {dimension_numbers = #tpu.dot_dimension_numbers<[1], [0], [0], [1], [0, 0, 1, 1], [], []>} : vector<1024x128xf32>, vector<128x128xf32>, vector<1024x128xf32> -> vector<1024x128xf32>
    %c0_10 = arith.constant 0 : index
    %c0_11 = arith.constant 0 : index
    %c0_12 = arith.constant 0 : index
    %8 = vector.load %arg4[%c0_10, %c0_11, %c0_12] : memref<1x1024x128xf32, #tpu.memory_space<vmem>>, vector<1x1024x128xf32>
    %9 = vector.shape_cast %8 : vector<1x1024x128xf32> to vector<1024x128xf32>
    %c0_13 = arith.constant 0 : index
    %c0_14 = arith.constant 0 : index
    %10 = vector.load %arg7[%c0_13, %c0_14] : memref<128x128xf32, #tpu.memory_space<vmem>>, vector<128x128xf32>
    %cst_15 = arith.constant dense<0.000000e+00> : vector<1024x128xf32>
    %11 = tpu.matmul %9, %10, %cst_15 {dimension_numbers = #tpu.dot_dimension_numbers<[1], [0], [0], [1], [0, 0, 1, 1], [], []>} : vector<1024x128xf32>, vector<128x128xf32>, vector<1024x128xf32> -> vector<1024x128xf32>
    %c0_16 = arith.constant 0 : index
    %c0_17 = arith.constant 0 : index
    %c0_18 = arith.constant 0 : index
    %12 = vector.load %arg5[%c0_16, %c0_17, %c0_18] : memref<1x3x128xf32, #tpu.memory_space<vmem>>, vector<1x3x128xf32>
    %13 = vector.shape_cast %12 : vector<1x3x128xf32> to vector<3x128xf32>
    %14 = vector.extract_strided_slice %13 {offsets = [0, 0], sizes = [1, 128], strides = [1, 1]} : vector<3x128xf32> to vector<1x128xf32>
    %15 = vector.broadcast %14 : vector<1x128xf32> to vector<1024x128xf32>
    %16 = arith.mulf %3, %15 : vector<1024x128xf32>
    %17 = vector.extract_strided_slice %13 {offsets = [1, 0], sizes = [1, 128], strides = [1, 1]} : vector<3x128xf32> to vector<1x128xf32>
    %18 = vector.broadcast %17 : vector<1x128xf32> to vector<1024x128xf32>
    %19 = arith.mulf %7, %18 : vector<1024x128xf32>
    %20 = arith.addf %16, %19 : vector<1024x128xf32>
    %21 = vector.extract_strided_slice %13 {offsets = [2, 0], sizes = [1, 128], strides = [1, 1]} : vector<3x128xf32> to vector<1x128xf32>
    %22 = vector.broadcast %21 : vector<1x128xf32> to vector<1024x128xf32>
    %23 = arith.mulf %11, %22 : vector<1024x128xf32>
    %24 = arith.addf %20, %23 : vector<1024x128xf32>
    %c0_19 = arith.constant 0 : index
    %c0_20 = arith.constant 0 : index
    %25 = vector.load %arg8[%c0_19, %c0_20] : memref<128x128xf32, #tpu.memory_space<vmem>>, vector<128x128xf32>
    %cst_21 = arith.constant dense<0.000000e+00> : vector<1024x128xf32>
    %26 = tpu.matmul %24, %25, %cst_21 {dimension_numbers = #tpu.dot_dimension_numbers<[1], [0], [0], [1], [0, 0, 1, 1], [], []>} : vector<1024x128xf32>, vector<128x128xf32>, vector<1024x128xf32> -> vector<1024x128xf32>
    %c0_22 = arith.constant 0 : index
    %c0_23 = arith.constant 0 : index
    %27 = vector.load %arg9[%c0_22, %c0_23] : memref<1x128xf32, #tpu.memory_space<vmem>>, vector<1x128xf32>
    %28 = vector.broadcast %27 : vector<1x128xf32> to vector<1024x128xf32>
    %29 = arith.addf %26, %28 : vector<1024x128xf32>
    %c0_24 = arith.constant 0 : index
    %c0_25 = arith.constant 0 : index
    %c0_26 = arith.constant 0 : index
    %30 = vector.load %arg10[%c0_24, %c0_25, %c0_26] : memref<1x1024x128xf32, #tpu.memory_space<vmem>>, vector<1x1024x128xf32>
    %31 = vector.shape_cast %30 : vector<1x1024x128xf32> to vector<1024x128xf32>
    %32 = vector.shape_cast %29 : vector<1024x128xf32> to vector<1x1024x128xf32>
    tpu.vector_store %arg10[%c0_24, %c0_25, %c0_26], %32 {strides = array<i32>} : memref<1x1024x128xf32, #tpu.memory_space<vmem>>, vector<1x1024x128xf32>,
    return
  }
  func.func @transform_0(%arg0: i32, %arg1: i32) -> (i32, i32, i32) {
    %c0_i32 = arith.constant 0 : i32
    %c0_i32_0 = arith.constant 0 : i32
    return %arg0, %arg1, %c0_i32 : i32, i32, i32
  }
  func.func @transform_1(%arg0: i32, %arg1: i32) -> (i32, i32, i32) {
    %c0_i32 = arith.constant 0 : i32
    %c0_i32_0 = arith.constant 0 : i32
    return %arg0, %arg1, %c0_i32 : i32, i32, i32
  }
  func.func @transform_2(%arg0: i32, %arg1: i32) -> (i32, i32, i32) {
    %c0_i32 = arith.constant 0 : i32
    %c0_i32_0 = arith.constant 0 : i32
    return %arg0, %arg1, %c0_i32 : i32, i32, i32
  }
  func.func @transform_3(%arg0: i32, %arg1: i32) -> (i32, i32, i32) {
    %c0_i32 = arith.constant 0 : i32
    %c0_i32_0 = arith.constant 0 : i32
    %c0_i32_1 = arith.constant 0 : i32
    return %arg0, %c0_i32, %c0_i32_0 : i32, i32, i32
  }
  func.func @transform_4(%arg0: i32, %arg1: i32) -> (i32, i32) {
    %c0_i32 = arith.constant 0 : i32
    %c0_i32_0 = arith.constant 0 : i32
    %c0_i32_1 = arith.constant 0 : i32
    return %c0_i32, %c0_i32_0 : i32, i32
  }
  func.func @transform_5(%arg0: i32, %arg1: i32) -> (i32, i32) {
    %c0_i32 = arith.constant 0 : i32
    %c0_i32_0 = arith.constant 0 : i32
    %c0_i32_1 = arith.constant 0 : i32
    return %c0_i32, %c0_i32_0 : i32, i32
  }
  func.func @transform_6(%arg0: i32, %arg1: i32) -> (i32, i32) {
    %c0_i32 = arith.constant 0 : i32
    %c0_i32_0 = arith.constant 0 : i32
    %c0_i32_1 = arith.constant 0 : i32
    return %c0_i32, %c0_i32_0 : i32, i32
  }
  func.func @transform_7(%arg0: i32, %arg1: i32) -> (i32, i32) {
    %c0_i32 = arith.constant 0 : i32
    %c0_i32_0 = arith.constant 0 : i32
    %c0_i32_1 = arith.constant 0 : i32
    return %c0_i32, %c0_i32_0 : i32, i32
  }
  func.func @transform_8(%arg0: i32, %arg1: i32) -> (i32, i32, i32) {
    %c0_i32 = arith.constant 0 : i32
    %c0_i32_0 = arith.constant 0 : i32
    return %arg0, %arg1, %c0_i32 : i32, i32, i32
  }
}

</mosaic_0001>

<bundles_post_ra>
// kernel: permute_mlp_forward.1
= control target key start
LH: loop header
LB: loop body
LE: loop exit
PB: predicated region body
PF: predicated region fallthrough
CT: control target
= control target key end

     0   :  { %13 = vsyncpa [#allocation3], 0  ;;  %s8345_s0 = inlined_call_operand.vmem [shape: f32[2,1024,128], index: 0, kind: input, shape index: {}]   ;;  %s8346_s1 = inlined_call_operand.vmem [shape: f32[2,1024,128], index: 1, kind: input, shape index: {}]   ;;  %s8347_s2 = inlined_call_operand.vmem [shape: f32[2,1024,128], index: 2, kind: input, shape index: {}]   ;;  %s8348_s3 = inlined_call_operand.vmem [shape: f32[2,3,128], index: 3, kind: input, shape index: {}]   ;;  %s8349_s4 = inlined_call_operand.vmem [shape: f32[128,128], index: 4, kind: input, shape index: {}]   ;;  %s8350_s5 = inlined_call_operand.vmem [shape: f32[128,128], index: 5, kind: input, shape index: {}]   ;;  %s8351_s6 = inlined_call_operand.vmem [shape: f32[128,128], index: 6, kind: input, shape index: {}]   ;;  %s8352_s7 = inlined_call_operand.vmem [shape: f32[1,128], index: 7, kind: input, shape index: {}]   ;;  %s8353_s8 = inlined_call_operand.hbm [shape: f32[2,1024,128], index: 8, kind: output, shape index: {}]  }
   0x1   :  { %15 = vsyncpa [#allocation3 + $0x1], 0  ;;  %s6287_s27 = smov 0   ;;  %s6289_s28 = smov 0  }
   0x2   :  { %s6291_s29 = smov 0   ;;  %s6293_s30 = smov 0  }
   0x3   :  { %s6295_s9 = smov 0   ;;  %s6297_s10 = smov 0  }
   0x4 LB: > { %s4607_s11 = sadd.s32 4294967295, %s6237_s10   ;;  %s4608_s12 = sadd.s32 4294967294, %s6237_s10   ;;  %s6237_s10 = sphi %s6297_s10, %s21_s10   ;;  %s6233_s9 = sphi %s6295_s9, %s8648_s9   ;;  %s6229_s30 = sphi %s6293_s30, %s8647_s30   ;;  %s6225_s29 = sphi %s6291_s29, %s8646_s29   ;;  %s6221_s28 = sphi %s6289_s28, %s8645_s28   ;;  %s6217_s27 = sphi %s6287_s27, %s8644_s27  }
   0x5   : > { %s33_s13 = sadd.s32 1, %s6233_s9  ;;  %s236_s14 = sadd.s32 1, %s6225_s29 }
   0x6   : > { %p35_p0 = scmp.ge.s32.totalorder %s33_s13, 2  ;;  %p246_p1 = scmp.ne.s32.totalorder %s6225_s29, %s6221_s28 }
   0x7   : > { %p247_p2 = scmp.eq.s32.totalorder %s4607_s11, 1  ;;  %p252_p3 = scmp.ne.s32.totalorder %s6221_s28, %s6217_s27 }
   0x8   : > { %s8650_s13 = smov (%p35_p0, %s33_s13), 0  ;;  %p253_p5 = scmp.eq.s32.totalorder %s4608_s12, 1 }
   0x9   : > { %p6327_p4 = por %p247_p2, %p246_p1  ;;  %s231_s16 = ssub.s32 %s6233_s9, %s8650_s13 }
   0xa   : > { %p4611_p6 = scmp.ge.s32.totalorder %s6237_s10, 1  ;;  %p234_p7 = scmp.eq.s32.totalorder %s231_s16, 0 }
   0xb   : > { %p6334_p8 = por %p253_p5, %p252_p3  ;;  %p329_p9 = scmp.lt.s32.totalorder %s6237_s10, 3 }
   0xc   : > { %s6340_s18 = scalar_select %p234_p7, %s6225_s29, %s236_s14  }
   0xd   : > { %p330_p10 = pnand %p4611_p6, %p329_p9 }
   0xf   : > { %333 = sbr.rel (%p330_p10) target bundleno = 973 (0x3cd), region = 52 }
  0x14   : > { %v567_v0 = vld [vmem:[%s8349_s4 + $0x78] sm:$0xff]  ;;  %v566_v1 = vld [vmem:[%s8349_s4 + $0x70] sm:$0xff]  ;;  %v565_v2 = vld [vmem:[%s8349_s4 + $0x68] sm:$0xff]  ;;  %p390_p11 = scmp.lt.s32.totalorder %s6229_s30, 1  ;;  %s6239_s19 = smov [#allocation2]  }
  0x15   : > { %5206 = vmatprep.subr.mxu0 %v567_v0  ;;  %5430 = vmatprep.subr.mxu1 %v567_v0  ;;  %v564_v3 = vld [vmem:[%s8349_s4 + $0x60] sm:$0xff]  ;;  %v563_v4 = vld [vmem:[%s8349_s4 + $0x58] sm:$0xff]  ;;  %v562_v5 = vld [vmem:[%s8349_s4 + $0x50] sm:$0xff] }
  0x16   : > { %5207 = vmatpush3.msra.mxu0 %v567_v0  ;;  %5431 = vmatpush3.msra.mxu1 %v567_v0  ;;  %v561_v6 = vld [vmem:[%s8349_s4 + $0x48] sm:$0xff]  ;;  %v560_v7 = vld [vmem:[%s8349_s4 + $0x40] sm:$0xff]  ;;  %v559_v8 = vld [vmem:[%s8349_s4 + $0x38] sm:$0xff]  ;;  %s6377_s14 = scalar_select %p390_p11, %s6229_s30, 1 }
  0x17   : > { %5208 = vmatprep.subr.mxu0 %v566_v1  ;;  %5432 = vmatprep.subr.mxu1 %v566_v1  ;;  %v558_v9 = vld [vmem:[%s8349_s4 + $0x30] sm:$0xff]  ;;  %v557_v10 = vld [vmem:[%s8349_s4 + $0x28] sm:$0xff]  ;;  %v556_v11 = vld [vmem:[%s8349_s4 + $0x20] sm:$0xff] }
  0x18   : > { %5209 = vmatpush3.msra.mxu0 %v566_v1  ;;  %5433 = vmatpush3.msra.mxu1 %v566_v1  ;;  %v555_v12 = vld [vmem:[%s8349_s4 + $0x18] sm:$0xff]  ;;  %s6386_s22 = sshll.u32 %s6377_s14, 10  ;;  %v554_v13 = vld [vmem:[%s8349_s4 + $0x10] sm:$0xff]  ;;  %v553_v14 = vld [vmem:[%s8349_s4 + $0x8] sm:$0xff]  ;;  %s4619_s23 = sshll.u32 %s6377_s14, 2 }
  0x19   : > { %5210 = vmatprep.subr.mxu0 %v565_v2  ;;  %5434 = vmatprep.subr.mxu1 %v565_v2  ;;  %s6398_s16 = scalar_lea.vmem %s8345_s0, %s6386_s22  ;;  %s6404_s21 = scalar_lea.vmem %s8346_s1, %s6386_s22  ;;  %v552_v15 = vld [vmem:[%s8349_s4] sm:$0xff]  ;;  %v2249_v20 = vld [vmem:[%s8350_s5 + $0x78] sm:$0xff]  ;;  %v2248_v23 = vld [vmem:[%s8350_s5 + $0x70] sm:$0xff] }
  0x1a   : > { %5211 = vmatpush3.msra.mxu0 %v565_v2  ;;  %5435 = vmatpush3.msra.mxu1 %v565_v2  ;;  %v424_v16 = vld [vmem:[%s6398_s16] sm:$0xff]  ;;  %v425_v18 = vld [vmem:[%s6398_s16 + $0x8] sm:$0xff]  ;;  %v426_v21 = vld [vmem:[%s6398_s16 + $0x10] sm:$0xff]  ;;  %s6674_s26 = scalar_lea.vmem %s8348_s3, %s4619_s23  ;;  %s6875_s12 = scalar_lea.vmem %s8347_s2, %s6386_s22 }
  0x1b   : > { %5212 = vmatprep.subr.mxu0 %v564_v3  ;;  %5436 = vmatprep.subr.mxu1 %v564_v3  ;;  %v1273_v17 = vld [vmem:[%s6404_s21] sm:$0xff]  ;;  %v1274_v19 = vld [vmem:[%s6404_s21 + $0x8] sm:$0xff]  ;;  %v1275_v22 = vld [vmem:[%s6404_s21 + $0x10] sm:$0xff]  ;;  %s4629_s23 = sshll.u32 %s6229_s30, 14  ;;  %s6165_s22 = sshll.u32 %s6239_s19, 4  ;;  %s6166_s22 = int_to_ptr.vmem [resolvable:$false] %s6165_s22 }
  0x1c   : > { %5213 = vmatpush3.msra.mxu0 %v564_v3  ;;  %5437 = vmatpush3.msra.mxu1 %v564_v3  ;;  %v427_v24 = vld [vmem:[%s6398_s16 + $0x18] sm:$0xff]  ;;  %v428_v26 = vld [vmem:[%s6398_s16 + $0x20] sm:$0xff]  ;;  %v2247_v28 = vld [vmem:[%s8350_s5 + $0x68] sm:$0xff]  ;;  %s8291_s11 = scalar_lea.hbm %s8353_s8, %s4629_s23 }
  0x1d   : > { %5214 = vmatprep.subr.mxu0 %v563_v4  ;;  %5438 = vmatprep.subr.mxu1 %v563_v4  ;;  %v1276_v25 = vld [vmem:[%s6404_s21 + $0x18] sm:$0xff]  ;;  %v1277_v27 = vld [vmem:[%s6404_s21 + $0x20] sm:$0xff]  ;;  %v429_v29 = vld [vmem:[%s6398_s16 + $0x28] sm:$0xff] }
  0x1e   : > { %5215 = vmatpush3.msra.mxu0 %v563_v4  ;;  %5439 = vmatpush3.msra.mxu1 %v563_v4  ;;  %v1278_v30 = vld [vmem:[%s6404_s21 + $0x28] sm:$0xff]  ;;  %v430_v31 = vld [vmem:[%s6398_s16 + $0x30] sm:$0xff]  ;;  %v2246_v33 = vld [vmem:[%s8350_s5 + $0x60] sm:$0xff] }
  0x1f   : > { %5216 = vmatprep.subr.mxu0 %v562_v5  ;;  %5440 = vmatprep.subr.mxu1 %v562_v5  ;;  %v1279_v32 = vld [vmem:[%s6404_s21 + $0x30] sm:$0xff]  ;;  %v431_v34 = vld [vmem:[%s6398_s16 + $0x38] sm:$0xff]  ;;  %v432_v36 = vld [vmem:[%s6398_s16 + $0x40] sm:$0xff] }
  0x20   : > { %5217 = vmatpush3.msra.mxu0 %v562_v5  ;;  %5441 = vmatpush3.msra.mxu1 %v562_v5  ;;  %v1280_v35 = vld [vmem:[%s6404_s21 + $0x38] sm:$0xff]  ;;  %v1281_v37 = vld [vmem:[%s6404_s21 + $0x40] sm:$0xff]  ;;  %v433_v39 = vld [vmem:[%s6398_s16 + $0x48] sm:$0xff] }
  0x21   : > { %5218 = vmatprep.subr.mxu0 %v561_v6  ;;  %5442 = vmatprep.subr.mxu1 %v561_v6  ;;  %v2245_v38 = vld [vmem:[%s8350_s5 + $0x58] sm:$0xff]  ;;  %v1282_v40 = vld [vmem:[%s6404_s21 + $0x48] sm:$0xff]  ;;  %v434_v41 = vld [vmem:[%s6398_s16 + $0x50] sm:$0xff] }
  0x22   : > { %5219 = vmatpush3.msra.mxu0 %v561_v6  ;;  %5443 = vmatpush3.msra.mxu1 %v561_v6  ;;  %v1283_v42 = vld [vmem:[%s6404_s21 + $0x50] sm:$0xff]  ;;  %v435_v44 = vld [vmem:[%s6398_s16 + $0x58] sm:$0xff]  ;;  %v436_v46 = vld [vmem:[%s6398_s16 + $0x60] sm:$0xff] }
  0x23   : > { %5220 = vmatprep.subr.mxu0 %v560_v7  ;;  %5444 = vmatprep.subr.mxu1 %v560_v7  ;;  %v2244_v43 = vld [vmem:[%s8350_s5 + $0x50] sm:$0xff]  ;;  %v1284_v45 = vld [vmem:[%s6404_s21 + $0x58] sm:$0xff]  ;;  %v1285_v47 = vld [vmem:[%s6404_s21 + $0x60] sm:$0xff] }
  0x24   : > { %5221 = vmatpush3.msra.mxu0 %v560_v7  ;;  %5445 = vmatpush3.msra.mxu1 %v560_v7  ;;  %v2243_v48 = vld [vmem:[%s8350_s5 + $0x48] sm:$0xff]  ;;  %v438_v51 = vld [vmem:[%s6398_s16 + $0x70] sm:$0xff]  ;;  %v2242_v53 = vld [vmem:[%s8350_s5 + $0x40] sm:$0xff] }
  0x25   : > { %5222 = vmatprep.subr.mxu0 %v559_v8  ;;  %5446 = vmatprep.subr.mxu1 %v559_v8  ;;  %v437_v49 = vld [vmem:[%s6398_s16 + $0x68] sm:$0xff]  ;;  %v1287_v52 = vld [vmem:[%s6404_s21 + $0x70] sm:$0xff]  ;;  %v439_v54 = vld [vmem:[%s6398_s16 + $0x78] sm:$0xff] }
  0x26   : > { %5223 = vmatpush3.msra.mxu0 %v559_v8  ;;  %5447 = vmatpush3.msra.mxu1 %v559_v8  ;;  %v1286_v50 = vld [vmem:[%s6404_s21 + $0x68] sm:$0xff]  ;;  %v1288_v55 = vld [vmem:[%s6404_s21 + $0x78] sm:$0xff]  ;;  %v440_v56 = vld [vmem:[%s6398_s16 + $0x80] sm:$0xff] }
  0x27   : > { %5224 = vmatprep.subr.mxu0 %v558_v9  ;;  %5448 = vmatprep.subr.mxu1 %v558_v9  ;;  %v1289_v57 = vld [vmem:[%s6404_s21 + $0x80] sm:$0xff]  ;;  %v2241_v58 = vld [vmem:[%s8350_s5 + $0x38] sm:$0xff]  ;;  %v441_v59 = vld [vmem:[%s6398_s16 + $0x88] sm:$0xff] }
  0x28   : > { %5225 = vmatpush3.msra.mxu0 %v558_v9  ;;  %5449 = vmatpush3.msra.mxu1 %v558_v9  ;;  %v1290_v60 = vld [vmem:[%s6404_s21 + $0x88] sm:$0xff]  ;;  %v442_v61 = vld [vmem:[%s6398_s16 + $0x90] sm:$0xff]  ;;  %v443_v0 = vld [vmem:[%s6398_s16 + $0x98] sm:$0xff] }
  0x29   : > { %5226 = vmatprep.subr.mxu0 %v557_v10  ;;  %5450 = vmatprep.subr.mxu1 %v557_v10  ;;  %v1291_v62 = vld [vmem:[%s6404_s21 + $0x90] sm:$0xff]  ;;  %v1292_v1 = vld [vmem:[%s6404_s21 + $0x98] sm:$0xff]  ;;  %v444_v2 = vld [vmem:[%s6398_s16 + $0xa0] sm:$0xff] }
  0x2a   : > { %5227 = vmatpush3.msra.mxu0 %v557_v10  ;;  %5451 = vmatpush3.msra.mxu1 %v557_v10  ;;  %v2240_v63 = vld [vmem:[%s8350_s5 + $0x30] sm:$0xff]  ;;  %v1293_v3 = vld [vmem:[%s6404_s21 + $0xa0] sm:$0xff]  ;;  %v2239_v4 = vld [vmem:[%s8350_s5 + $0x28] sm:$0xff] }
  0x2b   : > { %5228 = vmatprep.subr.mxu0 %v556_v11  ;;  %5452 = vmatprep.subr.mxu1 %v556_v11  ;;  %v445_v5 = vld [vmem:[%s6398_s16 + $0xa8] sm:$0xff]  ;;  %v446_v7 = vld [vmem:[%s6398_s16 + $0xb0] sm:$0xff]  ;;  %v447_v9 = vld [vmem:[%s6398_s16 + $0xb8] sm:$0xff] }
  0x2c   : > { %5229 = vmatpush3.msra.mxu0 %v556_v11  ;;  %5453 = vmatpush3.msra.mxu1 %v556_v11  ;;  %v1294_v6 = vld [vmem:[%s6404_s21 + $0xa8] sm:$0xff]  ;;  %v1295_v8 = vld [vmem:[%s6404_s21 + $0xb0] sm:$0xff]  ;;  %v1296_v10 = vld [vmem:[%s6404_s21 + $0xb8] sm:$0xff] }
  0x2d   : > { %5230 = vmatprep.subr.mxu0 %v555_v12  ;;  %5454 = vmatprep.subr.mxu1 %v555_v12  ;;  %v448_v11 = vld [vmem:[%s6398_s16 + $0xc0] sm:$0xff] }
  0x2e   : > { %5231 = vmatpush3.msra.mxu0 %v555_v12  ;;  %5455 = vmatpush3.msra.mxu1 %v555_v12  ;;  %v1297_v12 = vld [vmem:[%s6404_s21 + $0xc0] sm:$0xff] }
  0x2f   : > { %5232 = vmatprep.subr.mxu0 %v554_v13  ;;  %5456 = vmatprep.subr.mxu1 %v554_v13 }
  0x30   : > { %5233 = vmatpush3.msra.mxu0 %v554_v13  ;;  %5457 = vmatpush3.msra.mxu1 %v554_v13  ;;  %v449_v13 = vld [vmem:[%s6398_s16 + $0xc8] sm:$0xff] }
  0x31   : > { %5234 = vmatprep.subr.mxu0 %v553_v14  ;;  %5458 = vmatprep.subr.mxu1 %v553_v14 }
  0x32   : > { %5235 = vmatpush3.msra.mxu0 %v553_v14  ;;  %5459 = vmatpush3.msra.mxu1 %v553_v14  ;;  %v1298_v14 = vld [vmem:[%s6404_s21 + $0xc8] sm:$0xff] }
  0x33   : > { %5236 = vmatprep.subr.mxu0 %v552_v15  ;;  %5460 = vmatprep.subr.mxu1 %v552_v15 }
  0x34   : > { %5237 = vmatpush3.msra.mxu0 %v552_v15  ;;  %5238 = vmatprep.mubr.f32.mxu0 %v424_v16  ;;  %v1299_v16 = vld [vmem:[%s6404_s21 + $0xd0] sm:$0xff] }
  0x35   : > { %5461 = vmatpush3.msra.mxu1 %v552_v15  ;;  %5462 = vmatprep.mubr.f32.mxu1 %v1273_v17  ;;  %v450_v15 = vld [vmem:[%s6398_s16 + $0xd0] sm:$0xff]  ;;  %v2238_v17 = vld [vmem:[%s8350_s5 + $0x20] sm:$0xff] }
  0x36   : > { %5239 = vmatmul.mubr.f32.vlgmr.msra.gmra.mxu0 %v425_v18  ;;  %5463 = vmatmul.mubr.f32.vlgmr.msra.gmra.mxu1 %v1274_v19  ;;  %v451_v18 = vld [vmem:[%s6398_s16 + $0xd8] sm:$0xff] }
  0x37   : > { %5654 = vmatprep.subr.mxu0 %v2249_v20  ;;  %5241 = vmatprep.mubr.f32.mxu0 %v426_v21  ;;  %v1300_v19 = vld [vmem:[%s6404_s21 + $0xd8] sm:$0xff]  ;;  %v1301_v21 = vld [vmem:[%s6404_s21 + $0xe0] sm:$0xff] }
  0x38   : > { %5655 = vmatpush3.msra.mxu0 %v2249_v20  ;;  %5465 = vmatprep.mubr.f32.mxu1 %v1275_v22  ;;  %v452_v20 = vld [vmem:[%s6398_s16 + $0xe0] sm:$0xff]  ;;  %v453_v22 = vld [vmem:[%s6398_s16 + $0xe8] sm:$0xff] }
  0x39   : > { %5656 = vmatprep.subr.mxu0 %v2248_v23 }
  0x3a   : > { %5242 = vmatmul.mubr.f32.gmra.mxu0 %v427_v24  ;;  %5466 = vmatmul.mubr.f32.gmra.mxu1 %v1276_v25  ;;  %v454_v24 = vld [vmem:[%s6398_s16 + $0xf0] sm:$0xff] }
  0x3b   : > { %5244 = vmatprep.mubr.f32.mxu0 %v428_v26  ;;  %5468 = vmatprep.mubr.f32.mxu1 %v1277_v27  ;;  %v1303_v25 = vld [vmem:[%s6404_s21 + $0xf0] sm:$0xff]  ;;  %v455_v26 = vld [vmem:[%s6398_s16 + $0xf8] sm:$0xff] }
  0x3c   : > { %5657 = vmatpush3.msra.mxu0 %v2248_v23  ;;  %v1302_v23 = vld [vmem:[%s6404_s21 + $0xe8] sm:$0xff]  ;;  %v1304_v27 = vld [vmem:[%s6404_s21 + $0xf8] sm:$0xff] }
  0x3d   : > { %5658 = vmatprep.subr.mxu0 %v2247_v28 }
  0x3e   : > { %5245 = vmatmul.mubr.f32.gmra.mxu0 %v429_v29  ;;  %5469 = vmatmul.mubr.f32.gmra.mxu1 %v1278_v30  ;;  %v1305_v29 = vld [vmem:[%s6404_s21 + $0x100] sm:$0xff]  ;;  %v457_v30 = vld [vmem:[%s6398_s16 + $0x108] sm:$0xff] }
  0x3f   : > { %5247 = vmatprep.mubr.f32.mxu0 %v430_v31  ;;  %5471 = vmatprep.mubr.f32.mxu1 %v1279_v32  ;;  %v1306_v31 = vld [vmem:[%s6404_s21 + $0x108] sm:$0xff]  ;;  %v458_v32 = vld [vmem:[%s6398_s16 + $0x110] sm:$0xff] }
  0x40   : > { %5659 = vmatpush3.msra.mxu0 %v2247_v28  ;;  %v456_v28 = vld [vmem:[%s6398_s16 + $0x100] sm:$0xff] }
  0x41   : > { %5660 = vmatprep.subr.mxu0 %v2246_v33 }
  0x42   : > { %5248 = vmatmul.mubr.f32.gmra.mxu0 %v431_v34  ;;  %5472 = vmatmul.mubr.f32.gmra.mxu1 %v1280_v35  ;;  %v459_v34 = vld [vmem:[%s6398_s16 + $0x118] sm:$0xff] }
  0x43   : > { %5250 = vmatprep.mubr.f32.mxu0 %v432_v36  ;;  %5474 = vmatprep.mubr.f32.mxu1 %v1281_v37  ;;  %v1308_v35 = vld [vmem:[%s6404_s21 + $0x118] sm:$0xff]  ;;  %v460_v36 = vld [vmem:[%s6398_s16 + $0x120] sm:$0xff] }
  0x44   : > { %5661 = vmatpush3.msra.mxu0 %v2246_v33  ;;  %v1307_v33 = vld [vmem:[%s6404_s21 + $0x110] sm:$0xff]  ;;  %v1309_v37 = vld [vmem:[%s6404_s21 + $0x120] sm:$0xff] }
  0x45   : > { %5662 = vmatprep.subr.mxu0 %v2245_v38 }
  0x46   : > { %5251 = vmatmul.mubr.f32.gmra.mxu0 %v433_v39  ;;  %5475 = vmatmul.mubr.f32.gmra.mxu1 %v1282_v40  ;;  %v461_v39 = vld [vmem:[%s6398_s16 + $0x128] sm:$0xff] }
  0x47   : > { %5253 = vmatprep.mubr.f32.mxu0 %v434_v41  ;;  %5477 = vmatprep.mubr.f32.mxu1 %v1283_v42  ;;  %v1310_v40 = vld [vmem:[%s6404_s21 + $0x128] sm:$0xff]  ;;  %v462_v41 = vld [vmem:[%s6398_s16 + $0x130] sm:$0xff] }
  0x48   : > { %5663 = vmatpush3.msra.mxu0 %v2245_v38  ;;  %v2237_v38 = vld [vmem:[%s8350_s5 + $0x18] sm:$0xff]  ;;  %v1311_v42 = vld [vmem:[%s6404_s21 + $0x130] sm:$0xff] }
  0x49   : > { %5664 = vmatprep.subr.mxu0 %v2244_v43 }
  0x4a   : > { %5254 = vmatmul.mubr.f32.gmra.mxu0 %v435_v44  ;;  %5478 = vmatmul.mubr.f32.gmra.mxu1 %v1284_v45  ;;  %v1312_v44 = vld [vmem:[%s6404_s21 + $0x138] sm:$0xff]  ;;  %v464_v45 = vld [vmem:[%s6398_s16 + $0x140] sm:$0xff] }
  0x4b   : > { %5256 = vmatprep.mubr.f32.mxu0 %v436_v46  ;;  %5480 = vmatprep.mubr.f32.mxu1 %v1285_v47  ;;  %v1313_v46 = vld [vmem:[%s6404_s21 + $0x140] sm:$0xff]  ;;  %v3623_v47 = vld [vmem:[%s8351_s6 + $0x78] sm:$0xff] }
  0x4c   : > { %5665 = vmatpush3.msra.mxu0 %v2244_v43  ;;  %v463_v43 = vld [vmem:[%s6398_s16 + $0x138] sm:$0xff]  ;;  %5878 = vmatprep.subr.mxu1 %v3623_v47 }
  0x4d   : > { %5666 = vmatprep.subr.mxu0 %v2243_v48  ;;  %5879 = vmatpush3.msra.mxu1 %v3623_v47  ;;  %v1342_v47 = vld [vmem:[%s6404_s21 + $0x228] sm:$0xff] }
  0x4e   : > { %5257 = vmatmul.mubr.f32.gmra.mxu0 %v437_v49  ;;  %5481 = vmatmul.mubr.f32.gmra.mxu1 %v1286_v50  ;;  %v1314_v49 = vld [vmem:[%s6404_s21 + $0x148] sm:$0xff]  ;;  %v466_v50 = vld [vmem:[%s6398_s16 + $0x150] sm:$0xff] }
  0x4f   : > { %5259 = vmatprep.mubr.f32.mxu0 %v438_v51  ;;  %5483 = vmatprep.mubr.f32.mxu1 %v1287_v52  ;;  %v1315_v51 = vld [vmem:[%s6404_s21 + $0x150] sm:$0xff]  ;;  %v467_v52 = vld [vmem:[%s6398_s16 + $0x158] sm:$0xff] }
  0x50   : > { %5667 = vmatpush3.msra.mxu0 %v2243_v48  ;;  %v465_v48 = vld [vmem:[%s6398_s16 + $0x148] sm:$0xff] }
  0x51   : > { %5668 = vmatprep.subr.mxu0 %v2242_v53 }
  0x52   : > { %5260 = vmatmul.mubr.f32.gmra.mxu0 %v439_v54  ;;  %5484 = vmatmul.mubr.f32.gmra.mxu1 %v1288_v55  ;;  %v468_v54 = vld [vmem:[%s6398_s16 + $0x160] sm:$0xff] }
  0x53   : > { %5262 = vmatprep.mubr.f32.mxu0 %v440_v56  ;;  %5486 = vmatprep.mubr.f32.mxu1 %v1289_v57  ;;  %v1317_v55 = vld [vmem:[%s6404_s21 + $0x160] sm:$0xff]  ;;  %v2236_v56 = vld [vmem:[%s8350_s5 + $0x10] sm:$0xff]  ;;  %v469_v57 = vld [vmem:[%s6398_s16 + $0x168] sm:$0xff] }
  0x54   : > { %5669 = vmatpush3.msra.mxu0 %v2242_v53  ;;  %v1316_v53 = vld [vmem:[%s6404_s21 + $0x158] sm:$0xff] }
  0x55   : > { %5670 = vmatprep.subr.mxu0 %v2241_v58 }
  0x56   : > { %5263 = vmatmul.mubr.f32.gmra.mxu0 %v441_v59  ;;  %5487 = vmatmul.mubr.f32.gmra.mxu1 %v1290_v60  ;;  %v470_v59 = vld [vmem:[%s6398_s16 + $0x170] sm:$0xff] }
  0x57   : > { %5265 = vmatprep.mubr.f32.mxu0 %v442_v61  ;;  %5489 = vmatprep.mubr.f32.mxu1 %v1291_v62  ;;  %v1319_v60 = vld [vmem:[%s6404_s21 + $0x170] sm:$0xff]  ;;  %v471_v61 = vld [vmem:[%s6398_s16 + $0x178] sm:$0xff] }
  0x58   : > { %5671 = vmatpush3.msra.mxu0 %v2241_v58  ;;  %v1318_v58 = vld [vmem:[%s6404_s21 + $0x168] sm:$0xff]  ;;  %v1320_v62 = vld [vmem:[%s6404_s21 + $0x178] sm:$0xff] }
  0x59   : > { %5672 = vmatprep.subr.mxu0 %v2240_v63 }
  0x5a   : > { %5266 = vmatmul.mubr.f32.gmra.mxu0 %v443_v0  ;;  %5490 = vmatmul.mubr.f32.gmra.mxu1 %v1292_v1  ;;  %v1321_v0 = vld [vmem:[%s6404_s21 + $0x180] sm:$0xff]  ;;  %v3622_v1 = vld [vmem:[%s8351_s6 + $0x70] sm:$0xff] }
  0x5b   : > { %5268 = vmatprep.mubr.f32.mxu0 %v444_v2  ;;  %5492 = vmatprep.mubr.f32.mxu1 %v1293_v3  ;;  %v473_v2 = vld [vmem:[%s6398_s16 + $0x188] sm:$0xff] }
  0x5c   : > { %5673 = vmatpush3.msra.mxu0 %v2240_v63  ;;  %v472_v63 = vld [vmem:[%s6398_s16 + $0x180] sm:$0xff]  ;;  %v1322_v3 = vld [vmem:[%s6404_s21 + $0x188] sm:$0xff]  ;;  %5880 = vmatprep.subr.mxu1 %v3622_v1 }
  0x5d   : > { %5674 = vmatprep.subr.mxu0 %v2239_v4  ;;  %5881 = vmatpush3.msra.mxu1 %v3622_v1  ;;  %v502_v1 = vld [vmem:[%s6398_s16 + $0x270] sm:$0xff] }
  0x5e   : > { %5269 = vmatmul.mubr.f32.gmra.mxu0 %v445_v5  ;;  %5493 = vmatmul.mubr.f32.gmra.mxu1 %v1294_v6  ;;  %v1323_v5 = vld [vmem:[%s6404_s21 + $0x190] sm:$0xff]  ;;  %v475_v6 = vld [vmem:[%s6398_s16 + $0x198] sm:$0xff] }
  0x5f   : > { %5271 = vmatprep.mubr.f32.mxu0 %v446_v7  ;;  %5495 = vmatprep.mubr.f32.mxu1 %v1295_v8  ;;  %v1324_v7 = vld [vmem:[%s6404_s21 + $0x198] sm:$0xff]  ;;  %v476_v8 = vld [vmem:[%s6398_s16 + $0x1a0] sm:$0xff] }
  0x60   : > { %5675 = vmatpush3.msra.mxu0 %v2239_v4  ;;  %v474_v4 = vld [vmem:[%s6398_s16 + $0x190] sm:$0xff] }
  0x61   : > { %5676 = vmatprep.subr.mxu0 %v2238_v17 }
  0x62   : > { %5272 = vmatmul.mubr.f32.gmra.mxu0 %v447_v9  ;;  %5496 = vmatmul.mubr.f32.gmra.mxu1 %v1296_v10  ;;  %v1325_v9 = vld [vmem:[%s6404_s21 + $0x1a0] sm:$0xff]  ;;  %v2235_v10 = vld [vmem:[%s8350_s5 + $0x8] sm:$0xff] }
  0x63   : > { %5274 = vmatprep.mubr.f32.mxu0 %v448_v11  ;;  %5498 = vmatprep.mubr.f32.mxu1 %v1297_v12  ;;  %v477_v11 = vld [vmem:[%s6398_s16 + $0x1a8] sm:$0xff] }
  0x64   : > { %5677 = vmatpush3.msra.mxu0 %v2238_v17  ;;  %v1326_v12 = vld [vmem:[%s6404_s21 + $0x1a8] sm:$0xff]  ;;  %v480_v17 = vld [vmem:[%s6398_s16 + $0x1c0] sm:$0xff] }
  0x65   : > { %5678 = vmatprep.subr.mxu0 %v2237_v38 }
  0x66   : > { %5275 = vmatmul.mubr.f32.gmra.mxu0 %v449_v13  ;;  %5499 = vmatmul.mubr.f32.gmra.mxu1 %v1298_v14  ;;  %v478_v13 = vld [vmem:[%s6398_s16 + $0x1b0] sm:$0xff] }
  0x67   : > { %5277 = vmatprep.mubr.f32.mxu0 %v450_v15  ;;  %5501 = vmatprep.mubr.f32.mxu1 %v1299_v16  ;;  %v1327_v14 = vld [vmem:[%s6404_s21 + $0x1b0] sm:$0xff]  ;;  %v479_v15 = vld [vmem:[%s6398_s16 + $0x1b8] sm:$0xff] }
  0x68   : > { %5679 = vmatpush3.msra.mxu0 %v2237_v38  ;;  %v1328_v16 = vld [vmem:[%s6404_s21 + $0x1b8] sm:$0xff]  ;;  %v489_v38 = vld [vmem:[%s6398_s16 + $0x208] sm:$0xff] }
  0x69   : > { %5680 = vmatprep.subr.mxu0 %v2236_v56 }
  0x6a   : > { %5278 = vmatmul.mubr.f32.gmra.mxu0 %v451_v18  ;;  %5502 = vmatmul.mubr.f32.gmra.mxu1 %v1300_v19  ;;  %v1329_v18 = vld [vmem:[%s6404_s21 + $0x1c0] sm:$0xff]  ;;  %v3621_v19 = vld [vmem:[%s8351_s6 + $0x68] sm:$0xff] }
  0x6b   : > { %5280 = vmatprep.mubr.f32.mxu0 %v452_v20  ;;  %5504 = vmatprep.mubr.f32.mxu1 %v1301_v21  ;;  %v481_v20 = vld [vmem:[%s6398_s16 + $0x1c8] sm:$0xff] }
  0x6c   : > { %5681 = vmatpush3.msra.mxu0 %v2236_v56  ;;  %v1330_v21 = vld [vmem:[%s6404_s21 + $0x1c8] sm:$0xff]  ;;  %5882 = vmatprep.subr.mxu1 %v3621_v19 }
  0x6d   : > { %5682 = vmatprep.subr.mxu0 %v2235_v10  ;;  %5883 = vmatpush3.msra.mxu1 %v3621_v19  ;;  %v1346_v56 = vld [vmem:[%s6404_s21 + $0x248] sm:$0xff]  ;;  %v1359_v19 = vld [vmem:[%s6404_s21 + $0x2b0] sm:$0xff] }
  0x6e   : > { %5281 = vmatmul.mubr.f32.gmra.mxu0 %v453_v22  ;;  %5505 = vmatmul.mubr.f32.gmra.mxu1 %v1302_v23  ;;  %v482_v22 = vld [vmem:[%s6398_s16 + $0x1d0] sm:$0xff] }
  0x6f   : > { %5283 = vmatprep.mubr.f32.mxu0 %v454_v24  ;;  %5507 = vmatprep.mubr.f32.mxu1 %v1303_v25  ;;  %v1331_v23 = vld [vmem:[%s6404_s21 + $0x1d0] sm:$0xff]  ;;  %v483_v24 = vld [vmem:[%s6398_s16 + $0x1d8] sm:$0xff] }
  0x70   : > { %5683 = vmatpush3.msra.mxu0 %v2235_v10  ;;  %v1332_v25 = vld [vmem:[%s6404_s21 + $0x1d8] sm:$0xff]  ;;  %v506_v10 = vld [vmem:[%s6398_s16 + $0x290] sm:$0xff] }
  0x72   : > { %5284 = vmatmul.mubr.f32.gmra.mxu0 %v455_v26  ;;  %5508 = vmatmul.mubr.f32.gmra.mxu1 %v1304_v27  ;;  %v484_v26 = vld [vmem:[%s6398_s16 + $0x1e0] sm:$0xff] }
  0x73   : > { %5286 = vmatprep.mubr.f32.mxu0 %v456_v28  ;;  %5510 = vmatprep.mubr.f32.mxu1 %v1305_v29  ;;  %v1333_v27 = vld [vmem:[%s6404_s21 + $0x1e0] sm:$0xff]  ;;  %v485_v29 = vld [vmem:[%s6398_s16 + $0x1e8] sm:$0xff] }
  0x74   : > { %v2234_v28 = vld [vmem:[%s8350_s5] sm:$0xff] }
  0x75   : > { %5684 = vmatprep.subr.mxu0 %v2234_v28 }
  0x76   : > { %5287 = vmatmul.mubr.f32.gmra.mxu0 %v457_v30  ;;  %5511 = vmatmul.mubr.f32.gmra.mxu1 %v1306_v31  ;;  %v1334_v30 = vld [vmem:[%s6404_s21 + $0x1e8] sm:$0xff]  ;;  %v486_v31 = vld [vmem:[%s6398_s16 + $0x1f0] sm:$0xff] }
  0x77   : > { %5289 = vmatprep.mubr.f32.mxu0 %v458_v32  ;;  %5513 = vmatprep.mubr.f32.mxu1 %v1307_v33  ;;  %v1335_v32 = vld [vmem:[%s6404_s21 + $0x1f0] sm:$0xff]  ;;  %v487_v33 = vld [vmem:[%s6398_s16 + $0x1f8] sm:$0xff] }
  0x78   : > { %5685 = vmatpush3.msra.mxu0 %v2234_v28  ;;  %v1363_v28 = vld [vmem:[%s6404_s21 + $0x2d0] sm:$0xff] }
  0x7a   : > { %5290 = vmatmul.mubr.f32.gmra.mxu0 %v459_v34  ;;  %5514 = vmatmul.mubr.f32.gmra.mxu1 %v1308_v35  ;;  %v1336_v34 = vld [vmem:[%s6404_s21 + $0x1f8] sm:$0xff]  ;;  %v488_v35 = vld [vmem:[%s6398_s16 + $0x200] sm:$0xff] }
  0x7b   : > { %5292 = vmatprep.mubr.f32.mxu0 %v460_v36  ;;  %5516 = vmatprep.mubr.f32.mxu1 %v1309_v37  ;;  %v1337_v36 = vld [vmem:[%s6404_s21 + $0x200] sm:$0xff] }
  0x7c   : > { %v3620_v37 = vld [vmem:[%s8351_s6 + $0x60] sm:$0xff] }
  0x7d   : > { %5884 = vmatprep.subr.mxu1 %v3620_v37 }
  0x7e   : > { %5293 = vmatmul.mubr.f32.gmra.mxu0 %v461_v39  ;;  %5517 = vmatmul.mubr.f32.gmra.mxu1 %v1310_v40  ;;  %v1338_v39 = vld [vmem:[%s6404_s21 + $0x208] sm:$0xff]  ;;  %v490_v40 = vld [vmem:[%s6398_s16 + $0x210] sm:$0xff] }
  0x7f   : > { %5295 = vmatprep.mubr.f32.mxu0 %v462_v41  ;;  %5519 = vmatprep.mubr.f32.mxu1 %v1311_v42  ;;  %v1339_v41 = vld [vmem:[%s6404_s21 + $0x210] sm:$0xff]  ;;  %v491_v42 = vld [vmem:[%s6398_s16 + $0x218] sm:$0xff] }
  0x80   : > { %5885 = vmatpush3.msra.mxu1 %v3620_v37  ;;  %v518_v37 = vld [vmem:[%s6398_s16 + $0x2f0] sm:$0xff] }
  0x82   : > { %5296 = vmatmul.mubr.f32.gmra.mxu0 %v463_v43  ;;  %5520 = vmatmul.mubr.f32.gmra.mxu1 %v1312_v44  ;;  %v1340_v43 = vld [vmem:[%s6404_s21 + $0x218] sm:$0xff]  ;;  %v492_v44 = vld [vmem:[%s6398_s16 + $0x220] sm:$0xff] }
  0x83   : > { %5298 = vmatprep.mubr.f32.mxu0 %v464_v45  ;;  %5522 = vmatprep.mubr.f32.mxu1 %v1313_v46  ;;  %v1341_v45 = vld [vmem:[%s6404_s21 + $0x220] sm:$0xff]  ;;  %v493_v46 = vld [vmem:[%s6398_s16 + $0x228] sm:$0xff] }
  0x86   : > { %5299 = vmatmul.mubr.f32.gmra.mxu0 %v465_v48  ;;  %5523 = vmatmul.mubr.f32.gmra.mxu1 %v1314_v49  ;;  %v494_v48 = vld [vmem:[%s6398_s16 + $0x230] sm:$0xff] }
  0x87   : > { %5301 = vmatprep.mubr.f32.mxu0 %v466_v50  ;;  %5525 = vmatprep.mubr.f32.mxu1 %v1315_v51  ;;  %v1343_v49 = vld [vmem:[%s6404_s21 + $0x230] sm:$0xff]  ;;  %v495_v50 = vld [vmem:[%s6398_s16 + $0x238] sm:$0xff] }
  0x88   : > { %v1344_v51 = vld [vmem:[%s6404_s21 + $0x238] sm:$0xff] }
  0x8a   : > { %5302 = vmatmul.mubr.f32.gmra.mxu0 %v467_v52  ;;  %5526 = vmatmul.mubr.f32.gmra.mxu1 %v1316_v53  ;;  %v496_v52 = vld [vmem:[%s6398_s16 + $0x240] sm:$0xff] }
  0x8b   : > { %5304 = vmatprep.mubr.f32.mxu0 %v468_v54  ;;  %5528 = vmatprep.mubr.f32.mxu1 %v1317_v55  ;;  %v1345_v53 = vld [vmem:[%s6404_s21 + $0x240] sm:$0xff]  ;;  %v3619_v54 = vld [vmem:[%s8351_s6 + $0x58] sm:$0xff]  ;;  %v497_v55 = vld [vmem:[%s6398_s16 + $0x248] sm:$0xff] }
  0x8c   : > { %5886 = vmatprep.subr.mxu1 %v3619_v54 }
  0x8d   : > { %5887 = vmatpush3.msra.mxu1 %v3619_v54 }
  0x8e   : > { %5305 = vmatmul.mubr.f32.gmra.mxu0 %v469_v57  ;;  %5529 = vmatmul.mubr.f32.gmra.mxu1 %v1318_v58  ;;  %v498_v57 = vld [vmem:[%s6398_s16 + $0x250] sm:$0xff] }
  0x8f   : > { %5307 = vmatprep.mubr.f32.mxu0 %v470_v59  ;;  %5531 = vmatprep.mubr.f32.mxu1 %v1319_v60  ;;  %v1347_v58 = vld [vmem:[%s6404_s21 + $0x250] sm:$0xff]  ;;  %v499_v59 = vld [vmem:[%s6398_s16 + $0x258] sm:$0xff] }
  0x90   : > { %v1348_v60 = vld [vmem:[%s6404_s21 + $0x258] sm:$0xff] }
  0x92   : > { %5308 = vmatmul.mubr.f32.gmra.mxu0 %v471_v61  ;;  %5532 = vmatmul.mubr.f32.gmra.mxu1 %v1320_v62  ;;  %v500_v61 = vld [vmem:[%s6398_s16 + $0x260] sm:$0xff] }
  0x93   : > { %5310 = vmatprep.mubr.f32.mxu0 %v472_v63  ;;  %5534 = vmatprep.mubr.f32.mxu1 %v1321_v0  ;;  %v1349_v62 = vld [vmem:[%s6404_s21 + $0x260] sm:$0xff]  ;;  %v501_v63 = vld [vmem:[%s6398_s16 + $0x268] sm:$0xff] }
  0x94   : > { %v1350_v0 = vld [vmem:[%s6404_s21 + $0x268] sm:$0xff] }
  0x96   : > { %5311 = vmatmul.mubr.f32.gmra.mxu0 %v473_v2  ;;  %5535 = vmatmul.mubr.f32.gmra.mxu1 %v1322_v3  ;;  %v1351_v2 = vld [vmem:[%s6404_s21 + $0x270] sm:$0xff]  ;;  %v503_v3 = vld [vmem:[%s6398_s16 + $0x278] sm:$0xff] }
  0x97   : > { %5313 = vmatprep.mubr.f32.mxu0 %v474_v4  ;;  %5537 = vmatprep.mubr.f32.mxu1 %v1323_v5  ;;  %v1352_v4 = vld [vmem:[%s6404_s21 + $0x278] sm:$0xff]  ;;  %v504_v5 = vld [vmem:[%s6398_s16 + $0x280] sm:$0xff] }
  0x9a   : > { %5314 = vmatmul.mubr.f32.gmra.mxu0 %v475_v6  ;;  %5538 = vmatmul.mubr.f32.gmra.mxu1 %v1324_v7  ;;  %v1353_v6 = vld [vmem:[%s6404_s21 + $0x280] sm:$0xff]  ;;  %v3618_v7 = vld [vmem:[%s8351_s6 + $0x50] sm:$0xff] }
  0x9b   : > { %5316 = vmatprep.mubr.f32.mxu0 %v476_v8  ;;  %5540 = vmatprep.mubr.f32.mxu1 %v1325_v9  ;;  %v505_v8 = vld [vmem:[%s6398_s16 + $0x288] sm:$0xff] }
  0x9c   : > { %v1354_v9 = vld [vmem:[%s6404_s21 + $0x288] sm:$0xff]  ;;  %5888 = vmatprep.subr.mxu1 %v3618_v7 }
  0x9d   : > { %5889 = vmatpush3.msra.mxu1 %v3618_v7  ;;  %v525_v7 = vld [vmem:[%s6398_s16 + $0x328] sm:$0xff] }
  0x9e   : > { %5317 = vmatmul.mubr.f32.gmra.mxu0 %v477_v11  ;;  %5541 = vmatmul.mubr.f32.gmra.mxu1 %v1326_v12  ;;  %v1355_v11 = vld [vmem:[%s6404_s21 + $0x290] sm:$0xff]  ;;  %v507_v12 = vld [vmem:[%s6398_s16 + $0x298] sm:$0xff] }
  0x9f   : > { %5319 = vmatprep.mubr.f32.mxu0 %v478_v13  ;;  %5543 = vmatprep.mubr.f32.mxu1 %v1327_v14  ;;  %v1356_v13 = vld [vmem:[%s6404_s21 + $0x298] sm:$0xff]  ;;  %v508_v14 = vld [vmem:[%s6398_s16 + $0x2a0] sm:$0xff] }
  0xa2   : > { %5320 = vmatmul.mubr.f32.gmra.mxu0 %v479_v15  ;;  %5544 = vmatmul.mubr.f32.gmra.mxu1 %v1328_v16  ;;  %v1357_v15 = vld [vmem:[%s6404_s21 + $0x2a0] sm:$0xff]  ;;  %v509_v16 = vld [vmem:[%s6398_s16 + $0x2a8] sm:$0xff] }
  0xa3   : > { %5322 = vmatprep.mubr.f32.mxu0 %v480_v17  ;;  %5546 = vmatprep.mubr.f32.mxu1 %v1329_v18  ;;  %v1358_v17 = vld [vmem:[%s6404_s21 + $0x2a8] sm:$0xff]  ;;  %v510_v18 = vld [vmem:[%s6398_s16 + $0x2b0] sm:$0xff] }
  0xa6   : > { %5323 = vmatmul.mubr.f32.gmra.mxu0 %v481_v20  ;;  %5547 = vmatmul.mubr.f32.gmra.mxu1 %v1330_v21  ;;  %v511_v20 = vld [vmem:[%s6398_s16 + $0x2b8] sm:$0xff] }
  0xa7   : > { %5325 = vmatprep.mubr.f32.mxu0 %v482_v22  ;;  %5549 = vmatprep.mubr.f32.mxu1 %v1331_v23  ;;  %v1360_v21 = vld [vmem:[%s6404_s21 + $0x2b8] sm:$0xff]  ;;  %v512_v22 = vld [vmem:[%s6398_s16 + $0x2c0] sm:$0xff] }
  0xa8   : > { %v1361_v23 = vld [vmem:[%s6404_s21 + $0x2c0] sm:$0xff] }
  0xaa   : > { %5326 = vmatmul.mubr.f32.gmra.mxu0 %v483_v24  ;;  %5550 = vmatmul.mubr.f32.gmra.mxu1 %v1332_v25  ;;  %v3617_v24 = vld [vmem:[%s8351_s6 + $0x48] sm:$0xff] }
  0xab   : > { %5328 = vmatprep.mubr.f32.mxu0 %v484_v26  ;;  %5552 = vmatprep.mubr.f32.mxu1 %v1333_v27  ;;  %v513_v25 = vld [vmem:[%s6398_s16 + $0x2c8] sm:$0xff]  ;;  %v514_v27 = vld [vmem:[%s6398_s16 + $0x2d0] sm:$0xff] }
  0xac   : > { %v1362_v26 = vld [vmem:[%s6404_s21 + $0x2c8] sm:$0xff]  ;;  %5890 = vmatprep.subr.mxu1 %v3617_v24 }
  0xad   : > { %5891 = vmatpush3.msra.mxu1 %v3617_v24 }
  0xae   : > { %5329 = vmatmul.mubr.f32.gmra.mxu0 %v485_v29  ;;  %5553 = vmatmul.mubr.f32.gmra.mxu1 %v1334_v30  ;;  %v2956_v29 = vlaneseq  ;;  %v515_v30 = vld [vmem:[%s6398_s16 + $0x2d8] sm:$0xff] }
  0xaf   : > { %5331 = vmatprep.mubr.f32.mxu0 %v486_v31  ;;  %5555 = vmatprep.mubr.f32.mxu1 %v1335_v32  ;;  %v1364_v31 = vld [vmem:[%s6404_s21 + $0x2d8] sm:$0xff]  ;;  %v516_v32 = vld [vmem:[%s6398_s16 + $0x2e0] sm:$0xff] }
  0xb2   : > { %5332 = vmatmul.mubr.f32.gmra.mxu0 %v487_v33  ;;  %5556 = vmatmul.mubr.f32.gmra.mxu1 %v1336_v34  ;;  %v1365_v33 = vld [vmem:[%s6404_s21 + $0x2e0] sm:$0xff]  ;;  %v6665_v34 = vshrl.u32 %v2956_v29, 7 }
  0xb3   : > { %5334 = vmatprep.mubr.f32.mxu0 %v488_v35  ;;  %5558 = vmatprep.mubr.f32.mxu1 %v1337_v36  ;;  %v517_v35 = vld [vmem:[%s6398_s16 + $0x2e8] sm:$0xff] }
  0xb4   : > { %v1366_v36 = vld [vmem:[%s6404_s21 + $0x2e8] sm:$0xff] }
  0xb6   : > { %5335 = vmatmul.mubr.f32.gmra.mxu0 %v489_v38  ;;  %5559 = vmatmul.mubr.f32.gmra.mxu1 %v1338_v39  ;;  %v1367_v38 = vld [vmem:[%s6404_s21 + $0x2f0] sm:$0xff]  ;;  %v2958_v39 = vsub.s32 0, %v6665_v34 }
  0xb7   : > { %5337 = vmatprep.mubr.f32.mxu0 %v490_v40  ;;  %5561 = vmatprep.mubr.f32.mxu1 %v1339_v41  ;;  %v3090_v40 = vsub.s32 1, %v6665_v34  ;;  %v519_v41 = vld [vmem:[%s6398_s16 + $0x2f8] sm:$0xff] }
  0xba   : > { %5338 = vmatmul.mubr.f32.gmra.mxu0 %v491_v42  ;;  %5562 = vmatmul.mubr.f32.gmra.mxu1 %v1340_v43  ;;  %v1368_v42 = vld [vmem:[%s6404_s21 + $0x2f8] sm:$0xff]  ;;  %v2955_v43 = vld [vmem:[%s6674_s26] sm:$0x7] }
  0xbb   : > { %5340 = vmatprep.mubr.f32.mxu0 %v492_v44  ;;  %5564 = vmatprep.mubr.f32.mxu1 %v1341_v45  ;;  %v520_v44 = vld [vmem:[%s6398_s16 + $0x300] sm:$0xff] }
  0xbc   : > { %v1369_v45 = vld [vmem:[%s6404_s21 + $0x300] sm:$0xff] }
  0xbe   : > { %5341 = vmatmul.mubr.f32.gmra.mxu0 %v493_v46  ;;  %5565 = vmatmul.mubr.f32.gmra.mxu1 %v1342_v47  ;;  %v3616_v46 = vld [vmem:[%s8351_s6 + $0x40] sm:$0xff]  ;;  %v6686_v47 = vrot.slane %v2955_v43, %v2958_v39 }
  0xbf   : > { %5343 = vmatprep.mubr.f32.mxu0 %v494_v48  ;;  %5567 = vmatprep.mubr.f32.mxu1 %v1343_v49  ;;  %v6688_v48 = vrot.slane %v2955_v43, %v3090_v40  ;;  %v521_v49 = vld [vmem:[%s6398_s16 + $0x308] sm:$0xff] }
  0xc0   : > { %5892 = vmatprep.subr.mxu1 %v3616_v46 }
  0xc1   : > { %5893 = vmatpush3.msra.mxu1 %v3616_v46 }
  0xc2   : > { %5344 = vmatmul.mubr.f32.gmra.mxu0 %v495_v50  ;;  %5568 = vmatmul.mubr.f32.gmra.mxu1 %v1344_v51  ;;  %v1370_v50 = vld [vmem:[%s6404_s21 + $0x308] sm:$0xff]  ;;  %v522_v51 = vld [vmem:[%s6398_s16 + $0x310] sm:$0xff] }
  0xc3   : > { %5346 = vmatprep.mubr.f32.mxu0 %v496_v52  ;;  %5570 = vmatprep.mubr.f32.mxu1 %v1345_v53  ;;  %v1371_v52 = vld [vmem:[%s6404_s21 + $0x310] sm:$0xff] }
  0xc6   : > { %5347 = vmatmul.mubr.f32.gmra.mxu0 %v497_v55  ;;  %5571 = vmatmul.mubr.f32.gmra.mxu1 %v1346_v56 }
  0xc7   : > { %5349 = vmatprep.mubr.f32.mxu0 %v498_v57  ;;  %5573 = vmatprep.mubr.f32.mxu1 %v1347_v58  ;;  %v523_v57 = vld [vmem:[%s6398_s16 + $0x318] sm:$0xff] }
  0xc8   : > { %v1372_v58 = vld [vmem:[%s6404_s21 + $0x318] sm:$0xff] }
  0xca   : > { %5350 = vmatmul.mubr.f32.gmra.mxu0 %v499_v59  ;;  %5574 = vmatmul.mubr.f32.gmra.mxu1 %v1348_v60 }
  0xcb   : > { %5352 = vmatprep.mubr.f32.mxu0 %v500_v61  ;;  %5576 = vmatprep.mubr.f32.mxu1 %v1349_v62  ;;  %v524_v61 = vld [vmem:[%s6398_s16 + $0x320] sm:$0xff] }
  0xcc   : > { %v1373_v62 = vld [vmem:[%s6404_s21 + $0x320] sm:$0xff] }
  0xce   : > { %5353 = vmatmul.mubr.f32.gmra.mxu0 %v501_v63  ;;  %5577 = vmatmul.mubr.f32.gmra.mxu1 %v1350_v0 }
  0xcf   : > { %5355 = vmatprep.mubr.f32.mxu0 %v502_v1  ;;  %5579 = vmatprep.mubr.f32.mxu1 %v1351_v2 }
  0xd2   : > { %5356 = vmatmul.mubr.f32.gmra.mxu0 %v503_v3  ;;  %5580 = vmatmul.mubr.f32.gmra.mxu1 %v1352_v4 }
  0xd3   : > { %5358 = vmatprep.mubr.f32.mxu0 %v504_v5  ;;  %5582 = vmatprep.mubr.f32.mxu1 %v1353_v6 }
  0xd6   : > { %5359 = vmatmul.mubr.f32.gmra.mxu0 %v505_v8  ;;  %5583 = vmatmul.mubr.f32.gmra.mxu1 %v1354_v9  ;;  %v1374_v8 = vld [vmem:[%s6404_s21 + $0x328] sm:$0xff] }
  0xd7   : > { %5361 = vmatprep.mubr.f32.mxu0 %v506_v10  ;;  %5585 = vmatprep.mubr.f32.mxu1 %v1355_v11  ;;  %v526_v11 = vld [vmem:[%s6398_s16 + $0x330] sm:$0xff] }
  0xda   : > { %5362 = vmatmul.mubr.f32.gmra.mxu0 %v507_v12  ;;  %5586 = vmatmul.mubr.f32.gmra.mxu1 %v1356_v13  ;;  %v1375_v12 = vld [vmem:[%s6404_s21 + $0x330] sm:$0xff] }
  0xdb   : > { %5364 = vmatprep.mubr.f32.mxu0 %v508_v14  ;;  %5588 = vmatprep.mubr.f32.mxu1 %v1357_v15 }
  0xde   : > { %5365 = vmatmul.mubr.f32.gmra.mxu0 %v509_v16  ;;  %5589 = vmatmul.mubr.f32.gmra.mxu1 %v1358_v17 }
  0xdf   : > { %5367 = vmatprep.mubr.f32.mxu0 %v510_v18  ;;  %5591 = vmatprep.mubr.f32.mxu1 %v1359_v19 }
  0xe2   : > { %5368 = vmatmul.mubr.f32.gmra.mxu0 %v511_v20  ;;  %5592 = vmatmul.mubr.f32.gmra.mxu1 %v1360_v21  ;;  %v527_v21 = vld [vmem:[%s6398_s16 + $0x338] sm:$0xff] }
  0xe3   : > { %5370 = vmatprep.mubr.f32.mxu0 %v512_v22  ;;  %5594 = vmatprep.mubr.f32.mxu1 %v1361_v23  ;;  %v1376_v22 = vld [vmem:[%s6404_s21 + $0x338] sm:$0xff] }
  0xe6   : > { %5371 = vmatmul.mubr.f32.gmra.mxu0 %v513_v25  ;;  %5595 = vmatmul.mubr.f32.gmra.mxu1 %v1362_v26  ;;  %v528_v25 = vld [vmem:[%s6398_s16 + $0x340] sm:$0xff] }
  0xe7   : > { %5373 = vmatprep.mubr.f32.mxu0 %v514_v27  ;;  %5597 = vmatprep.mubr.f32.mxu1 %v1363_v28  ;;  %v1377_v26 = vld [vmem:[%s6404_s21 + $0x340] sm:$0xff] }
  0xea   : > { %5374 = vmatmul.mubr.f32.gmra.mxu0 %v515_v30  ;;  %5598 = vmatmul.mubr.f32.gmra.mxu1 %v1364_v31  ;;  %v3615_v30 = vld [vmem:[%s8351_s6 + $0x38] sm:$0xff] }
  0xeb   : > { %5376 = vmatprep.mubr.f32.mxu0 %v516_v32  ;;  %5600 = vmatprep.mubr.f32.mxu1 %v1365_v33 }
  0xec   : > { %5894 = vmatprep.subr.mxu1 %v3615_v30 }
  0xed   : > { %5895 = vmatpush3.msra.mxu1 %v3615_v30 }
  0xee   : > { %5377 = vmatmul.mubr.f32.gmra.mxu0 %v517_v35  ;;  %5601 = vmatmul.mubr.f32.gmra.mxu1 %v1366_v36 }
  0xef   : > { %5379 = vmatprep.mubr.f32.mxu0 %v518_v37  ;;  %5603 = vmatprep.mubr.f32.mxu1 %v1367_v38  ;;  %v529_v37 = vld [vmem:[%s6398_s16 + $0x348] sm:$0xff] }
  0xf0   : > { %v1378_v38 = vld [vmem:[%s6404_s21 + $0x348] sm:$0xff] }
  0xf2   : > { %5380 = vmatmul.mubr.f32.gmra.mxu0 %v519_v41  ;;  %5604 = vmatmul.mubr.f32.gmra.mxu1 %v1368_v42  ;;  %v530_v41 = vld [vmem:[%s6398_s16 + $0x350] sm:$0xff] }
  0xf3   : > { %5382 = vmatprep.mubr.f32.mxu0 %v520_v44  ;;  %5606 = vmatprep.mubr.f32.mxu1 %v1369_v45  ;;  %v1379_v42 = vld [vmem:[%s6404_s21 + $0x350] sm:$0xff] }
  0xf6   : > { %v5240_v53 = vpop.f32.mrf.mxu0  ;;  %5383 = vmatmul.mubr.f32.gmra.mxu0 %v521_v49  ;;  %v5464_v54 = vpop.f32.mrf.mxu1  ;;  %5607 = vmatmul.mubr.f32.gmra.mxu1 %v1370_v50 }
  0xf7   : > { %v2961_v55 = vmul.f32 %v5240_v53, %v6686_v47  ;;  %v3093_v56 = vmul.f32 %v5464_v54, %v6688_v48  ;;  %5385 = vmatprep.mubr.f32.mxu0 %v522_v51  ;;  %5609 = vmatprep.mubr.f32.mxu1 %v1371_v52  ;;  %v531_v53 = vld [vmem:[%s6398_s16 + $0x358] sm:$0xff] }
  0xf8   : > { %v634_v59 = vpop.f32.mrf.mxu0  ;;  %v1467_v60 = vpop.f32.mrf.mxu1  ;;  %v1380_v54 = vld [vmem:[%s6404_s21 + $0x358] sm:$0xff] }
  0xf9   : > { %v6700_v63 = vadd.f32 %v3093_v56, %v2961_v55  ;;  %v2960_v0 = vmul.f32 %v6686_v47, %v634_v59  ;;  %v3092_v1 = vmul.f32 %v6688_v48, %v1467_v60 }
  0xfa   : > { %v5243_v2 = vpop.f32.mrf.mxu0  ;;  %5386 = vmatmul.mubr.f32.gmra.mxu0 %v523_v57  ;;  %v5467_v3 = vpop.f32.mrf.mxu1  ;;  %5610 = vmatmul.mubr.f32.gmra.mxu1 %v1372_v58  ;;  %v532_v57 = vld [vmem:[%s6398_s16 + $0x360] sm:$0xff] }
  0xfb   : > { %v6704_v4 = vadd.f32 %v3092_v1, %v2960_v0  ;;  %v2963_v5 = vmul.f32 %v5243_v2, %v6686_v47  ;;  %v3095_v6 = vmul.f32 %v5467_v3, %v6688_v48  ;;  %5388 = vmatprep.mubr.f32.mxu0 %v524_v61  ;;  %5612 = vmatprep.mubr.f32.mxu1 %v1373_v62  ;;  %v1381_v58 = vld [vmem:[%s6404_s21 + $0x360] sm:$0xff] }
  0xfc   : > { %v644_v9 = vpop.f32.mrf.mxu0  ;;  %v1477_v10 = vpop.f32.mrf.mxu1 }
  0xfd   : > { %v6712_v13 = vadd.f32 %v3095_v6, %v2963_v5  ;;  %v2962_v14 = vmul.f32 %v6686_v47, %v644_v9  ;;  %v3094_v15 = vmul.f32 %v6688_v48, %v1477_v10  ;;  %v533_v5 = vld [vmem:[%s6398_s16 + $0x368] sm:$0xff]  ;;  %v534_v9 = vld [vmem:[%s6398_s16 + $0x370] sm:$0xff] }
  0xfe   : > { %v5246_v16 = vpop.f32.mrf.mxu0  ;;  %5389 = vmatmul.mubr.f32.gmra.mxu0 %v525_v7  ;;  %v5470_v17 = vpop.f32.mrf.mxu1  ;;  %5613 = vmatmul.mubr.f32.gmra.mxu1 %v1374_v8  ;;  %v1382_v6 = vld [vmem:[%s6404_s21 + $0x368] sm:$0xff]  ;;  %v1383_v10 = vld [vmem:[%s6404_s21 + $0x370] sm:$0xff] }
  0xff   : > { %v6716_v18 = vadd.f32 %v3094_v15, %v2962_v14  ;;  %v2965_v19 = vmul.f32 %v5246_v16, %v6686_v47  ;;  %v3097_v20 = vmul.f32 %v5470_v17, %v6688_v48  ;;  %5391 = vmatprep.mubr.f32.mxu0 %v526_v11  ;;  %5615 = vmatprep.mubr.f32.mxu1 %v1375_v12 }
 0x100   : > { %v654_v23 = vpop.f32.mrf.mxu0  ;;  %v1487_v24 = vpop.f32.mrf.mxu1 }
 0x101   : > { %v6724_v27 = vadd.f32 %v3097_v20, %v2965_v19  ;;  %v2964_v28 = vmul.f32 %v6686_v47, %v654_v23  ;;  %v3096_v29 = vmul.f32 %v6688_v48, %v1487_v24 }
 0x102   : > { %v5249_v31 = vpop.f32.mrf.mxu0  ;;  %5392 = vmatmul.mubr.f32.gmra.mxu0 %v527_v21  ;;  %v5473_v32 = vpop.f32.mrf.mxu1  ;;  %5616 = vmatmul.mubr.f32.gmra.mxu1 %v1376_v22  ;;  %v535_v21 = vld [vmem:[%s6398_s16 + $0x378] sm:$0xff] }
 0x103   : > { %v6731_v33 = vadd.f32 %v3096_v29, %v2964_v28  ;;  %v2967_v35 = vmul.f32 %v5249_v31, %v6686_v47  ;;  %v3099_v36 = vmul.f32 %v5473_v32, %v6688_v48  ;;  %5394 = vmatprep.mubr.f32.mxu0 %v528_v25  ;;  %5618 = vmatprep.mubr.f32.mxu1 %v1377_v26  ;;  %v1384_v22 = vld [vmem:[%s6404_s21 + $0x378] sm:$0xff]  ;;  %v536_v25 = vld [vmem:[%s6398_s16 + $0x380] sm:$0xff]  ;;  %v3614_v31 = vld [vmem:[%s8351_s6 + $0x30] sm:$0xff] }
 0x104   : > { %v664_v39 = vpop.f32.mrf.mxu0  ;;  %v1497_v40 = vpop.f32.mrf.mxu1  ;;  %v1385_v26 = vld [vmem:[%s6404_s21 + $0x380] sm:$0xff]  ;;  %5896 = vmatprep.subr.mxu1 %v3614_v31 }
 0x105   : > { %v6739_v43 = vadd.f32 %v3099_v36, %v2967_v35  ;;  %v2966_v44 = vmul.f32 %v6686_v47, %v664_v39  ;;  %v3098_v45 = vmul.f32 %v6688_v48, %v1497_v40  ;;  %v537_v39 = vld [vmem:[%s6398_s16 + $0x388] sm:$0xff]  ;;  %5897 = vmatpush3.msra.mxu1 %v3614_v31  ;;  %v1395_v31 = vld [vmem:[%s6404_s21 + $0x3d0] sm:$0xff] }
 0x106   : > { %v5252_v46 = vpop.f32.mrf.mxu0  ;;  %5395 = vmatmul.mubr.f32.gmra.mxu0 %v529_v37  ;;  %v5476_v49 = vpop.f32.mrf.mxu1  ;;  %5619 = vmatmul.mubr.f32.gmra.mxu1 %v1378_v38  ;;  %v1386_v40 = vld [vmem:[%s6404_s21 + $0x388] sm:$0xff] }
 0x107   : > { %v6743_v50 = vadd.f32 %v3098_v45, %v2966_v44  ;;  %v2969_v51 = vmul.f32 %v5252_v46, %v6686_v47  ;;  %v3101_v52 = vmul.f32 %v5476_v49, %v6688_v48  ;;  %5397 = vmatprep.mubr.f32.mxu0 %v530_v41  ;;  %5621 = vmatprep.mubr.f32.mxu1 %v1379_v42  ;;  %v538_v44 = vld [vmem:[%s6398_s16 + $0x390] sm:$0xff] }
 0x108   : > { %v674_v55 = vpop.f32.mrf.mxu0  ;;  %v1507_v56 = vpop.f32.mrf.mxu1  ;;  %v1387_v45 = vld [vmem:[%s6404_s21 + $0x390] sm:$0xff] }
 0x109   : > { %v6751_v59 = vadd.f32 %v3101_v52, %v2969_v51  ;;  %v2968_v60 = vmul.f32 %v6686_v47, %v674_v55  ;;  %v3100_v61 = vmul.f32 %v6688_v48, %v1507_v56  ;;  %v539_v55 = vld [vmem:[%s6398_s16 + $0x398] sm:$0xff] }
 0x10a   : > { %v5255_v62 = vpop.f32.mrf.mxu0  ;;  %5398 = vmatmul.mubr.f32.gmra.mxu0 %v531_v53  ;;  %v5479_v0 = vpop.f32.mrf.mxu1  ;;  %5622 = vmatmul.mubr.f32.gmra.mxu1 %v1380_v54  ;;  %v1388_v56 = vld [vmem:[%s6404_s21 + $0x398] sm:$0xff] }
 0x10b   : > { %v6755_v1 = vadd.f32 %v3100_v61, %v2968_v60  ;;  %v2971_v2 = vmul.f32 %v5255_v62, %v6686_v47  ;;  %v3103_v3 = vmul.f32 %v5479_v0, %v6688_v48  ;;  %5400 = vmatprep.mubr.f32.mxu0 %v532_v57  ;;  %5624 = vmatprep.mubr.f32.mxu1 %v1381_v58  ;;  %v540_v60 = vld [vmem:[%s6398_s16 + $0x3a0] sm:$0xff] }
 0x10c   : > { %v684_v7 = vpop.f32.mrf.mxu0  ;;  %v1517_v8 = vpop.f32.mrf.mxu1  ;;  %v1389_v61 = vld [vmem:[%s6404_s21 + $0x3a0] sm:$0xff] }
 0x10d   : > { %v6763_v11 = vadd.f32 %v3103_v3, %v2971_v2  ;;  %v2970_v12 = vmul.f32 %v6686_v47, %v684_v7  ;;  %v3102_v14 = vmul.f32 %v6688_v48, %v1517_v8  ;;  %v541_v2 = vld [vmem:[%s6398_s16 + $0x3a8] sm:$0xff]  ;;  %v542_v7 = vld [vmem:[%s6398_s16 + $0x3b0] sm:$0xff] }
 0x10e   : > { %v5258_v15 = vpop.f32.mrf.mxu0  ;;  %5401 = vmatmul.mubr.f32.gmra.mxu0 %v533_v5  ;;  %v5482_v16 = vpop.f32.mrf.mxu1  ;;  %5625 = vmatmul.mubr.f32.gmra.mxu1 %v1382_v6  ;;  %v1390_v3 = vld [vmem:[%s6404_s21 + $0x3a8] sm:$0xff]  ;;  %v1391_v8 = vld [vmem:[%s6404_s21 + $0x3b0] sm:$0xff] }
 0x10f   : > { %v6767_v17 = vadd.f32 %v3102_v14, %v2970_v12  ;;  %v2973_v19 = vmul.f32 %v5258_v15, %v6686_v47  ;;  %v3105_v20 = vmul.f32 %v5482_v16, %v6688_v48  ;;  %5403 = vmatprep.mubr.f32.mxu0 %v534_v9  ;;  %5627 = vmatprep.mubr.f32.mxu1 %v1383_v10  ;;  %v543_v12 = vld [vmem:[%s6398_s16 + $0x3b8] sm:$0xff] }
 0x110   : > { %v694_v23 = vpop.f32.mrf.mxu0  ;;  %v1527_v24 = vpop.f32.mrf.mxu1  ;;  %v1392_v14 = vld [vmem:[%s6404_s21 + $0x3b8] sm:$0xff] }
 0x111   : > { %v6775_v28 = vadd.f32 %v3105_v20, %v2973_v19  ;;  %v2972_v29 = vmul.f32 %v6686_v47, %v694_v23  ;;  %v3104_v30 = vmul.f32 %v6688_v48, %v1527_v24  ;;  %v544_v19 = vld [vmem:[%s6398_s16 + $0x3c0] sm:$0xff]  ;;  %v545_v24 = vld [vmem:[%s6398_s16 + $0x3c8] sm:$0xff] }
 0x112   : > { %v5261_v32 = vpop.f32.mrf.mxu0  ;;  %5404 = vmatmul.mubr.f32.gmra.mxu0 %v535_v21  ;;  %v5485_v35 = vpop.f32.mrf.mxu1  ;;  %5628 = vmatmul.mubr.f32.gmra.mxu1 %v1384_v22  ;;  %v1393_v20 = vld [vmem:[%s6404_s21 + $0x3c0] sm:$0xff]  ;;  %v3613_v21 = vld [vmem:[%s8351_s6 + $0x28] sm:$0xff] }
 0x113   : > { %v6782_v36 = vadd.f32 %v3104_v30, %v2972_v29  ;;  %v2975_v37 = vmul.f32 %v5261_v32, %v6686_v47  ;;  %v3107_v38 = vmul.f32 %v5485_v35, %v6688_v48  ;;  %5406 = vmatprep.mubr.f32.mxu0 %v536_v25  ;;  %5630 = vmatprep.mubr.f32.mxu1 %v1385_v26  ;;  %v1394_v25 = vld [vmem:[%s6404_s21 + $0x3c8] sm:$0xff]  ;;  %v546_v30 = vld [vmem:[%s6398_s16 + $0x3d0] sm:$0xff] }
 0x114   : > { %v704_v41 = vpop.f32.mrf.mxu0  ;;  %v1537_v42 = vpop.f32.mrf.mxu1  ;;  %5898 = vmatprep.subr.mxu1 %v3613_v21 }
 0x115   : > { %v6790_v46 = vadd.f32 %v3107_v38, %v2975_v37  ;;  %v2974_v49 = vmul.f32 %v6686_v47, %v704_v41  ;;  %v3106_v51 = vmul.f32 %v6688_v48, %v1537_v42  ;;  %5899 = vmatpush3.msra.mxu1 %v3613_v21  ;;  %v547_v37 = vld [vmem:[%s6398_s16 + $0x3d8] sm:$0xff]  ;;  %v548_v41 = vld [vmem:[%s6398_s16 + $0x3e0] sm:$0xff]  ;;  %v2107_v21 = vld [vmem:[%s6875_s12 + $0x8] sm:$0xff] }
 0x116   : > { %v6794_v52 = vpop.f32.mrf.mxu0  ;;  %5407 = vmatmul.mubr.f32.gmra.mxu0 %v537_v39  ;;  %v6796_v53 = vpop.f32.mrf.mxu1  ;;  %5631 = vmatmul.mubr.f32.gmra.mxu1 %v1386_v40  ;;  %v1396_v38 = vld [vmem:[%s6404_s21 + $0x3d8] sm:$0xff]  ;;  %v1397_v42 = vld [vmem:[%s6404_s21 + $0x3e0] sm:$0xff] }
 0x117   : > { %v6798_v54 = vadd.f32 %v3106_v51, %v2974_v49  ;;  %5409 = vmatprep.mubr.f32.mxu0 %v538_v44  ;;  %5633 = vmatprep.mubr.f32.mxu1 %v1387_v45  ;;  %v549_v49 = vld [vmem:[%s6398_s16 + $0x3e8] sm:$0xff] }
 0x118   : > { %v6802_v57 = vpop.f32.mrf.mxu0  ;;  %v6804_v58 = vpop.f32.mrf.mxu1  ;;  %v1398_v51 = vld [vmem:[%s6404_s21 + $0x3e8] sm:$0xff] }
 0x11a   : > { %v6808_v62 = vpop.f32.mrf.mxu0  ;;  %5410 = vmatmul.mubr.f32.gmra.mxu0 %v539_v55  ;;  %v6810_v0 = vpop.f32.mrf.mxu1  ;;  %5634 = vmatmul.mubr.f32.gmra.mxu1 %v1388_v56 }
 0x11b   : > { %5412 = vmatprep.mubr.f32.mxu0 %v540_v60  ;;  %5636 = vmatprep.mubr.f32.mxu1 %v1389_v61  ;;  %v550_v60 = vld [vmem:[%s6398_s16 + $0x3f0] sm:$0xff] }
 0x11c   : > { %v6814_v5 = vpop.f32.mrf.mxu0  ;;  %v6816_v6 = vpop.f32.mrf.mxu1  ;;  %v1399_v61 = vld [vmem:[%s6404_s21 + $0x3f0] sm:$0xff] }
 0x11e   : > { %v6820_v9 = vpop.f32.mrf.mxu0  ;;  %5413 = vmatmul.mubr.f32.gmra.mxu0 %v541_v2  ;;  %v6822_v10 = vpop.f32.mrf.mxu1  ;;  %5637 = vmatmul.mubr.f32.gmra.mxu1 %v1390_v3  ;;  %v551_v3 = vld [vmem:[%s6398_s16 + $0x3f8] sm:$0xff] }
 0x11f   : > { %5415 = vmatprep.mubr.f32.mxu0 %v542_v7  ;;  %5639 = vmatprep.mubr.f32.mxu1 %v1391_v8  ;;  %v1400_v7 = vld [vmem:[%s6404_s21 + $0x3f8] sm:$0xff]  ;;  %s6167_s21 = scalar_lea.vmem %s6166_s22, 32768 }
 0x120   : > { %v6826_v15 = vpop.f32.mrf.mxu0  ;;  %v6828_v16 = vpop.f32.mrf.mxu1 }
 0x122   : > { %v6835_v22 = vpop.f32.mrf.mxu0  ;;  %5416 = vmatmul.mubr.f32.gmra.mxu0 %v543_v12  ;;  %v6837_v23 = vpop.f32.mrf.mxu1  ;;  %5640 = vmatmul.mubr.f32.gmra.mxu1 %v1392_v14  ;;  %v2106_v14 = vld [vmem:[%s6875_s12] sm:$0xff] }
 0x123   : > { %5418 = vmatprep.mubr.f32.mxu0 %v544_v19  ;;  %5642 = vmatprep.mubr.f32.mxu1 %v1393_v20  ;;  %v3612_v19 = vld [vmem:[%s8351_s6 + $0x20] sm:$0xff] }
 0x124   : > { %v6841_v26 = vpop.f32.mrf.mxu0  ;;  %v6843_v29 = vpop.f32.mrf.mxu1  ;;  %5900 = vmatprep.subr.mxu1 %v3612_v19 }
 0x125   : > { %5901 = vmatpush3.msra.mxu1 %v3612_v19 }
 0x126   : > { %v6847_v32 = vpop.f32.mrf.mxu0  ;;  %5419 = vmatmul.mubr.f32.gmra.mxu0 %v545_v24  ;;  %v6849_v35 = vpop.f32.mrf.mxu1  ;;  %5643 = vmatmul.mubr.f32.gmra.mxu1 %v1394_v25 }
 0x127   : > { %5421 = vmatprep.mubr.f32.mxu0 %v546_v30  ;;  %5645 = vmatprep.mubr.f32.mxu1 %v1395_v31  ;;  %v2108_v30 = vld [vmem:[%s6875_s12 + $0x10] sm:$0xff] }
 0x128   : > { %v6853_v39 = vpop.f32.mrf.mxu0  ;;  %v6855_v40 = vpop.f32.mrf.mxu1 }
 0x12a   : > { %v6859_v44 = vpop.f32.mrf.mxu0  ;;  %5422 = vmatmul.mubr.f32.gmra.mxu0 %v547_v37  ;;  %v6861_v45 = vpop.f32.mrf.mxu1  ;;  %5646 = vmatmul.mubr.f32.gmra.mxu1 %v1396_v38  ;;  %v2109_v37 = vld [vmem:[%s6875_s12 + $0x18] sm:$0xff] }
 0x12b   : > { %5424 = vmatprep.mubr.f32.mxu0 %v548_v41  ;;  %5648 = vmatprep.mubr.f32.mxu1 %v1397_v42  ;;  %v2110_v42 = vld [vmem:[%s6875_s12 + $0x20] sm:$0xff] }
 0x12c   : > { %v6865_v55 = vpop.f32.mrf.mxu0  ;;  %v6867_v56 = vpop.f32.mrf.mxu1 }
 0x12e   : > { %v6877_v2 = vpop.f32.mrf.mxu0  ;;  %5425 = vmatmul.mubr.f32.gmra.mxu0 %v549_v49  ;;  %5649 = vmatmul.mubr.f32.gmra.mxu1 %v1398_v51  ;;  %v6881_v8 = vpop.f32.mrf.mxu1  ;;  %v2111_v51 = vld [vmem:[%s6875_s12 + $0x28] sm:$0xff] }
 0x12f   : > { %5427 = vmatprep.mubr.f32.mxu0 %v550_v60  ;;  %5651 = vmatprep.mubr.f32.mxu1 %v1399_v61 }
 0x130   : > { %v6883_v12 = vpop.f32.mrf.mxu0  ;;  %v6892_v24 = vpop.f32.mrf.mxu1 }
 0x132   : > { %v6889_v20 = vpop.f32.mrf.mxu0  ;;  %5428 = vmatmul.mubr.f32.gmra.mxu0 %v551_v3  ;;  %5652 = vmatmul.mubr.f32.gmra.mxu1 %v1400_v7  ;;  %v6900_v38 = vpop.f32.mrf.mxu1  ;;  %v2112_v3 = vld [vmem:[%s6875_s12 + $0x30] sm:$0xff] }
 0x133   : > { %5686 = vmatprep.mubr.f32.mxu0 %v2106_v14  ;;  %8357 = vst [vmem:[#allocation6_spill] sm:$0xff] %v6900_v38  ;;  %v2113_v14 = vld [vmem:[%s6875_s12 + $0x38] sm:$0xff] }
 0x134   : > { %v6894_v25 = vpop.f32.mrf.mxu0  ;;  %v6908_v60 = vpop.f32.mrf.mxu1 }
 0x136   : > { %v6897_v31 = vpop.f32.mrf.mxu0  ;;  %5687 = vmatmul.mubr.f32.vlgmr.msra.gmra.mxu0 %v2107_v21  ;;  %v6916_v19 = vpop.f32.mrf.mxu1 }
 0x137   : > { %8356 = vst [vmem:[#allocation5_spill] sm:$0xff] %v6897_v31  ;;  %5689 = vmatprep.mubr.f32.mxu0 %v2108_v30  ;;  %8362 = vst [vmem:[#allocation11_spill] sm:$0xff] %v6916_v19  ;;  %v2114_v30 = vld [vmem:[%s6875_s12 + $0x40] sm:$0xff] }
 0x138   : > { %v6902_v41 = vpop.f32.mrf.mxu0 }
 0x139   : > { %8358 = vst [vmem:[#allocation7_spill] sm:$0xff] %v6902_v41 }
 0x13a   : > { %v6905_v49 = vpop.f32.mrf.mxu0  ;;  %5690 = vmatmul.mubr.f32.gmra.mxu0 %v2109_v37  ;;  %v3611_v37 = vld [vmem:[%s8351_s6 + $0x18] sm:$0xff] }
 0x13b   : > { %8359 = vst [vmem:[#allocation8_spill] sm:$0xff] %v6905_v49  ;;  %5692 = vmatprep.mubr.f32.mxu0 %v2110_v42  ;;  %5902 = vmatprep.subr.mxu1 %v3611_v37 }
 0x13c   : > { %v6910_v61 = vpop.f32.mrf.mxu0  ;;  %5903 = vmatpush3.msra.mxu1 %v3611_v37  ;;  %v2119_v37 = vld [vmem:[%s6875_s12 + $0x68] sm:$0xff] }
 0x13d   : > { %8360 = vst [vmem:[#allocation9_spill] sm:$0xff] %v6910_v61  ;;  %v2117_v61 = vld [vmem:[%s6875_s12 + $0x58] sm:$0xff] }
 0x13e   : > { %v6913_v7 = vpop.f32.mrf.mxu0  ;;  %5693 = vmatmul.mubr.f32.gmra.mxu0 %v2111_v51  ;;  %v2115_v51 = vld [vmem:[%s6875_s12 + $0x48] sm:$0xff] }
 0x13f   : > { %8361 = vst [vmem:[#allocation10_spill] sm:$0xff] %v6913_v7  ;;  %5695 = vmatprep.mubr.f32.mxu0 %v2112_v3  ;;  %v6927_v3 = vpop.f32.mrf.mxu1 }
 0x140   : > { %v6918_v21 = vpop.f32.mrf.mxu0  ;;  %8365 = vst [vmem:[#allocation14_spill] sm:$0xff] %v6927_v3 }
 0x141   : > { %8363 = vst [vmem:[#allocation12_spill] sm:$0xff] %v6918_v21  ;;  %v2116_v21 = vld [vmem:[%s6875_s12 + $0x50] sm:$0xff]  ;;  %v6935_v19 = vpop.f32.mrf.mxu1 }
 0x142   : > { %v6924_v42 = vpop.f32.mrf.mxu0  ;;  %5696 = vmatmul.mubr.f32.gmra.mxu0 %v2113_v14  ;;  %8368 = vst [vmem:[#allocation17_spill] sm:$0xff] %v6935_v19 }
 0x143   : > { %8364 = vst [vmem:[#allocation13_spill] sm:$0xff] %v6924_v42  ;;  %5698 = vmatprep.mubr.f32.mxu0 %v2114_v30  ;;  %v2118_v30 = vld [vmem:[%s6875_s12 + $0x60] sm:$0xff] }
 0x144   : > { %v6929_v7 = vpop.f32.mrf.mxu0 }
 0x145   : > { %8366 = vst [vmem:[#allocation15_spill] sm:$0xff] %v6929_v7  ;;  %v6943_v7 = vpop.f32.mrf.mxu1 }
 0x146   : > { %v6932_v49 = vpop.f32.mrf.mxu0  ;;  %5699 = vmatmul.mubr.f32.gmra.mxu0 %v2115_v51  ;;  %8371 = vst [vmem:[#allocation20_spill] sm:$0xff] %v6943_v7  ;;  %v2120_v51 = vld [vmem:[%s6875_s12 + $0x70] sm:$0xff] }
 0x147   : > { %8367 = vst [vmem:[#allocation16_spill] sm:$0xff] %v6932_v49  ;;  %5701 = vmatprep.mubr.f32.mxu0 %v2116_v21  ;;  %v2121_v21 = vld [vmem:[%s6875_s12 + $0x78] sm:$0xff]  ;;  %v6951_v19 = vpop.f32.mrf.mxu1 }
 0x148   : > { %v6937_v14 = vpop.f32.mrf.mxu0  ;;  %8374 = vst [vmem:[#allocation23_spill] sm:$0xff] %v6951_v19  ;;  %v2125_v19 = vld [vmem:[%s6875_s12 + $0x98] sm:$0xff] }
 0x149   : > { %8369 = vst [vmem:[#allocation18_spill] sm:$0xff] %v6937_v14 }
 0x14a   : > { %v6940_v42 = vpop.f32.mrf.mxu0  ;;  %5702 = vmatmul.mubr.f32.gmra.mxu0 %v2117_v61  ;;  %v2122_v61 = vld [vmem:[%s6875_s12 + $0x80] sm:$0xff] }
 0x14b   : > { %8370 = vst [vmem:[#allocation19_spill] sm:$0xff] %v6940_v42  ;;  %5704 = vmatprep.mubr.f32.mxu0 %v2118_v30  ;;  %v3610_v30 = vld [vmem:[%s8351_s6 + $0x10] sm:$0xff] }
 0x14c   : > { %v6945_v31 = vpop.f32.mrf.mxu0  ;;  %5904 = vmatprep.subr.mxu1 %v3610_v30 }
 0x14d   : > { %8372 = vst [vmem:[#allocation21_spill] sm:$0xff] %v6945_v31  ;;  %5905 = vmatpush3.msra.mxu1 %v3610_v30  ;;  %v2127_v30 = vld [vmem:[%s6875_s12 + $0xa8] sm:$0xff] }
 0x14e   : > { %v6948_v49 = vpop.f32.mrf.mxu0  ;;  %5705 = vmatmul.mubr.f32.gmra.mxu0 %v2119_v37  ;;  %v2123_v37 = vld [vmem:[%s6875_s12 + $0x88] sm:$0xff] }
 0x14f   : > { %8373 = vst [vmem:[#allocation22_spill] sm:$0xff] %v6948_v49  ;;  %5707 = vmatprep.mubr.f32.mxu0 %v2120_v51  ;;  %v6962_v51 = vpop.f32.mrf.mxu1 }
 0x150   : > { %v6953_v14 = vpop.f32.mrf.mxu0  ;;  %8377 = vst [vmem:[#allocation26_spill] sm:$0xff] %v6962_v51 }
 0x151   : > { %8375 = vst [vmem:[#allocation24_spill] sm:$0xff] %v6953_v14  ;;  %v2124_v14 = vld [vmem:[%s6875_s12 + $0x90] sm:$0xff]  ;;  %v6970_v7 = vpop.f32.mrf.mxu1 }
 0x152   : > { %v6959_v42 = vpop.f32.mrf.mxu0  ;;  %5708 = vmatmul.mubr.f32.gmra.mxu0 %v2121_v21  ;;  %8380 = vst [vmem:[#allocation29_spill] sm:$0xff] %v6970_v7 }
 0x153   : > { %8376 = vst [vmem:[#allocation25_spill] sm:$0xff] %v6959_v42  ;;  %5710 = vmatprep.mubr.f32.mxu0 %v2122_v61  ;;  %v2126_v61 = vld [vmem:[%s6875_s12 + $0xa0] sm:$0xff] }
 0x154   : > { %v6964_v49 = vpop.f32.mrf.mxu0 }
 0x155   : > { %8378 = vst [vmem:[#allocation27_spill] sm:$0xff] %v6964_v49  ;;  %v6978_v49 = vpop.f32.mrf.mxu1 }
 0x156   : > { %v6967_v31 = vpop.f32.mrf.mxu0  ;;  %5711 = vmatmul.mubr.f32.gmra.mxu0 %v2123_v37  ;;  %8383 = vst [vmem:[#allocation32_spill] sm:$0xff] %v6978_v49  ;;  %v2128_v37 = vld [vmem:[%s6875_s12 + $0xb0] sm:$0xff] }
 0x157   : > { %8379 = vst [vmem:[#allocation28_spill] sm:$0xff] %v6967_v31  ;;  %5713 = vmatprep.mubr.f32.mxu0 %v2124_v14  ;;  %v2129_v14 = vld [vmem:[%s6875_s12 + $0xb8] sm:$0xff]  ;;  %v6986_v7 = vpop.f32.mrf.mxu1 }
 0x158   : > { %v6972_v21 = vpop.f32.mrf.mxu0  ;;  %8386 = vst [vmem:[#allocation35_spill] sm:$0xff] %v6986_v7  ;;  %v2133_v7 = vld [vmem:[%s6875_s12 + $0xd8] sm:$0xff] }
 0x159   : > { %8381 = vst [vmem:[#allocation30_spill] sm:$0xff] %v6972_v21 }
 0x15a   : > { %v6975_v42 = vpop.f32.mrf.mxu0  ;;  %5714 = vmatmul.mubr.f32.gmra.mxu0 %v2125_v19  ;;  %v2130_v19 = vld [vmem:[%s6875_s12 + $0xc0] sm:$0xff] }
 0x15b   : > { %8382 = vst [vmem:[#allocation31_spill] sm:$0xff] %v6975_v42  ;;  %5716 = vmatprep.mubr.f32.mxu0 %v2126_v61  ;;  %v3609_v61 = vld [vmem:[%s8351_s6 + $0x8] sm:$0xff] }
 0x15c   : > { %v6980_v51 = vpop.f32.mrf.mxu0  ;;  %5906 = vmatprep.subr.mxu1 %v3609_v61 }
 0x15d   : > { %8384 = vst [vmem:[#allocation33_spill] sm:$0xff] %v6980_v51  ;;  %5907 = vmatpush3.msra.mxu1 %v3609_v61  ;;  %v2135_v61 = vld [vmem:[%s6875_s12 + $0xe8] sm:$0xff] }
 0x15e   : > { %v6983_v31 = vpop.f32.mrf.mxu0  ;;  %5717 = vmatmul.mubr.f32.gmra.mxu0 %v2127_v30  ;;  %v2131_v30 = vld [vmem:[%s6875_s12 + $0xc8] sm:$0xff] }
 0x15f   : > { %8385 = vst [vmem:[#allocation34_spill] sm:$0xff] %v6983_v31  ;;  %5719 = vmatprep.mubr.f32.mxu0 %v2128_v37  ;;  %v6997_v37 = vpop.f32.mrf.mxu1 }
 0x160   : > { %v6988_v21 = vpop.f32.mrf.mxu0  ;;  %8389 = vst [vmem:[#allocation38_spill] sm:$0xff] %v6997_v37 }
 0x161   : > { %8387 = vst [vmem:[#allocation36_spill] sm:$0xff] %v6988_v21  ;;  %v2132_v21 = vld [vmem:[%s6875_s12 + $0xd0] sm:$0xff]  ;;  %v7005_v49 = vpop.f32.mrf.mxu1 }
 0x162   : > { %v6994_v42 = vpop.f32.mrf.mxu0  ;;  %5720 = vmatmul.mubr.f32.gmra.mxu0 %v2129_v14  ;;  %8392 = vst [vmem:[#allocation41_spill] sm:$0xff] %v7005_v49 }
 0x163   : > { %8388 = vst [vmem:[#allocation37_spill] sm:$0xff] %v6994_v42  ;;  %5722 = vmatprep.mubr.f32.mxu0 %v2130_v19  ;;  %v2134_v19 = vld [vmem:[%s6875_s12 + $0xe0] sm:$0xff] }
 0x164   : > { %v6999_v31 = vpop.f32.mrf.mxu0 }
 0x165   : > { %8390 = vst [vmem:[#allocation39_spill] sm:$0xff] %v6999_v31  ;;  %v7013_v31 = vpop.f32.mrf.mxu1 }
 0x166   : > { %v7002_v51 = vpop.f32.mrf.mxu0  ;;  %5723 = vmatmul.mubr.f32.gmra.mxu0 %v2131_v30  ;;  %8395 = vst [vmem:[#allocation44_spill] sm:$0xff] %v7013_v31  ;;  %v2136_v30 = vld [vmem:[%s6875_s12 + $0xf0] sm:$0xff] }
 0x167   : > { %8391 = vst [vmem:[#allocation40_spill] sm:$0xff] %v7002_v51  ;;  %5725 = vmatprep.mubr.f32.mxu0 %v2132_v21  ;;  %v2137_v21 = vld [vmem:[%s6875_s12 + $0xf8] sm:$0xff]  ;;  %v7021_v49 = vpop.f32.mrf.mxu1 }
 0x168   : > { %v7007_v14 = vpop.f32.mrf.mxu0  ;;  %8398 = vst [vmem:[#allocation47_spill] sm:$0xff] %v7021_v49  ;;  %v2141_v49 = vld [vmem:[%s6875_s12 + $0x118] sm:$0xff] }
 0x169   : > { %8393 = vst [vmem:[#allocation42_spill] sm:$0xff] %v7007_v14 }
 0x16a   : > { %v7010_v42 = vpop.f32.mrf.mxu0  ;;  %5726 = vmatmul.mubr.f32.gmra.mxu0 %v2133_v7  ;;  %v2138_v7 = vld [vmem:[%s6875_s12 + $0x100] sm:$0xff] }
 0x16b   : > { %8394 = vst [vmem:[#allocation43_spill] sm:$0xff] %v7010_v42  ;;  %5728 = vmatprep.mubr.f32.mxu0 %v2134_v19  ;;  %v3608_v19 = vld [vmem:[%s8351_s6] sm:$0xff] }
 0x16c   : > { %v7015_v37 = vpop.f32.mrf.mxu0  ;;  %5908 = vmatprep.subr.mxu1 %v3608_v19 }
 0x16d   : > { %8396 = vst [vmem:[#allocation45_spill] sm:$0xff] %v7015_v37  ;;  %5909 = vmatpush3.msra.mxu1 %v3608_v19  ;;  %v2143_v19 = vld [vmem:[%s6875_s12 + $0x128] sm:$0xff] }
 0x16e   : > { %v7018_v51 = vpop.f32.mrf.mxu0  ;;  %5729 = vmatmul.mubr.f32.gmra.mxu0 %v2135_v61  ;;  %v2139_v61 = vld [vmem:[%s6875_s12 + $0x108] sm:$0xff] }
 0x16f   : > { %8397 = vst [vmem:[#allocation46_spill] sm:$0xff] %v7018_v51  ;;  %5731 = vmatprep.mubr.f32.mxu0 %v2136_v30  ;;  %v7032_v30 = vpop.f32.mrf.mxu1 }
 0x170   : > { %v7023_v14 = vpop.f32.mrf.mxu0  ;;  %8401 = vst [vmem:[#allocation50_spill] sm:$0xff] %v7032_v30 }
 0x171   : > { %8399 = vst [vmem:[#allocation48_spill] sm:$0xff] %v7023_v14  ;;  %v2140_v14 = vld [vmem:[%s6875_s12 + $0x110] sm:$0xff]  ;;  %v7040_v31 = vpop.f32.mrf.mxu1 }
 0x172   : > { %v7029_v42 = vpop.f32.mrf.mxu0  ;;  %5732 = vmatmul.mubr.f32.gmra.mxu0 %v2137_v21  ;;  %8404 = vst [vmem:[#allocation53_spill] sm:$0xff] %v7040_v31  ;;  %v2145_v31 = vld [vmem:[%s6875_s12 + $0x138] sm:$0xff] }
 0x173   : > { %8400 = vst [vmem:[#allocation49_spill] sm:$0xff] %v7029_v42  ;;  %5734 = vmatprep.mubr.f32.mxu0 %v2138_v7  ;;  %v2142_v7 = vld [vmem:[%s6875_s12 + $0x120] sm:$0xff] }
 0x174   : > { %v7034_v51 = vpop.f32.mrf.mxu0 }
 0x175   : > { %8402 = vst [vmem:[#allocation51_spill] sm:$0xff] %v7034_v51  ;;  %v7048_v51 = vpop.f32.mrf.mxu1 }
 0x176   : > { %v7037_v37 = vpop.f32.mrf.mxu0  ;;  %5735 = vmatmul.mubr.f32.gmra.mxu0 %v2139_v61  ;;  %8407 = vst [vmem:[#allocation56_spill] sm:$0xff] %v7048_v51  ;;  %v2144_v61 = vld [vmem:[%s6875_s12 + $0x130] sm:$0xff]  ;;  %v2147_v51 = vld [vmem:[%s6875_s12 + $0x148] sm:$0xff] }
 0x177   : > { %8403 = vst [vmem:[#allocation52_spill] sm:$0xff] %v7037_v37  ;;  %5737 = vmatprep.mubr.f32.mxu0 %v2140_v14 }
 0x178   : > { %v7042_v21 = vpop.f32.mrf.mxu0 }
 0x179   : > { %8405 = vst [vmem:[#allocation54_spill] sm:$0xff] %v7042_v21  ;;  %v7056_v21 = vpop.f32.mrf.mxu1 }
 0x17a   : > { %v7045_v42 = vpop.f32.mrf.mxu0  ;;  %5738 = vmatmul.mubr.f32.gmra.mxu0 %v2141_v49  ;;  %8410 = vst [vmem:[#allocation59_spill] sm:$0xff] %v7056_v21  ;;  %v2146_v49 = vld [vmem:[%s6875_s12 + $0x140] sm:$0xff]  ;;  %v2149_v21 = vld [vmem:[%s6875_s12 + $0x158] sm:$0xff] }
 0x17b   : > { %8406 = vst [vmem:[#allocation55_spill] sm:$0xff] %v7045_v42  ;;  %5740 = vmatprep.mubr.f32.mxu0 %v2142_v7 }
 0x17c   : > { %v7050_v37 = vpop.f32.mrf.mxu0 }
 0x17d   : > { %8408 = vst [vmem:[#allocation57_spill] sm:$0xff] %v7050_v37  ;;  %v7064_v37 = vpop.f32.mrf.mxu1 }
 0x17e   : > { %v7053_v14 = vpop.f32.mrf.mxu0  ;;  %5741 = vmatmul.mubr.f32.gmra.mxu0 %v2143_v19  ;;  %8413 = vst [vmem:[#allocation62_spill] sm:$0xff] %v7064_v37  ;;  %v2148_v19 = vld [vmem:[%s6875_s12 + $0x150] sm:$0xff]  ;;  %v2151_v37 = vld [vmem:[%s6875_s12 + $0x168] sm:$0xff] }
 0x17f   : > { %8409 = vst [vmem:[#allocation58_spill] sm:$0xff] %v7053_v14  ;;  %5743 = vmatprep.mubr.f32.mxu0 %v2144_v61 }
 0x180   : > { %v7058_v42 = vpop.f32.mrf.mxu0 }
 0x181   : > { %8411 = vst [vmem:[#allocation60_spill] sm:$0xff] %v7058_v42  ;;  %v7072_v42 = vpop.f32.mrf.mxu1 }
 0x182   : > { %v7061_v7 = vpop.f32.mrf.mxu0  ;;  %5744 = vmatmul.mubr.f32.gmra.mxu0 %v2145_v31  ;;  %8416 = vst [vmem:[#allocation65_spill] sm:$0xff] %v7072_v42  ;;  %v2150_v31 = vld [vmem:[%s6875_s12 + $0x160] sm:$0xff]  ;;  %v2153_v42 = vld [vmem:[%s6875_s12 + $0x178] sm:$0xff] }
 0x183   : > { %8412 = vst [vmem:[#allocation61_spill] sm:$0xff] %v7061_v7  ;;  %5746 = vmatprep.mubr.f32.mxu0 %v2146_v49 }
 0x184   : > { %v7066_v14 = vpop.f32.mrf.mxu0 }
 0x185   : > { %8414 = vst [vmem:[#allocation63_spill] sm:$0xff] %v7066_v14  ;;  %v7080_v14 = vpop.f32.mrf.mxu1 }
 0x186   : > { %v7069_v61 = vpop.f32.mrf.mxu0  ;;  %5747 = vmatmul.mubr.f32.gmra.mxu0 %v2147_v51  ;;  %8419 = vst [vmem:[#allocation68_spill] sm:$0xff] %v7080_v14  ;;  %v2152_v51 = vld [vmem:[%s6875_s12 + $0x170] sm:$0xff]  ;;  %v2155_v14 = vld [vmem:[%s6875_s12 + $0x188] sm:$0xff] }
 0x187   : > { %8415 = vst [vmem:[#allocation64_spill] sm:$0xff] %v7069_v61  ;;  %5749 = vmatprep.mubr.f32.mxu0 %v2148_v19 }
 0x188   : > { %v7074_v7 = vpop.f32.mrf.mxu0 }
 0x189   : > { %8417 = vst [vmem:[#allocation66_spill] sm:$0xff] %v7074_v7  ;;  %v7088_v7 = vpop.f32.mrf.mxu1 }
 0x18a   : > { %v7077_v49 = vpop.f32.mrf.mxu0  ;;  %5750 = vmatmul.mubr.f32.gmra.mxu0 %v2149_v21  ;;  %8422 = vst [vmem:[#allocation71_spill] sm:$0xff] %v7088_v7  ;;  %v2154_v21 = vld [vmem:[%s6875_s12 + $0x180] sm:$0xff]  ;;  %v2157_v7 = vld [vmem:[%s6875_s12 + $0x198] sm:$0xff] }
 0x18b   : > { %8418 = vst [vmem:[#allocation67_spill] sm:$0xff] %v7077_v49  ;;  %5752 = vmatprep.mubr.f32.mxu0 %v2150_v31 }
 0x18c   : > { %v7082_v61 = vpop.f32.mrf.mxu0 }
 0x18d   : > { %8420 = vst [vmem:[#allocation69_spill] sm:$0xff] %v7082_v61  ;;  %v7096_v61 = vpop.f32.mrf.mxu1 }
 0x18e   : > { %v7085_v19 = vpop.f32.mrf.mxu0  ;;  %5753 = vmatmul.mubr.f32.gmra.mxu0 %v2151_v37  ;;  %8425 = vst [vmem:[#allocation74_spill] sm:$0xff] %v7096_v61  ;;  %v2156_v37 = vld [vmem:[%s6875_s12 + $0x190] sm:$0xff]  ;;  %v2159_v61 = vld [vmem:[%s6875_s12 + $0x1a8] sm:$0xff] }
 0x18f   : > { %8421 = vst [vmem:[#allocation70_spill] sm:$0xff] %v7085_v19  ;;  %5755 = vmatprep.mubr.f32.mxu0 %v2152_v51 }
 0x190   : > { %v7090_v49 = vpop.f32.mrf.mxu0 }
 0x191   : > { %8423 = vst [vmem:[#allocation72_spill] sm:$0xff] %v7090_v49  ;;  %v7104_v49 = vpop.f32.mrf.mxu1 }
 0x192   : > { %v7093_v31 = vpop.f32.mrf.mxu0  ;;  %5756 = vmatmul.mubr.f32.gmra.mxu0 %v2153_v42  ;;  %8428 = vst [vmem:[#allocation77_spill] sm:$0xff] %v7104_v49  ;;  %v2158_v42 = vld [vmem:[%s6875_s12 + $0x1a0] sm:$0xff]  ;;  %v2161_v49 = vld [vmem:[%s6875_s12 + $0x1b8] sm:$0xff] }
 0x193   : > { %8424 = vst [vmem:[#allocation73_spill] sm:$0xff] %v7093_v31  ;;  %5758 = vmatprep.mubr.f32.mxu0 %v2154_v21 }
 0x194   : > { %v7098_v19 = vpop.f32.mrf.mxu0 }
 0x195   : > { %8426 = vst [vmem:[#allocation75_spill] sm:$0xff] %v7098_v19  ;;  %v7112_v19 = vpop.f32.mrf.mxu1 }
 0x196   : > { %v7101_v51 = vpop.f32.mrf.mxu0  ;;  %5759 = vmatmul.mubr.f32.gmra.mxu0 %v2155_v14  ;;  %8431 = vst [vmem:[#allocation80_spill] sm:$0xff] %v7112_v19  ;;  %v2160_v14 = vld [vmem:[%s6875_s12 + $0x1b0] sm:$0xff]  ;;  %v2163_v19 = vld [vmem:[%s6875_s12 + $0x1c8] sm:$0xff] }
 0x197   : > { %8427 = vst [vmem:[#allocation76_spill] sm:$0xff] %v7101_v51  ;;  %5761 = vmatprep.mubr.f32.mxu0 %v2156_v37 }
 0x198   : > { %v7106_v31 = vpop.f32.mrf.mxu0 }
 0x199   : > { %8429 = vst [vmem:[#allocation78_spill] sm:$0xff] %v7106_v31  ;;  %v7120_v31 = vpop.f32.mrf.mxu1 }
 0x19a   : > { %v7109_v21 = vpop.f32.mrf.mxu0  ;;  %5762 = vmatmul.mubr.f32.gmra.mxu0 %v2157_v7  ;;  %8434 = vst [vmem:[#allocation83_spill] sm:$0xff] %v7120_v31  ;;  %v2162_v7 = vld [vmem:[%s6875_s12 + $0x1c0] sm:$0xff]  ;;  %v2165_v31 = vld [vmem:[%s6875_s12 + $0x1d8] sm:$0xff] }
 0x19b   : > { %8430 = vst [vmem:[#allocation79_spill] sm:$0xff] %v7109_v21  ;;  %5764 = vmatprep.mubr.f32.mxu0 %v2158_v42 }
 0x19c   : > { %v7114_v51 = vpop.f32.mrf.mxu0 }
 0x19d   : > { %8432 = vst [vmem:[#allocation81_spill] sm:$0xff] %v7114_v51  ;;  %v7128_v51 = vpop.f32.mrf.mxu1 }
 0x19e   : > { %v7117_v37 = vpop.f32.mrf.mxu0  ;;  %5765 = vmatmul.mubr.f32.gmra.mxu0 %v2159_v61  ;;  %8437 = vst [vmem:[#allocation86_spill] sm:$0xff] %v7128_v51  ;;  %v2164_v61 = vld [vmem:[%s6875_s12 + $0x1d0] sm:$0xff]  ;;  %v2167_v51 = vld [vmem:[%s6875_s12 + $0x1e8] sm:$0xff] }
 0x19f   : > { %8433 = vst [vmem:[#allocation82_spill] sm:$0xff] %v7117_v37  ;;  %5767 = vmatprep.mubr.f32.mxu0 %v2160_v14 }
 0x1a0   : > { %v7122_v21 = vpop.f32.mrf.mxu0 }
 0x1a1   : > { %8435 = vst [vmem:[#allocation84_spill] sm:$0xff] %v7122_v21  ;;  %v7136_v21 = vpop.f32.mrf.mxu1 }
 0x1a2   : > { %v7125_v42 = vpop.f32.mrf.mxu0  ;;  %5768 = vmatmul.mubr.f32.gmra.mxu0 %v2161_v49  ;;  %8440 = vst [vmem:[#allocation89_spill] sm:$0xff] %v7136_v21  ;;  %v2166_v49 = vld [vmem:[%s6875_s12 + $0x1e0] sm:$0xff]  ;;  %v2169_v21 = vld [vmem:[%s6875_s12 + $0x1f8] sm:$0xff] }
 0x1a3   : > { %8436 = vst [vmem:[#allocation85_spill] sm:$0xff] %v7125_v42  ;;  %5770 = vmatprep.mubr.f32.mxu0 %v2162_v7 }
 0x1a4   : > { %v7130_v37 = vpop.f32.mrf.mxu0 }
 0x1a5   : > { %8438 = vst [vmem:[#allocation87_spill] sm:$0xff] %v7130_v37  ;;  %v7144_v37 = vpop.f32.mrf.mxu1 }
 0x1a6   : > { %v7133_v14 = vpop.f32.mrf.mxu0  ;;  %5771 = vmatmul.mubr.f32.gmra.mxu0 %v2163_v19  ;;  %8443 = vst [vmem:[#allocation92_spill] sm:$0xff] %v7144_v37  ;;  %v2168_v19 = vld [vmem:[%s6875_s12 + $0x1f0] sm:$0xff]  ;;  %v2171_v37 = vld [vmem:[%s6875_s12 + $0x208] sm:$0xff] }
 0x1a7   : > { %8439 = vst [vmem:[#allocation88_spill] sm:$0xff] %v7133_v14  ;;  %5773 = vmatprep.mubr.f32.mxu0 %v2164_v61 }
 0x1a8   : > { %v7138_v42 = vpop.f32.mrf.mxu0 }
 0x1a9   : > { %8441 = vst [vmem:[#allocation90_spill] sm:$0xff] %v7138_v42  ;;  %v7152_v42 = vpop.f32.mrf.mxu1 }
 0x1aa   : > { %v7141_v7 = vpop.f32.mrf.mxu0  ;;  %5774 = vmatmul.mubr.f32.gmra.mxu0 %v2165_v31  ;;  %8446 = vst [vmem:[#allocation95_spill] sm:$0xff] %v7152_v42  ;;  %v2170_v31 = vld [vmem:[%s6875_s12 + $0x200] sm:$0xff]  ;;  %v2173_v42 = vld [vmem:[%s6875_s12 + $0x218] sm:$0xff] }
 0x1ab   : > { %8442 = vst [vmem:[#allocation91_spill] sm:$0xff] %v7141_v7  ;;  %5776 = vmatprep.mubr.f32.mxu0 %v2166_v49 }
 0x1ac   : > { %v7146_v14 = vpop.f32.mrf.mxu0 }
 0x1ad   : > { %8444 = vst [vmem:[#allocation93_spill] sm:$0xff] %v7146_v14  ;;  %v7160_v14 = vpop.f32.mrf.mxu1 }
 0x1ae   : > { %v7149_v61 = vpop.f32.mrf.mxu0  ;;  %5777 = vmatmul.mubr.f32.gmra.mxu0 %v2167_v51  ;;  %8449 = vst [vmem:[#allocation98_spill] sm:$0xff] %v7160_v14  ;;  %v2172_v51 = vld [vmem:[%s6875_s12 + $0x210] sm:$0xff]  ;;  %v2175_v14 = vld [vmem:[%s6875_s12 + $0x228] sm:$0xff] }
 0x1af   : > { %8445 = vst [vmem:[#allocation94_spill] sm:$0xff] %v7149_v61  ;;  %5779 = vmatprep.mubr.f32.mxu0 %v2168_v19 }
 0x1b0   : > { %v7154_v7 = vpop.f32.mrf.mxu0 }
 0x1b1   : > { %8447 = vst [vmem:[#allocation96_spill] sm:$0xff] %v7154_v7  ;;  %v7168_v7 = vpop.f32.mrf.mxu1 }
 0x1b2   : > { %v7157_v49 = vpop.f32.mrf.mxu0  ;;  %5780 = vmatmul.mubr.f32.gmra.mxu0 %v2169_v21  ;;  %8452 = vst [vmem:[#allocation101_spill] sm:$0xff] %v7168_v7  ;;  %v2174_v21 = vld [vmem:[%s6875_s12 + $0x220] sm:$0xff]  ;;  %v2177_v7 = vld [vmem:[%s6875_s12 + $0x238] sm:$0xff] }
 0x1b3   : > { %8448 = vst [vmem:[#allocation97_spill] sm:$0xff] %v7157_v49  ;;  %5782 = vmatprep.mubr.f32.mxu0 %v2170_v31 }
 0x1b4   : > { %v7162_v61 = vpop.f32.mrf.mxu0 }
 0x1b5   : > { %8450 = vst [vmem:[#allocation99_spill] sm:$0xff] %v7162_v61  ;;  %v7176_v61 = vpop.f32.mrf.mxu1 }
 0x1b6   : > { %v7165_v19 = vpop.f32.mrf.mxu0  ;;  %5783 = vmatmul.mubr.f32.gmra.mxu0 %v2171_v37  ;;  %8455 = vst [vmem:[#allocation104_spill] sm:$0xff] %v7176_v61  ;;  %v2176_v37 = vld [vmem:[%s6875_s12 + $0x230] sm:$0xff]  ;;  %v2179_v61 = vld [vmem:[%s6875_s12 + $0x248] sm:$0xff] }
 0x1b7   : > { %8451 = vst [vmem:[#allocation100_spill] sm:$0xff] %v7165_v19  ;;  %5785 = vmatprep.mubr.f32.mxu0 %v2172_v51 }
 0x1b8   : > { %v7170_v49 = vpop.f32.mrf.mxu0 }
 0x1b9   : > { %8453 = vst [vmem:[#allocation102_spill] sm:$0xff] %v7170_v49  ;;  %v7184_v49 = vpop.f32.mrf.mxu1 }
 0x1ba   : > { %v7173_v31 = vpop.f32.mrf.mxu0  ;;  %5786 = vmatmul.mubr.f32.gmra.mxu0 %v2173_v42  ;;  %8458 = vst [vmem:[#allocation107_spill] sm:$0xff] %v7184_v49  ;;  %v2178_v42 = vld [vmem:[%s6875_s12 + $0x240] sm:$0xff]  ;;  %v2181_v49 = vld [vmem:[%s6875_s12 + $0x258] sm:$0xff] }
 0x1bb   : > { %8454 = vst [vmem:[#allocation103_spill] sm:$0xff] %v7173_v31  ;;  %5788 = vmatprep.mubr.f32.mxu0 %v2174_v21 }
 0x1bc   : > { %v7178_v19 = vpop.f32.mrf.mxu0 }
 0x1bd   : > { %8456 = vst [vmem:[#allocation105_spill] sm:$0xff] %v7178_v19  ;;  %v7192_v19 = vpop.f32.mrf.mxu1 }
 0x1be   : > { %v7181_v51 = vpop.f32.mrf.mxu0  ;;  %5789 = vmatmul.mubr.f32.gmra.mxu0 %v2175_v14  ;;  %8461 = vst [vmem:[#allocation110_spill] sm:$0xff] %v7192_v19  ;;  %v2180_v14 = vld [vmem:[%s6875_s12 + $0x250] sm:$0xff]  ;;  %v2183_v19 = vld [vmem:[%s6875_s12 + $0x268] sm:$0xff] }
 0x1bf   : > { %8457 = vst [vmem:[#allocation106_spill] sm:$0xff] %v7181_v51  ;;  %5791 = vmatprep.mubr.f32.mxu0 %v2176_v37 }
 0x1c0   : > { %v7186_v31 = vpop.f32.mrf.mxu0 }
 0x1c1   : > { %8459 = vst [vmem:[#allocation108_spill] sm:$0xff] %v7186_v31  ;;  %v7200_v31 = vpop.f32.mrf.mxu1 }
 0x1c2   : > { %v7189_v21 = vpop.f32.mrf.mxu0  ;;  %5792 = vmatmul.mubr.f32.gmra.mxu0 %v2177_v7  ;;  %8464 = vst [vmem:[#allocation113_spill] sm:$0xff] %v7200_v31  ;;  %v2182_v7 = vld [vmem:[%s6875_s12 + $0x260] sm:$0xff]  ;;  %v2185_v31 = vld [vmem:[%s6875_s12 + $0x278] sm:$0xff] }
 0x1c3   : > { %8460 = vst [vmem:[#allocation109_spill] sm:$0xff] %v7189_v21  ;;  %5794 = vmatprep.mubr.f32.mxu0 %v2178_v42 }
 0x1c4   : > { %v7194_v51 = vpop.f32.mrf.mxu0 }
 0x1c5   : > { %8462 = vst [vmem:[#allocation111_spill] sm:$0xff] %v7194_v51  ;;  %v7208_v51 = vpop.f32.mrf.mxu1 }
 0x1c6   : > { %v7197_v37 = vpop.f32.mrf.mxu0  ;;  %5795 = vmatmul.mubr.f32.gmra.mxu0 %v2179_v61  ;;  %8467 = vst [vmem:[#allocation116_spill] sm:$0xff] %v7208_v51  ;;  %v2184_v61 = vld [vmem:[%s6875_s12 + $0x270] sm:$0xff]  ;;  %v2187_v51 = vld [vmem:[%s6875_s12 + $0x288] sm:$0xff] }
 0x1c7   : > { %8463 = vst [vmem:[#allocation112_spill] sm:$0xff] %v7197_v37  ;;  %5797 = vmatprep.mubr.f32.mxu0 %v2180_v14 }
 0x1c8   : > { %v7202_v21 = vpop.f32.mrf.mxu0 }
 0x1c9   : > { %8465 = vst [vmem:[#allocation114_spill] sm:$0xff] %v7202_v21  ;;  %v7216_v21 = vpop.f32.mrf.mxu1 }
 0x1ca   : > { %v7205_v42 = vpop.f32.mrf.mxu0  ;;  %5798 = vmatmul.mubr.f32.gmra.mxu0 %v2181_v49  ;;  %8470 = vst [vmem:[#allocation119_spill] sm:$0xff] %v7216_v21  ;;  %v2186_v49 = vld [vmem:[%s6875_s12 + $0x280] sm:$0xff]  ;;  %v2189_v21 = vld [vmem:[%s6875_s12 + $0x298] sm:$0xff] }
 0x1cb   : > { %8466 = vst [vmem:[#allocation115_spill] sm:$0xff] %v7205_v42  ;;  %5800 = vmatprep.mubr.f32.mxu0 %v2182_v7 }
 0x1cc   : > { %v7210_v37 = vpop.f32.mrf.mxu0 }
 0x1cd   : > { %8468 = vst [vmem:[#allocation117_spill] sm:$0xff] %v7210_v37  ;;  %v7224_v37 = vpop.f32.mrf.mxu1 }
 0x1ce   : > { %v7213_v14 = vpop.f32.mrf.mxu0  ;;  %5801 = vmatmul.mubr.f32.gmra.mxu0 %v2183_v19  ;;  %8473 = vst [vmem:[#allocation122_spill] sm:$0xff] %v7224_v37  ;;  %v2188_v19 = vld [vmem:[%s6875_s12 + $0x290] sm:$0xff]  ;;  %v2191_v37 = vld [vmem:[%s6875_s12 + $0x2a8] sm:$0xff] }
 0x1cf   : > { %8469 = vst [vmem:[#allocation118_spill] sm:$0xff] %v7213_v14  ;;  %5803 = vmatprep.mubr.f32.mxu0 %v2184_v61 }
 0x1d0   : > { %v7218_v42 = vpop.f32.mrf.mxu0 }
 0x1d1   : > { %8471 = vst [vmem:[#allocation120_spill] sm:$0xff] %v7218_v42  ;;  %v7232_v42 = vpop.f32.mrf.mxu1 }
 0x1d2   : > { %v7221_v7 = vpop.f32.mrf.mxu0  ;;  %5804 = vmatmul.mubr.f32.gmra.mxu0 %v2185_v31  ;;  %8476 = vst [vmem:[#allocation125_spill] sm:$0xff] %v7232_v42  ;;  %v2190_v31 = vld [vmem:[%s6875_s12 + $0x2a0] sm:$0xff]  ;;  %v2193_v42 = vld [vmem:[%s6875_s12 + $0x2b8] sm:$0xff] }
 0x1d3   : > { %8472 = vst [vmem:[#allocation121_spill] sm:$0xff] %v7221_v7  ;;  %5806 = vmatprep.mubr.f32.mxu0 %v2186_v49 }
 0x1d4   : > { %v7226_v14 = vpop.f32.mrf.mxu0 }
 0x1d5   : > { %8474 = vst [vmem:[#allocation123_spill] sm:$0xff] %v7226_v14  ;;  %v7240_v14 = vpop.f32.mrf.mxu1 }
 0x1d6   : > { %v7229_v61 = vpop.f32.mrf.mxu0  ;;  %5807 = vmatmul.mubr.f32.gmra.mxu0 %v2187_v51  ;;  %8479 = vst [vmem:[#allocation128_spill] sm:$0xff] %v7240_v14  ;;  %v2192_v51 = vld [vmem:[%s6875_s12 + $0x2b0] sm:$0xff]  ;;  %v2195_v14 = vld [vmem:[%s6875_s12 + $0x2c8] sm:$0xff] }
 0x1d7   : > { %8475 = vst [vmem:[#allocation124_spill] sm:$0xff] %v7229_v61  ;;  %5809 = vmatprep.mubr.f32.mxu0 %v2188_v19 }
 0x1d8   : > { %v7234_v7 = vpop.f32.mrf.mxu0 }
 0x1d9   : > { %8477 = vst [vmem:[#allocation126_spill] sm:$0xff] %v7234_v7  ;;  %v7248_v7 = vpop.f32.mrf.mxu1 }
 0x1da   : > { %v7237_v49 = vpop.f32.mrf.mxu0  ;;  %5810 = vmatmul.mubr.f32.gmra.mxu0 %v2189_v21  ;;  %8482 = vst [vmem:[#allocation131_spill] sm:$0xff] %v7248_v7  ;;  %v2194_v21 = vld [vmem:[%s6875_s12 + $0x2c0] sm:$0xff]  ;;  %v2197_v7 = vld [vmem:[%s6875_s12 + $0x2d8] sm:$0xff] }
 0x1db   : > { %8478 = vst [vmem:[#allocation127_spill] sm:$0xff] %v7237_v49  ;;  %5812 = vmatprep.mubr.f32.mxu0 %v2190_v31 }
 0x1dc   : > { %v7242_v61 = vpop.f32.mrf.mxu0 }
 0x1dd   : > { %8480 = vst [vmem:[#allocation129_spill] sm:$0xff] %v7242_v61  ;;  %v7256_v61 = vpop.f32.mrf.mxu1 }
 0x1de   : > { %v7245_v19 = vpop.f32.mrf.mxu0  ;;  %5813 = vmatmul.mubr.f32.gmra.mxu0 %v2191_v37  ;;  %8485 = vst [vmem:[#allocation134_spill] sm:$0xff] %v7256_v61  ;;  %v2196_v37 = vld [vmem:[%s6875_s12 + $0x2d0] sm:$0xff] }
 0x1df   : > { %8481 = vst [vmem:[#allocation130_spill] sm:$0xff] %v7245_v19  ;;  %5815 = vmatprep.mubr.f32.mxu0 %v2192_v51 }
 0x1e0   : > { %v7250_v49 = vpop.f32.mrf.mxu0 }
 0x1e1   : > { %8483 = vst [vmem:[#allocation132_spill] sm:$0xff] %v7250_v49  ;;  %v7264_v49 = vpop.f32.mrf.mxu1 }
 0x1e2   : > { %v7253_v31 = vpop.f32.mrf.mxu0  ;;  %5816 = vmatmul.mubr.f32.gmra.mxu0 %v2193_v42  ;;  %8488 = vst [vmem:[#allocation137_spill] sm:$0xff] %v7264_v49  ;;  %v2198_v42 = vld [vmem:[%s6875_s12 + $0x2e0] sm:$0xff]  ;;  %v3350_v49 = vsub.s32 2, %v6665_v34  ;;  %v2204_v34 = vld [vmem:[%s6875_s12 + $0x310] sm:$0xff] }
 0x1e3   : > { %8484 = vst [vmem:[#allocation133_spill] sm:$0xff] %v7253_v31  ;;  %5818 = vmatprep.mubr.f32.mxu0 %v2194_v21  ;;  %v2199_v31 = vld [vmem:[%s6875_s12 + $0x2e8] sm:$0xff] }
 0x1e4   : > { %v7258_v19 = vpop.f32.mrf.mxu0 }
 0x1e5   : > { %8486 = vst [vmem:[#allocation135_spill] sm:$0xff] %v7258_v19  ;;  %v7272_v19 = vpop.f32.mrf.mxu1 }
 0x1e6   : > { %v7261_v51 = vpop.f32.mrf.mxu0  ;;  %5819 = vmatmul.mubr.f32.gmra.mxu0 %v2195_v14  ;;  %8491 = vst [vmem:[#allocation140_spill] sm:$0xff] %v7272_v19  ;;  %v2200_v14 = vld [vmem:[%s6875_s12 + $0x2f0] sm:$0xff]  ;;  %v6159_v19 = vld [vmem:[%s6674_s26] sm:$0x7]  ;;  %s386_s26 = sand.u32 1, %s6221_s28  }
 0x1e7   : > { %8487 = vst [vmem:[#allocation136_spill] sm:$0xff] %v7261_v51  ;;  %5821 = vmatprep.mubr.f32.mxu0 %v2196_v37  ;;  %s8300_s30 = scalar_lea.sflag [#allocation3], %s386_s26 }
 0x1e8   : > { %v7266_v30 = vpop.f32.mrf.mxu0 }
 0x1e9   : > { %8489 = vst [vmem:[#allocation138_spill] sm:$0xff] %v7266_v30  ;;  %v2201_v30 = vld [vmem:[%s6875_s12 + $0x2f8] sm:$0xff] }
 0x1ea   : > { %v7269_v21 = vpop.f32.mrf.mxu0  ;;  %5822 = vmatmul.mubr.f32.gmra.mxu0 %v2197_v7 }
 0x1eb   : > { %8490 = vst [vmem:[#allocation139_spill] sm:$0xff] %v7269_v21  ;;  %5824 = vmatprep.mubr.f32.mxu0 %v2198_v42  ;;  %v7281_v21 = vpop.f32.mrf.mxu1  ;;  %v2202_v42 = vld [vmem:[%s6875_s12 + $0x300] sm:$0xff] }
 0x1ec   : > { %v7274_v51 = vpop.f32.mrf.mxu0  ;;  %8494 = vst [vmem:[#allocation143_spill] sm:$0xff] %v7281_v21 }
 0x1ed   : > { %8492 = vst [vmem:[#allocation141_spill] sm:$0xff] %v7274_v51  ;;  %v2203_v51 = vld [vmem:[%s6875_s12 + $0x308] sm:$0xff] }
 0x1ee   : > { %v7277_v37 = vpop.f32.mrf.mxu0  ;;  %5825 = vmatmul.mubr.f32.gmra.mxu0 %v2199_v31  ;;  %v7292_v31 = vpop.f32.mrf.mxu1 }
 0x1ef   : > { %8493 = vst [vmem:[#allocation142_spill] sm:$0xff] %v7277_v37  ;;  %5827 = vmatprep.mubr.f32.mxu0 %v2200_v14  ;;  %v7290_v37 = vrot.slane %v6159_v19, %v3350_v49  ;;  %8497 = vst [vmem:[#allocation146_spill] sm:$0xff] %v7292_v31 }
 0x1f0   : > { %v7283_v7 = vpop.f32.mrf.mxu0  ;;  %v7298_v21 = vpop.f32.mrf.mxu1 }
 0x1f1   : > { %8495 = vst [vmem:[#allocation144_spill] sm:$0xff] %v7283_v7  ;;  %v2205_v7 = vld [vmem:[%s6875_s12 + $0x318] sm:$0xff]  ;;  %8499 = vst [vmem:[#allocation148_spill] sm:$0xff] %v7298_v21 }
 0x1f2   : > { %v7286_v61 = vpop.f32.mrf.mxu0  ;;  %5828 = vmatmul.mubr.f32.gmra.mxu0 %v2201_v30  ;;  %v7305_v41 = vpop.f32.mrf.mxu1 }
 0x1f3   : > { %8496 = vst [vmem:[#allocation145_spill] sm:$0xff] %v7286_v61  ;;  %5830 = vmatprep.mubr.f32.mxu0 %v2202_v42  ;;  %v2206_v61 = vld [vmem:[%s6875_s12 + $0x320] sm:$0xff] }
 0x1f4   : > { %v7294_v14 = vpop.f32.mrf.mxu0 }
 0x1f5   : > { %8498 = vst [vmem:[#allocation147_spill] sm:$0xff] %v7294_v14  ;;  %v2207_v14 = vld [vmem:[%s6875_s12 + $0x328] sm:$0xff] }
 0x1f6   : > { %v5688_v3 = vpop.f32.mrf.mxu0  ;;  %5831 = vmatmul.mubr.f32.gmra.mxu0 %v2203_v51 }
 0x1f7   : > { %5833 = vmatprep.mubr.f32.mxu0 %v2204_v34  ;;  %v3353_v30 = vmul.f32 %v5688_v3, %v7290_v37  ;;  %v2208_v3 = vld [vmem:[%s6875_s12 + $0x330] sm:$0xff] }
 0x1f8   : > { %v2316_v42 = vpop.f32.mrf.mxu0 }
 0x1f9   : > { %v3352_v49 = vmul.f32 %v7290_v37, %v2316_v42  ;;  %v3481_v51 = vadd.f32 %v3353_v30, %v6700_v63 }
 0x1fa   : > { %v5691_v19 = vpop.f32.mrf.mxu0  ;;  %5834 = vmatmul.mubr.f32.gmra.mxu0 %v2205_v7  ;;  %v7313_v7 = vpop.f32.mrf.mxu1 }
 0x1fb   : > { %v3480_v31 = vadd.f32 %v3352_v49, %v6704_v4  ;;  %5836 = vmatprep.mubr.f32.mxu0 %v2206_v61  ;;  %v3355_v34 = vmul.f32 %v5691_v19, %v7290_v37  ;;  %v2209_v61 = vld [vmem:[%s6875_s12 + $0x338] sm:$0xff]  ;;  %v2210_v19 = vld [vmem:[%s6875_s12 + $0x340] sm:$0xff] }
 0x1fc   : > { %v2326_v21 = vpop.f32.mrf.mxu0 }
 0x1fd   : > { %v3354_v38 = vmul.f32 %v7290_v37, %v2326_v21  ;;  %5910 = vmatprep.mubr.f32.mxu1 %v3480_v31  ;;  %v3483_v63 = vadd.f32 %v3355_v34, %v6712_v13 }
 0x1fe   : > { %v5694_v42 = vpop.f32.mrf.mxu0  ;;  %5837 = vmatmul.mubr.f32.gmra.mxu0 %v2207_v14  ;;  %5911 = vmatmul.mubr.f32.vlgmr.msra.gmra.mxu1 %v3481_v51  ;;  %v7321_v14 = vpop.f32.mrf.mxu1 }
 0x1ff   : > { %v3482_v4 = vadd.f32 %v3354_v38, %v6716_v18  ;;  %5839 = vmatprep.mubr.f32.mxu0 %v2208_v3  ;;  %v3357_v30 = vmul.f32 %v5694_v42, %v7290_v37  ;;  %v2211_v38 = vld [vmem:[%s6875_s12 + $0x348] sm:$0xff]  ;;  %v2212_v3 = vld [vmem:[%s6875_s12 + $0x350] sm:$0xff] }
 0x200   : > { %v2336_v49 = vpop.f32.mrf.mxu0 }
 0x201   : > { %v3356_v21 = vmul.f32 %v7290_v37, %v2336_v49  ;;  %5913 = vmatprep.mubr.f32.mxu1 %v3482_v4  ;;  %v3485_v13 = vadd.f32 %v3357_v30, %v6724_v27 }
 0x202   : > { %v5697_v31 = vpop.f32.mrf.mxu0  ;;  %5840 = vmatmul.mubr.f32.gmra.mxu0 %v2209_v61  ;;  %5914 = vmatmul.mubr.f32.gmra.mxu1 %v3483_v63  ;;  %v2213_v61 = vld [vmem:[%s6875_s12 + $0x358] sm:$0xff]  ;;  %v7329_v63 = vpop.f32.mrf.mxu1 }
 0x203   : > { %v3484_v18 = vadd.f32 %v3356_v21, %v6731_v33  ;;  %5842 = vmatprep.mubr.f32.mxu0 %v2210_v19  ;;  %v3359_v51 = vmul.f32 %v5697_v31, %v7290_v37  ;;  %v2214_v19 = vld [vmem:[%s6875_s12 + $0x360] sm:$0xff] }
 0x204   : > { %v2346_v34 = vpop.f32.mrf.mxu0 }
 0x205   : > { %v3358_v42 = vmul.f32 %v7290_v37, %v2346_v34  ;;  %5916 = vmatprep.mubr.f32.mxu1 %v3484_v18  ;;  %v3487_v27 = vadd.f32 %v3359_v51, %v6739_v43  ;;  %v2215_v18 = vld [vmem:[%s6875_s12 + $0x368] sm:$0xff]  ;;  %v2216_v34 = vld [vmem:[%s6875_s12 + $0x370] sm:$0xff] }
 0x206   : > { %v5700_v4 = vpop.f32.mrf.mxu0  ;;  %5843 = vmatmul.mubr.f32.gmra.mxu0 %v2211_v38  ;;  %5917 = vmatmul.mubr.f32.gmra.mxu1 %v3485_v13  ;;  %v7337_v38 = vpop.f32.mrf.mxu1 }
 0x207   : > { %v3486_v33 = vadd.f32 %v3358_v42, %v6743_v50  ;;  %5845 = vmatprep.mubr.f32.mxu0 %v2212_v3  ;;  %v3361_v30 = vmul.f32 %v5700_v4, %v7290_v37  ;;  %v2217_v4 = vld [vmem:[%s6875_s12 + $0x378] sm:$0xff] }
 0x208   : > { %v2356_v49 = vpop.f32.mrf.mxu0 }
 0x209   : > { %v3360_v21 = vmul.f32 %v7290_v37, %v2356_v49  ;;  %5919 = vmatprep.mubr.f32.mxu1 %v3486_v33  ;;  %v3489_v43 = vadd.f32 %v3361_v30, %v6751_v59  ;;  %v7345_v33 = vpop.f32.mrf.mxu1  ;;  %v2218_v30 = vld [vmem:[%s6875_s12 + $0x380] sm:$0xff] }
 0x20a   : > { %v5703_v31 = vpop.f32.mrf.mxu0  ;;  %5846 = vmatmul.mubr.f32.gmra.mxu0 %v2213_v61  ;;  %5920 = vmatmul.mubr.f32.gmra.mxu1 %v3487_v27 }
 0x20b   : > { %v3488_v50 = vadd.f32 %v3360_v21, %v6755_v1  ;;  %5848 = vmatprep.mubr.f32.mxu0 %v2214_v19  ;;  %v3363_v13 = vmul.f32 %v5703_v31, %v7290_v37  ;;  %v7353_v31 = vpop.f32.mrf.mxu1 }
 0x20c   : > { %v2366_v51 = vpop.f32.mrf.mxu0 }
 0x20d   : > { %v3362_v3 = vmul.f32 %v7290_v37, %v2366_v51  ;;  %5922 = vmatprep.mubr.f32.mxu1 %v3488_v50  ;;  %v3491_v59 = vadd.f32 %v3363_v13, %v6763_v11  ;;  %v2976_v13 = vmul.f32 %v6686_v47, %v6802_v57  ;;  %v3108_v51 = vmul.f32 %v6688_v48, %v6804_v58  ;;  %v2221_v57 = vld [vmem:[%s6875_s12 + $0x398] sm:$0xff] }
 0x20e   : > { %v5706_v42 = vpop.f32.mrf.mxu0  ;;  %5849 = vmatmul.mubr.f32.gmra.mxu0 %v2215_v18  ;;  %5923 = vmatmul.mubr.f32.gmra.mxu1 %v3489_v43  ;;  %v2220_v43 = vld [vmem:[%s6875_s12 + $0x390] sm:$0xff] }
 0x20f   : > { %v3490_v1 = vadd.f32 %v3362_v3, %v6767_v17  ;;  %5851 = vmatprep.mubr.f32.mxu0 %v2216_v34  ;;  %v3365_v61 = vmul.f32 %v5706_v42, %v7290_v37  ;;  %v2219_v17 = vld [vmem:[%s6875_s12 + $0x388] sm:$0xff]  ;;  %v2977_v34 = vmul.f32 %v6794_v52, %v6686_v47  ;;  %v3236_v52 = vadd.f32 %v3108_v51, %v2976_v13 }
 0x210   : > { %v2376_v27 = vpop.f32.mrf.mxu0 }
 0x211   : > { %v3364_v49 = vmul.f32 %v7290_v37, %v2376_v27  ;;  %5925 = vmatprep.mubr.f32.mxu1 %v3490_v1  ;;  %v3493_v11 = vadd.f32 %v3365_v61, %v6775_v28  ;;  %v3109_v28 = vmul.f32 %v6796_v53, %v6688_v48  ;;  %v7369_v1 = vpop.f32.mrf.mxu1  ;;  %v2222_v61 = vld [vmem:[%s6875_s12 + $0x3a0] sm:$0xff]  ;;  %v2978_v53 = vmul.f32 %v6686_v47, %v6814_v5  ;;  %v2223_v5 = vld [vmem:[%s6875_s12 + $0x3a8] sm:$0xff] }
 0x212   : > { %v5709_v19 = vpop.f32.mrf.mxu0  ;;  %5852 = vmatmul.mubr.f32.gmra.mxu0 %v2217_v4  ;;  %5926 = vmatmul.mubr.f32.gmra.mxu1 %v3491_v59  ;;  %v3110_v27 = vmul.f32 %v6688_v48, %v6816_v6 }
 0x213   : > { %v3492_v21 = vadd.f32 %v3364_v49, %v6782_v36  ;;  %5854 = vmatprep.mubr.f32.mxu0 %v2218_v30  ;;  %v3367_v50 = vmul.f32 %v5709_v19, %v7290_v37  ;;  %v3237_v30 = vadd.f32 %v3109_v28, %v2977_v34  ;;  %v3111_v49 = vmul.f32 %v6810_v0, %v6688_v48 }
 0x214   : > { %v2386_v18 = vpop.f32.mrf.mxu0  ;;  %v3112_v0 = vmul.f32 %v6688_v48, %v6828_v16  ;;  %v3113_v34 = vmul.f32 %v6822_v10, %v6688_v48  ;;  %v3114_v10 = vmul.f32 %v6688_v48, %v6843_v29 }
 0x215   : > { %v3366_v36 = vmul.f32 %v7290_v37, %v2386_v18  ;;  %5928 = vmatprep.mubr.f32.mxu1 %v3492_v21  ;;  %v3495_v58 = vadd.f32 %v3367_v50, %v6790_v46  ;;  %v2979_v46 = vmul.f32 %v6808_v62, %v6686_v47  ;;  %v2224_v18 = vld [vmem:[%s6875_s12 + $0x3b0] sm:$0xff]  ;;  %v2980_v62 = vmul.f32 %v6686_v47, %v6826_v15  ;;  %v2225_v15 = vld [vmem:[%s6875_s12 + $0x3b8] sm:$0xff] }
 0x216   : > { %v5712_v3 = vpop.f32.mrf.mxu0  ;;  %5855 = vmatmul.mubr.f32.gmra.mxu0 %v2219_v17  ;;  %5929 = vmatmul.mubr.f32.gmra.mxu1 %v3493_v11  ;;  %v7384_v17 = vpop.f32.mrf.mxu1 }
 0x217   : > { %v3494_v42 = vadd.f32 %v3366_v36, %v6798_v54  ;;  %5857 = vmatprep.mubr.f32.mxu0 %v2220_v43  ;;  %v3369_v4 = vmul.f32 %v5712_v3, %v7290_v37  ;;  %v3238_v43 = vadd.f32 %v3110_v27, %v2978_v53  ;;  %v3239_v51 = vadd.f32 %v3111_v49, %v2979_v46 }
 0x218   : > { %v2396_v59 = vpop.f32.mrf.mxu0  ;;  %v2981_v36 = vmul.f32 %v6820_v9, %v6686_v47  ;;  %v2982_v9 = vmul.f32 %v6686_v47, %v6841_v26  ;;  %v2983_v53 = vmul.f32 %v6835_v22, %v6686_v47  ;;  %v3115_v27 = vmul.f32 %v6837_v23, %v6688_v48  ;;  %v2227_v26 = vld [vmem:[%s6875_s12 + $0x3c8] sm:$0xff] }
 0x219   : > { %v3368_v54 = vmul.f32 %v7290_v37, %v2396_v59  ;;  %5931 = vmatprep.mubr.f32.mxu1 %v3494_v42  ;;  %v3497_v6 = vadd.f32 %v3369_v4, %v3237_v30  ;;  %v7398_v42 = vpop.f32.mrf.mxu1  ;;  %v2226_v4 = vld [vmem:[%s6875_s12 + $0x3c0] sm:$0xff]  ;;  %v3240_v59 = vadd.f32 %v3112_v0, %v2980_v62  ;;  %v2984_v22 = vmul.f32 %v6686_v47, %v6853_v39  ;;  %v2229_v39 = vld [vmem:[%s6875_s12 + $0x3d8] sm:$0xff] }
 0x21a   : > { %v5715_v19 = vpop.f32.mrf.mxu0  ;;  %5858 = vmatmul.mubr.f32.gmra.mxu0 %v2221_v57  ;;  %5932 = vmatmul.mubr.f32.gmra.mxu1 %v3495_v58  ;;  %v3116_v23 = vmul.f32 %v6688_v48, %v6855_v40 }
 0x21b   : > { %v3496_v21 = vadd.f32 %v3368_v54, %v3236_v52  ;;  %5860 = vmatprep.mubr.f32.mxu0 %v2222_v61  ;;  %v3371_v11 = vmul.f32 %v5715_v19, %v7290_v37  ;;  %v3241_v52 = vadd.f32 %v3113_v34, %v2981_v36  ;;  %v7412_v46 = vpop.f32.mrf.mxu1  ;;  %v2230_v36 = vld [vmem:[%s6875_s12 + $0x3e0] sm:$0xff] }
 0x21c   : > { %v2406_v50 = vpop.f32.mrf.mxu0  ;;  %v3244_v34 = vadd.f32 %v3116_v23, %v2984_v22  ;;  %v2991_v23 = vmul.f32 %v6889_v20, %v6686_v47 }
 0x21d   : > { %v3370_v13 = vmul.f32 %v7290_v37, %v2406_v50  ;;  %5934 = vmatprep.mubr.f32.mxu1 %v3496_v21  ;;  %v3499_v16 = vadd.f32 %v3371_v11, %v3239_v51  ;;  %v2228_v21 = vld [vmem:[%s6875_s12 + $0x3d0] sm:$0xff]  ;;  %v3243_v11 = vadd.f32 %v3115_v27, %v2983_v53  ;;  %v2985_v50 = vmul.f32 %v6847_v32, %v6686_v47  ;;  %v7426_v0 = vpop.f32.mrf.mxu1 }
 0x21e   : > { %v5718_v28 = vpop.f32.mrf.mxu0  ;;  %5861 = vmatmul.mubr.f32.gmra.mxu0 %v2223_v5  ;;  %5935 = vmatmul.mubr.f32.gmra.mxu1 %v3497_v6  ;;  %v3242_v5 = vadd.f32 %v3114_v10, %v2982_v9  ;;  %v2986_v32 = vmul.f32 %v6686_v47, %v6865_v55  ;;  %v2231_v55 = vld [vmem:[%s6875_s12 + $0x3e8] sm:$0xff]  ;;  %v2232_v10 = vld [vmem:[%s6875_s12 + $0x3f0] sm:$0xff]  ;;  %v2989_v27 = vmul.f32 %v6877_v2, %v6686_v47 }
 0x21f   : > { %v3498_v3 = vadd.f32 %v3370_v13, %v3238_v43  ;;  %5863 = vmatprep.mubr.f32.mxu0 %v2224_v18  ;;  %v3373_v57 = vmul.f32 %v5718_v28, %v7290_v37  ;;  %v3117_v18 = vmul.f32 %v6849_v35, %v6688_v48  ;;  %v3118_v35 = vmul.f32 %v6688_v48, %v6867_v56 }
 0x220   : > { %v2416_v58 = vpop.f32.mrf.mxu0  ;;  %v3122_v2 = vmul.f32 %v6688_v48, %v6908_v60 }
 0x221   : > { %v3372_v61 = vmul.f32 %v7290_v37, %v2416_v58  ;;  %5937 = vmatprep.mubr.f32.mxu1 %v3498_v3  ;;  %v3501_v29 = vadd.f32 %v3373_v57, %v3241_v52  ;;  %v3245_v3 = vadd.f32 %v3117_v18, %v2985_v50 }
 0x222   : > { %v5721_v54 = vpop.f32.mrf.mxu0  ;;  %5864 = vmatmul.mubr.f32.gmra.mxu0 %v2225_v15  ;;  %5938 = vmatmul.mubr.f32.gmra.mxu1 %v3499_v16  ;;  %v2987_v15 = vmul.f32 %v6859_v44, %v6686_v47  ;;  %v3119_v16 = vmul.f32 %v6861_v45, %v6688_v48  ;;  %v2988_v44 = vmul.f32 %v6686_v47, %v6883_v12 }
 0x223   : > { %v3500_v30 = vadd.f32 %v3372_v61, %v3240_v59  ;;  %5866 = vmatprep.mubr.f32.mxu0 %v2226_v4  ;;  %v3375_v49 = vmul.f32 %v5721_v54, %v7290_v37  ;;  %v7440_v4 = vpop.f32.mrf.mxu1  ;;  %v3246_v61 = vadd.f32 %v3118_v35, %v2986_v32  ;;  %v3120_v45 = vmul.f32 %v6688_v48, %v6892_v24  ;;  %v8503_v32 = vld [vmem:[#allocation5_spill] sm:$0xff] }
 0x224   : > { %v2426_v19 = vpop.f32.mrf.mxu0  ;;  %v3247_v53 = vadd.f32 %v3119_v16, %v2987_v15  ;;  %v3121_v54 = vmul.f32 %v6881_v8, %v6688_v48  ;;  %v2993_v35 = vmul.f32 %v8503_v32, %v6686_v47 }
 0x225   : > { %v3374_v6 = vmul.f32 %v7290_v37, %v2426_v19  ;;  %5940 = vmatprep.mubr.f32.mxu1 %v3500_v30  ;;  %v3503_v40 = vadd.f32 %v3375_v49, %v3243_v11  ;;  %v7454_v12 = vpop.f32.mrf.mxu1 }
 0x226   : > { %v5724_v43 = vpop.f32.mrf.mxu0  ;;  %5867 = vmatmul.mubr.f32.gmra.mxu0 %v2227_v26  ;;  %5941 = vmatmul.mubr.f32.gmra.mxu1 %v3501_v29  ;;  %v2233_v29 = vld [vmem:[%s6875_s12 + $0x3f8] sm:$0xff]  ;;  %v3249_v22 = vadd.f32 %v3121_v54, %v2989_v27  ;;  %v8508_v54 = vld [vmem:[#allocation17_spill] sm:$0xff]  ;;  %s4612_s12 = sshll.u32 %s386_s26, 10 }
 0x227   : > { %v3502_v62 = vadd.f32 %v3374_v6, %v3242_v5  ;;  %5869 = vmatprep.mubr.f32.mxu0 %v2228_v21  ;;  %v3377_v13 = vmul.f32 %v5724_v43, %v7290_v37  ;;  %v3248_v21 = vadd.f32 %v3120_v45, %v2988_v44  ;;  %v2990_v5 = vmul.f32 %v6686_v47, %v6894_v25  ;;  %v8500_v6 = vld [vmem:[#allocation6_spill] sm:$0xff]  ;;  %v7466_v43 = vpop.f32.mrf.mxu1  ;;  %s7900_s16 = scalar_lea.vmem [#allocation2], %s4612_s12 }
 0x228   : > { %v2436_v51 = vpop.f32.mrf.mxu0  ;;  %v3123_v11 = vmul.f32 %v8500_v6, %v6688_v48  ;;  %s4480_s24 = sshll.u32 %s7900_s16, 4  ;;  %s8293_s24 = int_to_ptr.vmem [resolvable:$true] %s4480_s24 }
 0x229   : > { %v3376_v28 = vmul.f32 %v7290_v37, %v2436_v51  ;;  %5943 = vmatprep.mubr.f32.mxu1 %v3502_v62  ;;  %v3505_v56 = vadd.f32 %v3377_v13, %v3245_v3  ;;  %v8502_v51 = vld [vmem:[#allocation14_spill] sm:$0xff]  ;;  %s6161_s12 = scalar_lea.vmem %s8293_s24, 16384  ;;  %p6168_p1 = scmp.lt.s32.totalorder %s8293_s24, %s6166_s22 }
 0x22a   : > { %v5727_v57 = vpop.f32.mrf.mxu0  ;;  %5870 = vmatmul.mubr.f32.gmra.mxu0 %v2229_v39  ;;  %5944 = vmatmul.mubr.f32.gmra.mxu1 %v3503_v40  ;;  %v3250_v39 = vadd.f32 %v3122_v2, %v2990_v5  ;;  %v8501_v40 = vld [vmem:[#allocation7_spill] sm:$0xff]  ;;  %v3124_v20 = vmul.f32 %v6688_v48, %v8502_v51  ;;  %v8509_v2 = vld [vmem:[#allocation12_spill] sm:$0xff]  ;;  %p6162_p12 = scmp.ne.s32.totalorder %s8293_s24, %s6161_s12  ;;  %p6169_p2 = scmp.lt.s32.totalorder %s6167_s21, %s6161_s12 }
 0x22b   : > { %v3504_v58 = vadd.f32 %v3376_v28, %v3244_v34  ;;  %5872 = vmatprep.mubr.f32.mxu0 %v2230_v36  ;;  %v3379_v59 = vmul.f32 %v5727_v57, %v7290_v37  ;;  %v2992_v13 = vmul.f32 %v6686_v47, %v8501_v40  ;;  %v3251_v34 = vadd.f32 %v3123_v11, %v2991_v23  ;;  %v8504_v28 = vld [vmem:[#allocation11_spill] sm:$0xff]  ;;  %v7478_v57 = vpop.f32.mrf.mxu1 }
 0x22c   : > { %v2446_v9 = vpop.f32.mrf.mxu0  ;;  %v3125_v3 = vmul.f32 %v8504_v28, %v6688_v48  ;;  %p6163_p13 = pnand %p6162_p12, %p6327_p4  ;;  %p6170_p3 = por %p6169_p2, %p6168_p1 }
 0x22d   : > { %v3378_v52 = vmul.f32 %v7290_v37, %v2446_v9  ;;  %5946 = vmatprep.mubr.f32.mxu1 %v3504_v58  ;;  %v3507_v49 = vadd.f32 %v3379_v59, %v3247_v53  ;;  %v3252_v59 = vadd.f32 %v3124_v20, %v2992_v13  ;;  %v8505_v9 = vld [vmem:[#allocation9_spill] sm:$0xff]  ;;  %v8507_v53 = vld [vmem:[#allocation8_spill] sm:$0xff] }
 0x22e   : > { %v5730_v30 = vpop.f32.mrf.mxu0  ;;  %5873 = vmatmul.mubr.f32.gmra.mxu0 %v2231_v55  ;;  %5947 = vmatmul.mubr.f32.gmra.mxu1 %v3505_v56  ;;  %v2995_v27 = vmul.f32 %v8507_v53, %v6686_v47  ;;  %v8517_v53 = vld [vmem:[#allocation18_spill] sm:$0xff]  ;;  %p6164_p0 = pneg %p6163_p13 }
 0x22f   : > { %v3506_v26 = vadd.f32 %v3378_v52, %v3246_v61  ;;  %5875 = vmatprep.mubr.f32.mxu0 %v2232_v10  ;;  %v3381_v24 = vmul.f32 %v5730_v30, %v7290_v37  ;;  %v2994_v10 = vmul.f32 %v6686_v47, %v8505_v9  ;;  %v8506_v61 = vld [vmem:[#allocation20_spill] sm:$0xff]  ;;  %v3253_v52 = vadd.f32 %v3125_v3, %v2993_v35 }
 0x230   : > { %v2456_v19 = vpop.f32.mrf.mxu0  ;;  %v3126_v44 = vmul.f32 %v6688_v48, %v8506_v61  ;;  %v3127_v30 = vmul.f32 %v8508_v54, %v6688_v48  ;;  %v8514_v35 = vld [vmem:[#allocation32_spill] sm:$0xff]  ;;  %v8518_v54 = vld [vmem:[#allocation38_spill] sm:$0xff]  ;;  %p6171_p5 = pnand %p6170_p3, %p6164_p0 }
 0x231   : > { %v3380_v8 = vmul.f32 %v7290_v37, %v2456_v19  ;;  %5949 = vmatprep.mubr.f32.mxu1 %v3506_v26  ;;  %v3509_v25 = vadd.f32 %v3381_v24, %v3249_v22  ;;  %v8510_v22 = vld [vmem:[#allocation26_spill] sm:$0xff]  ;;  %v3130_v28 = vmul.f32 %v6688_v48, %v8514_v35 }
 0x232   : > { %v5733_v50 = vpop.f32.mrf.mxu0  ;;  %5876 = vmatmul.mubr.f32.gmra.mxu0 %v2233_v29  ;;  %5950 = vmatmul.mubr.f32.gmra.mxu1 %v3507_v49  ;;  %v7490_v49 = vpop.f32.mrf.mxu1  ;;  %v3254_v5 = vadd.f32 %v3126_v44, %v2994_v10  ;;  %v3128_v23 = vmul.f32 %v6688_v48, %v8510_v22  ;;  %v3255_v11 = vadd.f32 %v3127_v30, %v2995_v27 }
 0x233   : > { %v3508_v18 = vadd.f32 %v3380_v8, %v3248_v21  ;;  %v3383_v62 = vmul.f32 %v5733_v50, %v7290_v37  ;;  %v2996_v8 = vmul.f32 %v6686_v47, %v8509_v2  ;;  %v8511_v50 = vld [vmem:[#allocation10_spill] sm:$0xff]  ;;  %v3000_v27 = vmul.f32 %v6686_v47, %v8517_v53  ;;  %v8528_v53 = vld [vmem:[#allocation47_spill] sm:$0xff] }
 0x234   : > { %v2466_v60 = vpop.f32.mrf.mxu0  ;;  %v7502_v40 = vpop.f32.mrf.mxu1  ;;  %v3132_v30 = vmul.f32 %v6688_v48, %v8518_v54 }
 0x235   : > { %v3382_v36 = vmul.f32 %v7290_v37, %v2466_v60  ;;  %5952 = vmatprep.mubr.f32.mxu1 %v3508_v18  ;;  %v3511_v58 = vadd.f32 %v3383_v62, %v3251_v34  ;;  %v2997_v18 = vmul.f32 %v8511_v50, %v6686_v47  ;;  %v8513_v34 = vld [vmem:[#allocation15_spill] sm:$0xff] }
 0x236   : > { %v5736_v15 = vpop.f32.mrf.mxu0  ;;  %5953 = vmatmul.mubr.f32.gmra.mxu1 %v3509_v25  ;;  %v8512_v25 = vld [vmem:[#allocation23_spill] sm:$0xff]  ;;  %v2998_v32 = vmul.f32 %v6686_v47, %v8513_v34  ;;  %v7514_v10 = vpop.f32.mrf.mxu1  ;;  %v3260_v50 = vadd.f32 %v3132_v30, %v3000_v27  ;;  %v3137_v27 = vmul.f32 %v8528_v53, %v6688_v48 }
 0x237   : > { %v3510_v16 = vadd.f32 %v3382_v36, %v3250_v39  ;;  %v3385_v55 = vmul.f32 %v5736_v15, %v7290_v37  ;;  %v3129_v62 = vmul.f32 %v8512_v25, %v6688_v48  ;;  %v3256_v36 = vadd.f32 %v3128_v23, %v2996_v8 }
 0x238   : > { %v2476_v56 = vpop.f32.mrf.mxu0  ;;  %v7526_v22 = vpop.f32.mrf.mxu1 }
 0x239   : > { %v3384_v45 = vmul.f32 %v7290_v37, %v2476_v56  ;;  %5955 = vmatprep.mubr.f32.mxu1 %v3510_v16  ;;  %v3513_v24 = vadd.f32 %v3385_v55, %v3253_v52  ;;  %v3257_v15 = vadd.f32 %v3129_v62, %v2997_v18  ;;  %v8515_v16 = vld [vmem:[#allocation13_spill] sm:$0xff]  ;;  %v3258_v52 = vadd.f32 %v3130_v28, %v2998_v32  ;;  %v8522_v62 = vld [vmem:[#allocation44_spill] sm:$0xff] }
 0x23a   : > { %v5739_v26 = vpop.f32.mrf.mxu0  ;;  %5956 = vmatmul.mubr.f32.gmra.mxu1 %v3511_v58  ;;  %v2999_v58 = vmul.f32 %v8515_v16, %v6686_v47  ;;  %v8516_v55 = vld [vmem:[#allocation29_spill] sm:$0xff]  ;;  %v7538_v28 = vpop.f32.mrf.mxu1 }
 0x23b   : > { %v3512_v29 = vadd.f32 %v3384_v45, %v3252_v59  ;;  %v3387_v19 = vmul.f32 %v5739_v26, %v7290_v37  ;;  %v3131_v56 = vmul.f32 %v8516_v55, %v6688_v48  ;;  %v8521_v18 = vld [vmem:[#allocation21_spill] sm:$0xff]  ;;  %v8525_v55 = vld [vmem:[#allocation24_spill] sm:$0xff] }
 0x23c   : > { %v2486_v21 = vpop.f32.mrf.mxu0  ;;  %v3002_v25 = vmul.f32 %v6686_v47, %v8521_v18 }
 0x23d   : > { %v3386_v6 = vmul.f32 %v7290_v37, %v2486_v21  ;;  %5958 = vmatprep.mubr.f32.mxu1 %v3512_v29  ;;  %v3515_v13 = vadd.f32 %v3387_v19, %v3255_v11  ;;  %v3259_v29 = vadd.f32 %v3131_v56, %v2999_v58  ;;  %v8520_v21 = vld [vmem:[#allocation35_spill] sm:$0xff]  ;;  %v3004_v56 = vmul.f32 %v6686_v47, %v8525_v55  ;;  %v8535_v55 = vld [vmem:[#allocation28_spill] sm:$0xff] }
 0x23e   : > { %v5742_v60 = vpop.f32.mrf.mxu0  ;;  %5959 = vmatmul.mubr.f32.gmra.mxu1 %v3513_v24  ;;  %v8519_v24 = vld [vmem:[#allocation16_spill] sm:$0xff] }
 0x23f   : > { %v3514_v39 = vadd.f32 %v3386_v6, %v3254_v5  ;;  %v3389_v51 = vmul.f32 %v5742_v60, %v7290_v37  ;;  %v3001_v19 = vmul.f32 %v8519_v24, %v6686_v47  ;;  %v3133_v5 = vmul.f32 %v8520_v21, %v6688_v48 }
 0x240   : > { %v2496_v20 = vpop.f32.mrf.mxu0  ;;  %v3134_v60 = vmul.f32 %v6688_v48, %v8522_v62 }
 0x241   : > { %v3388_v3 = vmul.f32 %v7290_v37, %v2496_v20  ;;  %5961 = vmatprep.mubr.f32.mxu1 %v3514_v39  ;;  %v3517_v61 = vadd.f32 %v3389_v51, %v3257_v15  ;;  %v8523_v51 = vld [vmem:[#allocation19_spill] sm:$0xff] }
 0x242   : > { %v5745_v59 = vpop.f32.mrf.mxu0  ;;  %5962 = vmatmul.mubr.f32.gmra.mxu1 %v3515_v13  ;;  %v3261_v13 = vadd.f32 %v3133_v5, %v3001_v19  ;;  %v3003_v20 = vmul.f32 %v8523_v51, %v6686_v47  ;;  %v3262_v58 = vadd.f32 %v3134_v60, %v3002_v25  ;;  %v8529_v5 = vld [vmem:[#allocation27_spill] sm:$0xff]  ;;  %v8532_v25 = vld [vmem:[#allocation53_spill] sm:$0xff] }
 0x243   : > { %v3516_v9 = vadd.f32 %v3388_v3, %v3256_v36  ;;  %v3391_v44 = vmul.f32 %v5745_v59, %v7290_v37  ;;  %v8524_v36 = vld [vmem:[#allocation41_spill] sm:$0xff]  ;;  %v8526_v59 = vld [vmem:[#allocation50_spill] sm:$0xff]  ;;  %v3139_v62 = vmul.f32 %v8532_v25, %v6688_v48 }
 0x244   : > { %v2506_v45 = vpop.f32.mrf.mxu0  ;;  %v3135_v34 = vmul.f32 %v8524_v36, %v6688_v48 }
 0x245   : > { %v3390_v26 = vmul.f32 %v7290_v37, %v2506_v45  ;;  %5964 = vmatprep.mubr.f32.mxu1 %v3516_v9  ;;  %v3519_v23 = vadd.f32 %v3391_v44, %v3259_v29  ;;  %v3136_v9 = vmul.f32 %v6688_v48, %v8526_v59  ;;  %v8527_v45 = vld [vmem:[#allocation22_spill] sm:$0xff]  ;;  %v8536_v59 = vld [vmem:[#allocation59_spill] sm:$0xff] }
 0x246   : > { %v5748_v2 = vpop.f32.mrf.mxu0  ;;  %5965 = vmatmul.mubr.f32.gmra.mxu1 %v3517_v61  ;;  %v3263_v44 = vadd.f32 %v3135_v34, %v3003_v20 }
 0x247   : > { %v3518_v8 = vadd.f32 %v3390_v26, %v3258_v52  ;;  %v3393_v6 = vmul.f32 %v5748_v2, %v7290_v37  ;;  %v3005_v52 = vmul.f32 %v8527_v45, %v6686_v47  ;;  %v7550_v26 = vpop.f32.mrf.mxu1  ;;  %v3264_v21 = vadd.f32 %v3136_v9, %v3004_v56 }
 0x248   : > { %v2516_v11 = vpop.f32.mrf.mxu0  ;;  %v3006_v2 = vmul.f32 %v6686_v47, %v8529_v5  ;;  %v3009_v56 = vmul.f32 %v8535_v55, %v6686_v47  ;;  %v3141_v9 = vmul.f32 %v8536_v59, %v6688_v48 }
 0x249   : > { %v3392_v39 = vmul.f32 %v7290_v37, %v2516_v11  ;;  %5967 = vmatprep.mubr.f32.mxu1 %v3518_v8  ;;  %v3521_v3 = vadd.f32 %v3393_v6, %v3261_v13  ;;  %v8530_v8 = vld [vmem:[#allocation56_spill] sm:$0xff]  ;;  %v3265_v11 = vadd.f32 %v3137_v27, %v3005_v52  ;;  %v7562_v13 = vpop.f32.mrf.mxu1 }
 0x24a   : > { %v5751_v32 = vpop.f32.mrf.mxu0  ;;  %5968 = vmatmul.mubr.f32.gmra.mxu1 %v3519_v23  ;;  %v3138_v23 = vmul.f32 %v6688_v48, %v8530_v8  ;;  %v3269_v5 = vadd.f32 %v3141_v9, %v3009_v56 }
 0x24b   : > { %v3520_v35 = vadd.f32 %v3392_v39, %v3260_v50  ;;  %v3395_v15 = vmul.f32 %v5751_v32, %v7290_v37  ;;  %v8531_v50 = vld [vmem:[#allocation25_spill] sm:$0xff]  ;;  %v8533_v32 = vld [vmem:[#allocation30_spill] sm:$0xff]  ;;  %v7574_v45 = vpop.f32.mrf.mxu1 }
 0x24c   : > { %v2526_v16 = vpop.f32.mrf.mxu0  ;;  %v3007_v18 = vmul.f32 %v8531_v50, %v6686_v47  ;;  %v3266_v34 = vadd.f32 %v3138_v23, %v3006_v2  ;;  %v8539_v2 = vld [vmem:[#allocation31_spill] sm:$0xff]  ;;  %v8540_v23 = vld [vmem:[#allocation65_spill] sm:$0xff] }
 0x24d   : > { %v3394_v61 = vmul.f32 %v7290_v37, %v2526_v16  ;;  %5970 = vmatprep.mubr.f32.mxu1 %v3520_v35  ;;  %v3523_v29 = vadd.f32 %v3395_v15, %v3263_v44  ;;  %v3008_v35 = vmul.f32 %v6686_v47, %v8533_v32  ;;  %v3011_v8 = vmul.f32 %v8539_v2, %v6686_v47 }
 0x24e   : > { %v5754_v54 = vpop.f32.mrf.mxu0  ;;  %5971 = vmatmul.mubr.f32.gmra.mxu1 %v3521_v3  ;;  %v8534_v3 = vld [vmem:[#allocation62_spill] sm:$0xff] }
 0x24f   : > { %v3522_v30 = vadd.f32 %v3394_v61, %v3262_v58  ;;  %v3397_v24 = vmul.f32 %v5754_v54, %v7290_v37  ;;  %v3140_v15 = vmul.f32 %v6688_v48, %v8534_v3  ;;  %v3267_v58 = vadd.f32 %v3139_v62, %v3007_v18  ;;  %v7586_v18 = vpop.f32.mrf.mxu1  ;;  %v8543_v3 = vld [vmem:[#allocation34_spill] sm:$0xff] }
 0x250   : > { %v2536_v19 = vpop.f32.mrf.mxu0 }
 0x251   : > { %v3396_v6 = vmul.f32 %v7290_v37, %v2536_v19  ;;  %5973 = vmatprep.mubr.f32.mxu1 %v3522_v30  ;;  %v3525_v51 = vadd.f32 %v3397_v24, %v3265_v11  ;;  %v3268_v54 = vadd.f32 %v3140_v15, %v3008_v35  ;;  %v8537_v30 = vld [vmem:[#allocation33_spill] sm:$0xff]  ;;  %v8538_v24 = vld [vmem:[#allocation68_spill] sm:$0xff]  ;;  %v3013_v15 = vmul.f32 %v8543_v3, %v6686_v47  ;;  %v7598_v59 = vpop.f32.mrf.mxu1  ;;  %v8552_v3 = vld [vmem:[#allocation83_spill] sm:$0xff] }
 0x252   : > { %v5757_v60 = vpop.f32.mrf.mxu0  ;;  %5974 = vmatmul.mubr.f32.gmra.mxu1 %v3523_v29  ;;  %v3010_v29 = vmul.f32 %v6686_v47, %v8537_v30  ;;  %v3142_v19 = vmul.f32 %v6688_v48, %v8538_v24 }
 0x253   : > { %v3524_v39 = vadd.f32 %v3396_v6, %v3264_v21  ;;  %v3399_v20 = vmul.f32 %v5757_v60, %v7290_v37  ;;  %v3143_v6 = vmul.f32 %v8540_v23, %v6688_v48 }
 0x254   : > { %v2546_v36 = vpop.f32.mrf.mxu0 }
 0x255   : > { %v3398_v16 = vmul.f32 %v7290_v37, %v2546_v36  ;;  %5976 = vmatprep.mubr.f32.mxu1 %v3524_v39  ;;  %v3527_v52 = vadd.f32 %v3399_v20, %v3267_v58  ;;  %v3270_v39 = vadd.f32 %v3142_v19, %v3010_v29  ;;  %v8542_v36 = vld [vmem:[#allocation74_spill] sm:$0xff]  ;;  %v3271_v35 = vadd.f32 %v3143_v6, %v3011_v8  ;;  %v8547_v19 = vld [vmem:[#allocation37_spill] sm:$0xff]  ;;  %v7610_v6 = vpop.f32.mrf.mxu1 }
 0x256   : > { %v5760_v61 = vpop.f32.mrf.mxu0  ;;  %5977 = vmatmul.mubr.f32.gmra.mxu1 %v3525_v51  ;;  %v8541_v51 = vld [vmem:[#allocation36_spill] sm:$0xff] }
 0x257   : > { %v3526_v44 = vadd.f32 %v3398_v16, %v3266_v34  ;;  %v3401_v53 = vmul.f32 %v5760_v61, %v7290_v37  ;;  %v3012_v20 = vmul.f32 %v6686_v47, %v8541_v51  ;;  %v3144_v34 = vmul.f32 %v6688_v48, %v8542_v36  ;;  %v8544_v16 = vld [vmem:[#allocation71_spill] sm:$0xff]  ;;  %v8550_v51 = vld [vmem:[#allocation86_spill] sm:$0xff] }
 0x258   : > { %v2556_v27 = vpop.f32.mrf.mxu0  ;;  %v3145_v58 = vmul.f32 %v8544_v16, %v6688_v48 }
 0x259   : > { %v3400_v21 = vmul.f32 %v7290_v37, %v2556_v27  ;;  %5979 = vmatprep.mubr.f32.mxu1 %v3526_v44  ;;  %v3529_v25 = vadd.f32 %v3401_v53, %v3269_v5  ;;  %v8545_v53 = vld [vmem:[#allocation39_spill] sm:$0xff]  ;;  %v8548_v5 = vld [vmem:[#allocation77_spill] sm:$0xff] }
 0x25a   : > { %v5763_v11 = vpop.f32.mrf.mxu0  ;;  %5980 = vmatmul.mubr.f32.gmra.mxu1 %v3527_v52  ;;  %v3272_v52 = vadd.f32 %v3144_v34, %v3012_v20  ;;  %v3014_v27 = vmul.f32 %v6686_v47, %v8545_v53  ;;  %v3273_v24 = vadd.f32 %v3145_v58, %v3013_v15  ;;  %v3147_v2 = vmul.f32 %v8548_v5, %v6688_v48 }
 0x25b   : > { %v3528_v50 = vadd.f32 %v3400_v21, %v3268_v54  ;;  %v3403_v62 = vmul.f32 %v5763_v11, %v7290_v37  ;;  %v8546_v54 = vld [vmem:[#allocation80_spill] sm:$0xff]  ;;  %v3015_v21 = vmul.f32 %v8547_v19, %v6686_v47  ;;  %v3148_v20 = vmul.f32 %v6688_v48, %v8550_v51  ;;  %v8558_v51 = vld [vmem:[#allocation98_spill] sm:$0xff] }
 0x25c   : > { %v2566_v60 = vpop.f32.mrf.mxu0  ;;  %v3146_v30 = vmul.f32 %v6688_v48, %v8546_v54  ;;  %v3149_v15 = vmul.f32 %v8552_v3, %v6688_v48  ;;  %v8560_v3 = vld [vmem:[#allocation95_spill] sm:$0xff] }
 0x25d   : > { %v3402_v32 = vmul.f32 %v7290_v37, %v2566_v60  ;;  %5982 = vmatprep.mubr.f32.mxu1 %v3528_v50  ;;  %v3531_v9 = vadd.f32 %v3403_v62, %v3271_v35  ;;  %v8549_v60 = vld [vmem:[#allocation42_spill] sm:$0xff]  ;;  %v3275_v34 = vadd.f32 %v3147_v2, %v3015_v21  ;;  %v8556_v21 = vld [vmem:[#allocation89_spill] sm:$0xff] }
 0x25e   : > { %v5766_v55 = vpop.f32.mrf.mxu0  ;;  %5983 = vmatmul.mubr.f32.gmra.mxu1 %v3529_v25  ;;  %v3274_v62 = vadd.f32 %v3146_v30, %v3014_v27  ;;  %v8554_v27 = vld [vmem:[#allocation92_spill] sm:$0xff]  ;;  %v3151_v5 = vmul.f32 %v8556_v21, %v6688_v48 }
 0x25f   : > { %v3530_v56 = vadd.f32 %v3402_v32, %v3270_v39  ;;  %v3405_v61 = vmul.f32 %v5766_v55, %v7290_v37  ;;  %v3016_v39 = vmul.f32 %v6686_v47, %v8549_v60  ;;  %v8551_v32 = vld [vmem:[#allocation40_spill] sm:$0xff]  ;;  %v7622_v55 = vpop.f32.mrf.mxu1  ;;  %v3150_v54 = vmul.f32 %v6688_v48, %v8554_v27 }
 0x260   : > { %v2576_v44 = vpop.f32.mrf.mxu0  ;;  %v3017_v35 = vmul.f32 %v8551_v32, %v6686_v47  ;;  %v8557_v60 = vld [vmem:[#allocation48_spill] sm:$0xff]  ;;  %v8559_v32 = vld [vmem:[#allocation46_spill] sm:$0xff] }
 0x261   : > { %v3404_v29 = vmul.f32 %v7290_v37, %v2576_v44  ;;  %5985 = vmatprep.mubr.f32.mxu1 %v3530_v56  ;;  %v3533_v11 = vadd.f32 %v3405_v61, %v3273_v24  ;;  %v3276_v44 = vadd.f32 %v3148_v20, %v3016_v39  ;;  %v8555_v24 = vld [vmem:[#allocation43_spill] sm:$0xff]  ;;  %v3020_v39 = vmul.f32 %v6686_v47, %v8557_v60 }
 0x262   : > { %v5769_v8 = vpop.f32.mrf.mxu0  ;;  %5986 = vmatmul.mubr.f32.gmra.mxu1 %v3531_v9  ;;  %v3019_v19 = vmul.f32 %v8555_v24, %v6686_v47  ;;  %v3152_v20 = vmul.f32 %v6688_v48, %v8558_v51  ;;  %v8565_v51 = vld [vmem:[#allocation54_spill] sm:$0xff] }
 0x263   : > { %v3532_v23 = vadd.f32 %v3404_v29, %v3272_v52  ;;  %v3407_v50 = vmul.f32 %v5769_v8, %v7290_v37  ;;  %v8553_v52 = vld [vmem:[#allocation45_spill] sm:$0xff]  ;;  %v3277_v29 = vadd.f32 %v3149_v15, %v3017_v35  ;;  %v3021_v35 = vmul.f32 %v8559_v32, %v6686_v47 }
 0x264   : > { %v2586_v25 = vpop.f32.mrf.mxu0  ;;  %v3018_v53 = vmul.f32 %v6686_v47, %v8553_v52  ;;  %v3153_v15 = vmul.f32 %v8560_v3, %v6688_v48  ;;  %v3280_v52 = vadd.f32 %v3152_v20, %v3020_v39  ;;  %v3024_v20 = vmul.f32 %v6686_v47, %v8565_v51  ;;  %v8567_v3 = vld [vmem:[#allocation52_spill] sm:$0xff] }
 0x265   : > { %v3406_v36 = vmul.f32 %v7290_v37, %v2586_v25  ;;  %5988 = vmatprep.mubr.f32.mxu1 %v3532_v23  ;;  %v3535_v56 = vadd.f32 %v3407_v50, %v3275_v34  ;;  %v7634_v23 = vpop.f32.mrf.mxu1  ;;  %v3279_v34 = vadd.f32 %v3151_v5, %v3019_v19  ;;  %v8563_v19 = vld [vmem:[#allocation49_spill] sm:$0xff] }
 0x266   : > { %v5772_v16 = vpop.f32.mrf.mxu0  ;;  %5989 = vmatmul.mubr.f32.gmra.mxu1 %v3533_v11  ;;  %v3281_v24 = vadd.f32 %v3153_v15, %v3021_v35  ;;  %v3023_v21 = vmul.f32 %v8563_v19, %v6686_v47  ;;  %v8564_v5 = vld [vmem:[#allocation101_spill] sm:$0xff]  ;;  %v3025_v15 = vmul.f32 %v8567_v3, %v6686_v47  ;;  %v8574_v3 = vld [vmem:[#allocation122_spill] sm:$0xff] }
 0x267   : > { %v3534_v58 = vadd.f32 %v3406_v36, %v3274_v62  ;;  %v3409_v9 = vmul.f32 %v5772_v16, %v7290_v37  ;;  %v3278_v62 = vadd.f32 %v3150_v54, %v3018_v53  ;;  %v8561_v53 = vld [vmem:[#allocation51_spill] sm:$0xff]  ;;  %v8562_v54 = vld [vmem:[#allocation104_spill] sm:$0xff] }
 0x268   : > { %v2596_v61 = vpop.f32.mrf.mxu0  ;;  %v3022_v27 = vmul.f32 %v6686_v47, %v8561_v53 }
 0x269   : > { %v3408_v30 = vmul.f32 %v7290_v37, %v2596_v61  ;;  %5991 = vmatprep.mubr.f32.mxu1 %v3534_v58  ;;  %v3537_v11 = vadd.f32 %v3409_v9, %v3277_v29 }
 0x26a   : > { %v5775_v2 = vpop.f32.mrf.mxu0  ;;  %5992 = vmatmul.mubr.f32.gmra.mxu1 %v3535_v56  ;;  %v7646_v56 = vpop.f32.mrf.mxu1 }
 0x26b   : > { %v3536_v8 = vadd.f32 %v3408_v30, %v3276_v44  ;;  %v3411_v50 = vmul.f32 %v5775_v2, %v7290_v37  ;;  %v3154_v30 = vmul.f32 %v6688_v48, %v8562_v54  ;;  %v3155_v2 = vmul.f32 %v8564_v5, %v6688_v48 }
 0x26c   : > { %v2606_v25 = vpop.f32.mrf.mxu0 }
 0x26d   : > { %v3410_v36 = vmul.f32 %v7290_v37, %v2606_v25  ;;  %5994 = vmatprep.mubr.f32.mxu1 %v3536_v8  ;;  %v3539_v9 = vadd.f32 %v3411_v50, %v3279_v34  ;;  %v7658_v50 = vpop.f32.mrf.mxu1  ;;  %v3282_v39 = vadd.f32 %v3154_v30, %v3022_v27  ;;  %v3283_v35 = vadd.f32 %v3155_v2, %v3023_v21  ;;  %v8569_v30 = vld [vmem:[#allocation57_spill] sm:$0xff]  ;;  %v8571_v2 = vld [vmem:[#allocation55_spill] sm:$0xff] }
 0x26e   : > { %v5778_v16 = vpop.f32.mrf.mxu0  ;;  %5995 = vmatmul.mubr.f32.gmra.mxu1 %v3537_v11 }
 0x26f   : > { %v3538_v58 = vadd.f32 %v3410_v36, %v3278_v62  ;;  %v3413_v61 = vmul.f32 %v5778_v16, %v7290_v37  ;;  %v8566_v36 = vld [vmem:[#allocation110_spill] sm:$0xff]  ;;  %v8568_v16 = vld [vmem:[#allocation107_spill] sm:$0xff] }
 0x270   : > { %v2616_v44 = vpop.f32.mrf.mxu0  ;;  %v3156_v34 = vmul.f32 %v6688_v48, %v8566_v36 }
 0x271   : > { %v3412_v29 = vmul.f32 %v7290_v37, %v2616_v44  ;;  %5997 = vmatprep.mubr.f32.mxu1 %v3538_v58  ;;  %v3541_v25 = vadd.f32 %v3413_v61, %v3281_v24  ;;  %v3157_v58 = vmul.f32 %v8568_v16, %v6688_v48  ;;  %v7670_v44 = vpop.f32.mrf.mxu1  ;;  %v8570_v24 = vld [vmem:[#allocation116_spill] sm:$0xff] }
 0x272   : > { %v5781_v8 = vpop.f32.mrf.mxu0  ;;  %5998 = vmatmul.mubr.f32.gmra.mxu1 %v3539_v9  ;;  %v3284_v54 = vadd.f32 %v3156_v34, %v3024_v20  ;;  %v3158_v19 = vmul.f32 %v6688_v48, %v8570_v24 }
 0x273   : > { %v3540_v11 = vadd.f32 %v3412_v29, %v3280_v52  ;;  %v3415_v62 = vmul.f32 %v5781_v8, %v7290_v37  ;;  %v3026_v29 = vmul.f32 %v6686_v47, %v8569_v30  ;;  %v3285_v5 = vadd.f32 %v3157_v58, %v3025_v15 }
 0x274   : > { %v2626_v60 = vpop.f32.mrf.mxu0  ;;  %v3027_v8 = vmul.f32 %v8571_v2, %v6686_v47  ;;  %v3160_v15 = vmul.f32 %v6688_v48, %v8574_v3 }
 0x275   : > { %v3414_v32 = vmul.f32 %v7290_v37, %v2626_v60  ;;  %6000 = vmatprep.mubr.f32.mxu1 %v3540_v11  ;;  %v3543_v52 = vadd.f32 %v3415_v62, %v3283_v35  ;;  %v8572_v11 = vld [vmem:[#allocation113_spill] sm:$0xff]  ;;  %v3286_v34 = vadd.f32 %v3158_v19, %v3026_v29 }
 0x276   : > { %v5784_v9 = vpop.f32.mrf.mxu0  ;;  %6001 = vmatmul.mubr.f32.gmra.mxu1 %v3541_v25  ;;  %v3159_v25 = vmul.f32 %v8572_v11, %v6688_v48 }
 0x277   : > { %v3542_v61 = vadd.f32 %v3414_v32, %v3282_v39  ;;  %v3417_v53 = vmul.f32 %v5784_v9, %v7290_v37  ;;  %v7682_v39 = vpop.f32.mrf.mxu1  ;;  %v8573_v32 = vld [vmem:[#allocation60_spill] sm:$0xff]  ;;  %v8575_v9 = vld [vmem:[#allocation58_spill] sm:$0xff] }
 0x278   : > { %v2636_v27 = vpop.f32.mrf.mxu0  ;;  %v3028_v35 = vmul.f32 %v6686_v47, %v8573_v32  ;;  %v3287_v58 = vadd.f32 %v3159_v25, %v3027_v8  ;;  %v8578_v8 = vld [vmem:[#allocation128_spill] sm:$0xff] }
 0x279   : > { %v3416_v21 = vmul.f32 %v7290_v37, %v2636_v27  ;;  %6003 = vmatprep.mubr.f32.mxu1 %v3542_v61  ;;  %v3545_v51 = vadd.f32 %v3417_v53, %v3285_v5  ;;  %v3029_v61 = vmul.f32 %v8575_v9, %v6686_v47  ;;  %v7694_v30 = vpop.f32.mrf.mxu1  ;;  %v8577_v5 = vld [vmem:[#allocation63_spill] sm:$0xff]  ;;  %v3162_v11 = vmul.f32 %v6688_v48, %v8578_v8  ;;  %v8581_v9 = vld [vmem:[#allocation66_spill] sm:$0xff] }
 0x27a   : > { %v5787_v62 = vpop.f32.mrf.mxu0  ;;  %6004 = vmatmul.mubr.f32.gmra.mxu1 %v3543_v52  ;;  %v8576_v52 = vld [vmem:[#allocation119_spill] sm:$0xff]  ;;  %v3030_v2 = vmul.f32 %v6686_v47, %v8577_v5 }
 0x27b   : > { %v3544_v60 = vadd.f32 %v3416_v21, %v3284_v54  ;;  %v3419_v20 = vmul.f32 %v5787_v62, %v7290_v37  ;;  %v3161_v53 = vmul.f32 %v8576_v52, %v6688_v48  ;;  %v3288_v21 = vadd.f32 %v3160_v15, %v3028_v35  ;;  %v7706_v35 = vpop.f32.mrf.mxu1 }
 0x27c   : > { %v2646_v36 = vpop.f32.mrf.mxu0  ;;  %v3032_v52 = vmul.f32 %v6686_v47, %v8581_v9  ;;  %v8588_v9 = vld [vmem:[#allocation137_spill] sm:$0xff] }
 0x27d   : > { %v3418_v16 = vmul.f32 %v7290_v37, %v2646_v36  ;;  %6006 = vmatprep.mubr.f32.mxu1 %v3544_v60  ;;  %v3547_v29 = vadd.f32 %v3419_v20, %v3287_v58  ;;  %v3289_v62 = vadd.f32 %v3161_v53, %v3029_v61  ;;  %v8579_v60 = vld [vmem:[#allocation61_spill] sm:$0xff]  ;;  %v3290_v58 = vadd.f32 %v3162_v11, %v3030_v2  ;;  %v8582_v61 = vld [vmem:[#allocation134_spill] sm:$0xff]  ;;  %v7718_v2 = vpop.f32.mrf.mxu1 }
 0x27e   : > { %v5790_v27 = vpop.f32.mrf.mxu0  ;;  %6007 = vmatmul.mubr.f32.gmra.mxu1 %v3545_v51  ;;  %v3031_v51 = vmul.f32 %v8579_v60, %v6686_v47  ;;  %v8580_v36 = vld [vmem:[#allocation125_spill] sm:$0xff]  ;;  %v3164_v53 = vmul.f32 %v6688_v48, %v8582_v61 }
 0x27f   : > { %v3546_v54 = vadd.f32 %v3418_v16, %v3286_v34  ;;  %v3421_v24 = vmul.f32 %v5790_v27, %v7290_v37  ;;  %v3163_v20 = vmul.f32 %v8580_v36, %v6688_v48  ;;  %v8585_v36 = vld [vmem:[#allocation69_spill] sm:$0xff] }
 0x280   : > { %v2656_v19 = vpop.f32.mrf.mxu0  ;;  %v3292_v60 = vadd.f32 %v3164_v53, %v3032_v52  ;;  %v7730_v52 = vpop.f32.mrf.mxu1 }
 0x281   : > { %v3420_v25 = vmul.f32 %v7290_v37, %v2656_v19  ;;  %6009 = vmatprep.mubr.f32.mxu1 %v3546_v54  ;;  %v3549_v3 = vadd.f32 %v3421_v24, %v3289_v62  ;;  %v3291_v54 = vadd.f32 %v3163_v20, %v3031_v51  ;;  %v8586_v51 = vld [vmem:[#allocation140_spill] sm:$0xff] }
 0x282   : > { %v5793_v34 = vpop.f32.mrf.mxu0  ;;  %6010 = vmatmul.mubr.f32.gmra.mxu1 %v3547_v29  ;;  %v8583_v29 = vld [vmem:[#allocation64_spill] sm:$0xff]  ;;  %v3166_v20 = vmul.f32 %v6688_v48, %v8586_v51  ;;  %v8592_v51 = vld [vmem:[#allocation143_spill] sm:$0xff] }
 0x283   : > { %v3548_v32 = vadd.f32 %v3420_v25, %v3288_v21  ;;  %v3423_v15 = vmul.f32 %v5793_v34, %v7290_v37  ;;  %v3033_v19 = vmul.f32 %v8583_v29, %v6686_v47  ;;  %v8584_v21 = vld [vmem:[#allocation131_spill] sm:$0xff]  ;;  %v3034_v34 = vmul.f32 %v6686_v47, %v8585_v36 }
 0x284   : > { %v2666_v16 = vpop.f32.mrf.mxu0  ;;  %v3165_v24 = vmul.f32 %v8584_v21, %v6688_v48 }
 0x285   : > { %v3422_v27 = vmul.f32 %v7290_v37, %v2666_v16  ;;  %6012 = vmatprep.mubr.f32.mxu1 %v3548_v32  ;;  %v3551_v11 = vadd.f32 %v3423_v15, %v3291_v54  ;;  %v3167_v15 = vmul.f32 %v8588_v9, %v6688_v48  ;;  %v3294_v21 = vadd.f32 %v3166_v20, %v3034_v34  ;;  %v7742_v34 = vpop.f32.mrf.mxu1 }
 0x286   : > { %v5796_v5 = vpop.f32.mrf.mxu0  ;;  %6013 = vmatmul.mubr.f32.gmra.mxu1 %v3549_v3  ;;  %v3293_v16 = vadd.f32 %v3165_v24, %v3033_v19  ;;  %v8587_v3 = vld [vmem:[#allocation67_spill] sm:$0xff]  ;;  %v8590_v19 = vld [vmem:[#allocation146_spill] sm:$0xff] }
 0x287   : > { %v3550_v8 = vadd.f32 %v3422_v27, %v3290_v58  ;;  %v3425_v25 = vmul.f32 %v5796_v5, %v7290_v37  ;;  %v3035_v58 = vmul.f32 %v8587_v3, %v6686_v47  ;;  %v8589_v5 = vld [vmem:[#allocation72_spill] sm:$0xff]  ;;  %v3168_v24 = vmul.f32 %v6688_v48, %v8590_v19 }
 0x288   : > { %v2676_v62 = vpop.f32.mrf.mxu0  ;;  %v8595_v19 = vld [vmem:[#allocation148_spill] sm:$0xff] }
 0x289   : > { %v3424_v32 = vmul.f32 %v7290_v37, %v2676_v62  ;;  %6015 = vmatprep.mubr.f32.mxu1 %v3550_v8  ;;  %v3553_v53 = vadd.f32 %v3425_v25, %v3293_v16  ;;  %v3036_v8 = vmul.f32 %v6686_v47, %v8589_v5  ;;  %v3295_v36 = vadd.f32 %v3167_v15, %v3035_v58  ;;  %v8593_v5 = vld [vmem:[#allocation75_spill] sm:$0xff] }
 0x28a   : > { %v5799_v61 = vpop.f32.mrf.mxu0  ;;  %6016 = vmatmul.mubr.f32.gmra.mxu1 %v3551_v11  ;;  %v8591_v11 = vld [vmem:[#allocation70_spill] sm:$0xff]  ;;  %v3169_v25 = vmul.f32 %v8592_v51, %v6688_v48  ;;  %v3170_v58 = vmul.f32 %v6688_v48, %v7305_v41 }
 0x28b   : > { %v3552_v27 = vadd.f32 %v3424_v32, %v3292_v60  ;;  %v3427_v54 = vmul.f32 %v5799_v61, %v7290_v37  ;;  %v3037_v60 = vmul.f32 %v8591_v11, %v6686_v47  ;;  %v3296_v61 = vadd.f32 %v3168_v24, %v3036_v8  ;;  %v7754_v8 = vpop.f32.mrf.mxu1 }
 0x28c   : > { %v2686_v29 = vpop.f32.mrf.mxu0 }
 0x28d   : > { %v3426_v62 = vmul.f32 %v7290_v37, %v2686_v29  ;;  %6018 = vmatprep.mubr.f32.mxu1 %v3552_v27  ;;  %v3555_v20 = vadd.f32 %v3427_v54, %v3295_v36  ;;  %v3038_v27 = vmul.f32 %v6686_v47, %v8593_v5  ;;  %v3297_v29 = vadd.f32 %v3169_v25, %v3037_v60 }
 0x28e   : > { %v5802_v32 = vpop.f32.mrf.mxu0  ;;  %6019 = vmatmul.mubr.f32.gmra.mxu1 %v3553_v53  ;;  %v8594_v53 = vld [vmem:[#allocation73_spill] sm:$0xff]  ;;  %v3171_v54 = vmul.f32 %v8595_v19, %v6688_v48  ;;  %v3172_v60 = vmul.f32 %v6688_v48, %v7321_v14 }
 0x28f   : > { %v3554_v16 = vadd.f32 %v3426_v62, %v3294_v21  ;;  %v3429_v3 = vmul.f32 %v5802_v32, %v7290_v37  ;;  %v3039_v21 = vmul.f32 %v8594_v53, %v6686_v47  ;;  %v3298_v41 = vadd.f32 %v3170_v58, %v3038_v27  ;;  %v8596_v32 = vld [vmem:[#allocation78_spill] sm:$0xff]  ;;  %v7766_v27 = vpop.f32.mrf.mxu1  ;;  %v8598_v19 = vld [vmem:[#allocation81_spill] sm:$0xff] }
 0x290   : > { %v2696_v9 = vpop.f32.mrf.mxu0 }
 0x291   : > { %v3428_v15 = vmul.f32 %v7290_v37, %v2696_v9  ;;  %6021 = vmatprep.mubr.f32.mxu1 %v3554_v16  ;;  %v3557_v24 = vadd.f32 %v3429_v3, %v3297_v29  ;;  %v3040_v16 = vmul.f32 %v6686_v47, %v8596_v32  ;;  %v3299_v9 = vadd.f32 %v3171_v54, %v3039_v21  ;;  %v7778_v32 = vpop.f32.mrf.mxu1 }
 0x292   : > { %v5805_v62 = vpop.f32.mrf.mxu0  ;;  %6022 = vmatmul.mubr.f32.gmra.mxu1 %v3555_v20  ;;  %v8597_v20 = vld [vmem:[#allocation76_spill] sm:$0xff]  ;;  %v3173_v3 = vmul.f32 %v7313_v7, %v6688_v48  ;;  %v3174_v21 = vmul.f32 %v6688_v48, %v7337_v38 }
 0x293   : > { %v3556_v36 = vadd.f32 %v3428_v15, %v3296_v61  ;;  %v3431_v11 = vmul.f32 %v5805_v62, %v7290_v37  ;;  %v3041_v61 = vmul.f32 %v8597_v20, %v6686_v47  ;;  %v3300_v14 = vadd.f32 %v3172_v60, %v3040_v16 }
 0x294   : > { %v2706_v51 = vpop.f32.mrf.mxu0  ;;  %v3042_v62 = vmul.f32 %v6686_v47, %v8598_v19 }
 0x295   : > { %v3430_v25 = vmul.f32 %v7290_v37, %v2706_v51  ;;  %6024 = vmatprep.mubr.f32.mxu1 %v3556_v36  ;;  %v3559_v58 = vadd.f32 %v3431_v11, %v3299_v9  ;;  %v3301_v7 = vadd.f32 %v3173_v3, %v3041_v61  ;;  %v8599_v36 = vld [vmem:[#allocation79_spill] sm:$0xff]  ;;  %v3175_v11 = vmul.f32 %v7329_v63, %v6688_v48  ;;  %v8600_v9 = vld [vmem:[#allocation84_spill] sm:$0xff] }
 0x296   : > { %v5808_v5 = vpop.f32.mrf.mxu0  ;;  %6025 = vmatmul.mubr.f32.gmra.mxu1 %v3557_v24  ;;  %v3043_v24 = vmul.f32 %v8599_v36, %v6686_v47  ;;  %v3302_v38 = vadd.f32 %v3174_v21, %v3042_v62  ;;  %v3044_v20 = vmul.f32 %v6686_v47, %v8600_v9  ;;  %v3176_v61 = vmul.f32 %v6688_v48, %v7353_v31 }
 0x297   : > { %v3558_v15 = vadd.f32 %v3430_v25, %v3298_v41  ;;  %v3433_v29 = vmul.f32 %v5808_v5, %v7290_v37  ;;  %v8601_v5 = vld [vmem:[#allocation82_spill] sm:$0xff]  ;;  %v3178_v36 = vmul.f32 %v6688_v48, %v7384_v17 }
 0x298   : > { %v2716_v53 = vpop.f32.mrf.mxu0  ;;  %v3303_v63 = vadd.f32 %v3175_v11, %v3043_v24  ;;  %v3304_v31 = vadd.f32 %v3176_v61, %v3044_v20  ;;  %v8603_v11 = vld [vmem:[#allocation85_spill] sm:$0xff]  ;;  %v8604_v61 = vld [vmem:[#allocation90_spill] sm:$0xff] }
 0x299   : > { %v3432_v54 = vmul.f32 %v7290_v37, %v2716_v53  ;;  %6027 = vmatprep.mubr.f32.mxu1 %v3558_v15  ;;  %v3561_v16 = vadd.f32 %v3433_v29, %v3301_v7  ;;  %v3045_v15 = vmul.f32 %v8601_v5, %v6686_v47 }
 0x29a   : > { %v5811_v51 = vpop.f32.mrf.mxu0  ;;  %6028 = vmatmul.mubr.f32.gmra.mxu1 %v3559_v58  ;;  %v3177_v58 = vmul.f32 %v7345_v33, %v6688_v48 }
 0x29b   : > { %v3560_v41 = vadd.f32 %v3432_v54, %v3300_v14  ;;  %v3435_v60 = vmul.f32 %v5811_v51, %v7290_v37  ;;  %v7790_v14 = vpop.f32.mrf.mxu1  ;;  %v8602_v54 = vld [vmem:[#allocation87_spill] sm:$0xff]  ;;  %v3047_v51 = vmul.f32 %v8603_v11, %v6686_v47 }
 0x29c   : > { %v2726_v25 = vpop.f32.mrf.mxu0  ;;  %v3046_v7 = vmul.f32 %v6686_v47, %v8602_v54  ;;  %v3305_v33 = vadd.f32 %v3177_v58, %v3045_v15  ;;  %v8605_v15 = vld [vmem:[#allocation88_spill] sm:$0xff]  ;;  %v8607_v11 = vld [vmem:[#allocation91_spill] sm:$0xff] }
 0x29d   : > { %v3434_v3 = vmul.f32 %v7290_v37, %v2726_v25  ;;  %6030 = vmatprep.mubr.f32.mxu1 %v3560_v41  ;;  %v3563_v19 = vadd.f32 %v3435_v60, %v3303_v63  ;;  %v3179_v41 = vmul.f32 %v7369_v1, %v6688_v48  ;;  %v7802_v25 = vpop.f32.mrf.mxu1  ;;  %v3180_v63 = vmul.f32 %v6688_v48, %v7412_v46 }
 0x29e   : > { %v5814_v29 = vpop.f32.mrf.mxu0  ;;  %6031 = vmatmul.mubr.f32.gmra.mxu1 %v3561_v16  ;;  %v3306_v17 = vadd.f32 %v3178_v36, %v3046_v7  ;;  %v3049_v58 = vmul.f32 %v8605_v15, %v6686_v47  ;;  %v8606_v7 = vld [vmem:[#allocation93_spill] sm:$0xff] }
 0x29f   : > { %v3562_v53 = vadd.f32 %v3434_v3, %v3302_v38  ;;  %v3437_v62 = vmul.f32 %v5814_v29, %v7290_v37  ;;  %v3048_v3 = vmul.f32 %v6686_v47, %v8604_v61  ;;  %v3307_v1 = vadd.f32 %v3179_v41, %v3047_v51  ;;  %v8608_v61 = vld [vmem:[#allocation96_spill] sm:$0xff] }
 0x2a0   : > { %v2736_v21 = vpop.f32.mrf.mxu0  ;;  %v3181_v29 = vmul.f32 %v7398_v42, %v6688_v48  ;;  %v3050_v36 = vmul.f32 %v6686_v47, %v8606_v7  ;;  %v3051_v51 = vmul.f32 %v8607_v11, %v6686_v47  ;;  %v3183_v41 = vmul.f32 %v7426_v0, %v6688_v48 }
 0x2a1   : > { %v3436_v24 = vmul.f32 %v7290_v37, %v2736_v21  ;;  %6033 = vmatprep.mubr.f32.mxu1 %v3562_v53  ;;  %v3565_v38 = vadd.f32 %v3437_v62, %v3305_v33  ;;  %v7814_v62 = vpop.f32.mrf.mxu1  ;;  %v3308_v46 = vadd.f32 %v3180_v63, %v3048_v3  ;;  %v3052_v3 = vmul.f32 %v6686_v47, %v8608_v61 }
 0x2a2   : > { %v5817_v16 = vpop.f32.mrf.mxu0  ;;  %6034 = vmatmul.mubr.f32.gmra.mxu1 %v3563_v19  ;;  %v3309_v42 = vadd.f32 %v3181_v29, %v3049_v58  ;;  %v3184_v63 = vmul.f32 %v6688_v48, %v7466_v43  ;;  %v3311_v0 = vadd.f32 %v3183_v41, %v3051_v51  ;;  %v3185_v58 = vmul.f32 %v7454_v12, %v6688_v48 }
 0x2a3   : > { %v3564_v60 = vadd.f32 %v3436_v24, %v3304_v31  ;;  %v3439_v9 = vmul.f32 %v5817_v16, %v7290_v37  ;;  %v3182_v24 = vmul.f32 %v6688_v48, %v7440_v4  ;;  %v3187_v11 = vmul.f32 %v7478_v57, %v6688_v48 }
 0x2a4   : > { %v2746_v20 = vpop.f32.mrf.mxu0  ;;  %v3312_v43 = vadd.f32 %v3184_v63, %v3052_v3  ;;  %v3188_v61 = vmul.f32 %v6688_v48, %v7514_v10  ;;  %v8613_v63 = vld [vmem:[#allocation100_spill] sm:$0xff] }
 0x2a5   : > { %v3438_v5 = vmul.f32 %v7290_v37, %v2746_v20  ;;  %6036 = vmatprep.mubr.f32.mxu1 %v3564_v60  ;;  %v3567_v21 = vadd.f32 %v3439_v9, %v3307_v1  ;;  %v3310_v4 = vadd.f32 %v3182_v24, %v3050_v36  ;;  %v8609_v1 = vld [vmem:[#allocation94_spill] sm:$0xff]  ;;  %v3186_v36 = vmul.f32 %v6688_v48, %v7490_v49 }
 0x2a6   : > { %v5820_v53 = vpop.f32.mrf.mxu0  ;;  %6037 = vmatmul.mubr.f32.gmra.mxu1 %v3565_v38  ;;  %v7826_v38 = vpop.f32.mrf.mxu1  ;;  %v3053_v15 = vmul.f32 %v8609_v1, %v6686_v47 }
 0x2a7   : > { %v3566_v19 = vadd.f32 %v3438_v5, %v3306_v17  ;;  %v3441_v31 = vmul.f32 %v5820_v53, %v7290_v37 }
 0x2a8   : > { %v2756_v54 = vpop.f32.mrf.mxu0  ;;  %v3313_v12 = vadd.f32 %v3185_v58, %v3053_v15 }
 0x2a9   : > { %v3440_v33 = vmul.f32 %v7290_v37, %v2756_v54  ;;  %6039 = vmatprep.mubr.f32.mxu1 %v3566_v19  ;;  %v3569_v9 = vadd.f32 %v3441_v31, %v3309_v42  ;;  %v7838_v19 = vpop.f32.mrf.mxu1 }
 0x2aa   : > { %v5823_v16 = vpop.f32.mrf.mxu0  ;;  %6040 = vmatmul.mubr.f32.gmra.mxu1 %v3567_v21 }
 0x2ab   : > { %v3568_v60 = vadd.f32 %v3440_v33, %v3308_v46  ;;  %v3443_v20 = vmul.f32 %v5823_v16, %v7290_v37  ;;  %v8610_v46 = vld [vmem:[#allocation99_spill] sm:$0xff]  ;;  %v8611_v33 = vld [vmem:[#allocation97_spill] sm:$0xff]  ;;  %v7850_v16 = vpop.f32.mrf.mxu1 }
 0x2ac   : > { %v2766_v17 = vpop.f32.mrf.mxu0  ;;  %v3054_v7 = vmul.f32 %v6686_v47, %v8610_v46  ;;  %v3055_v42 = vmul.f32 %v8611_v33, %v6686_v47 }
 0x2ad   : > { %v3442_v5 = vmul.f32 %v7290_v37, %v2766_v17  ;;  %6042 = vmatprep.mubr.f32.mxu1 %v3568_v60  ;;  %v3571_v21 = vadd.f32 %v3443_v20, %v3311_v0  ;;  %v8612_v17 = vld [vmem:[#allocation102_spill] sm:$0xff]  ;;  %v3189_v0 = vmul.f32 %v7502_v40, %v6688_v48  ;;  %v7862_v58 = vpop.f32.mrf.mxu1 }
 0x2ae   : > { %v5826_v29 = vpop.f32.mrf.mxu0  ;;  %6043 = vmatmul.mubr.f32.gmra.mxu1 %v3569_v9  ;;  %v3314_v49 = vadd.f32 %v3186_v36, %v3054_v7  ;;  %v3315_v57 = vadd.f32 %v3187_v11, %v3055_v42  ;;  %v8615_v7 = vld [vmem:[#allocation103_spill] sm:$0xff]  ;;  %v8616_v42 = vld [vmem:[#allocation108_spill] sm:$0xff] }
 0x2af   : > { %v3570_v53 = vadd.f32 %v3442_v5, %v3310_v4  ;;  %v3445_v31 = vmul.f32 %v5826_v29, %v7290_v37  ;;  %v3056_v4 = vmul.f32 %v6686_v47, %v8612_v17  ;;  %v3057_v5 = vmul.f32 %v8613_v63, %v6686_v47 }
 0x2b0   : > { %v2776_v54 = vpop.f32.mrf.mxu0  ;;  %v3059_v36 = vmul.f32 %v8615_v7, %v6686_v47  ;;  %v3060_v11 = vmul.f32 %v6686_v47, %v8616_v42  ;;  %v3195_v7 = vmul.f32 %v7574_v45, %v6688_v48 }
 0x2b1   : > { %v3444_v24 = vmul.f32 %v7290_v37, %v2776_v54  ;;  %6045 = vmatprep.mubr.f32.mxu1 %v3570_v53  ;;  %v3573_v60 = vadd.f32 %v3445_v31, %v3313_v12  ;;  %v8614_v31 = vld [vmem:[#allocation105_spill] sm:$0xff]  ;;  %v3317_v46 = vadd.f32 %v3189_v0, %v3057_v5 }
 0x2b2   : > { %v5829_v51 = vpop.f32.mrf.mxu0  ;;  %6046 = vmatmul.mubr.f32.gmra.mxu1 %v3571_v21  ;;  %v3316_v21 = vadd.f32 %v3188_v61, %v3056_v4  ;;  %v3058_v54 = vmul.f32 %v6686_v47, %v8614_v31  ;;  %v8617_v4 = vld [vmem:[#allocation106_spill] sm:$0xff]  ;;  %v3194_v31 = vmul.f32 %v6688_v48, %v7586_v18 }
 0x2b3   : > { %v3572_v41 = vadd.f32 %v3444_v24, %v3312_v43  ;;  %v3447_v9 = vmul.f32 %v5829_v51, %v7290_v37  ;;  %v3190_v43 = vmul.f32 %v6688_v48, %v7538_v28  ;;  %v3191_v24 = vmul.f32 %v7526_v22, %v6688_v48  ;;  %v7881_v51 = vpop.f32.mrf.mxu1  ;;  %v7887_v22 = vld [vmem:[%s8352_s7] ss:$0 sm:$0xff] }
 0x2b4   : > { %v2786_v20 = vpop.f32.mrf.mxu0  ;;  %v3192_v28 = vmul.f32 %v6688_v48, %v7562_v13  ;;  %v3061_v61 = vmul.f32 %v8617_v4, %v6686_v47  ;;  %v3193_v13 = vmul.f32 %v7550_v26, %v6688_v48  ;;  %v8621_v4 = vld [vmem:[#allocation112_spill] sm:$0xff] }
 0x2b5   : > { %v3446_v3 = vmul.f32 %v7290_v37, %v2786_v20  ;;  %6048 = vmatprep.mubr.f32.mxu1 %v3572_v41  ;;  %v3575_v29 = vadd.f32 %v3447_v9, %v3315_v57  ;;  %v3318_v20 = vadd.f32 %v3190_v43, %v3058_v54  ;;  %v3319_v17 = vadd.f32 %v3191_v24, %v3059_v36 }
 0x2b6   : > { %v5832_v1 = vpop.f32.mrf.mxu0  ;;  %6049 = vmatmul.mubr.f32.gmra.mxu1 %v3573_v60  ;;  %v3320_v0 = vadd.f32 %v3192_v28, %v3060_v11  ;;  %v3321_v43 = vadd.f32 %v3193_v13, %v3061_v61  ;;  %v3196_v11 = vmul.f32 %v6688_v48, %v7610_v6  ;;  %v3065_v61 = vmul.f32 %v8621_v4, %v6686_v47 }
 0x2b7   : > { %v3574_v15 = vadd.f32 %v3446_v3, %v3314_v49  ;;  %v3449_v53 = vmul.f32 %v5832_v1, %v7290_v37  ;;  %v3197_v6 = vmul.f32 %v7598_v59, %v6688_v48  ;;  %v3198_v59 = vmul.f32 %v6688_v48, %v7634_v23 }
 0x2b8   : > { %v2796_v10 = vpop.f32.mrf.mxu0 }
 0x2b9   : > { %v3448_v40 = vmul.f32 %v7290_v37, %v2796_v10  ;;  %6051 = vmatprep.mubr.f32.mxu1 %v3574_v15  ;;  %v3577_v41 = vadd.f32 %v3449_v53, %v3317_v46  ;;  %v8618_v10 = vld [vmem:[#allocation111_spill] sm:$0xff] }
 0x2ba   : > { %v5835_v12 = vpop.f32.mrf.mxu0  ;;  %6052 = vmatmul.mubr.f32.gmra.mxu1 %v3575_v29 }
 0x2bb   : > { %v3576_v33 = vadd.f32 %v3448_v40, %v3316_v21  ;;  %v3451_v60 = vmul.f32 %v5835_v12, %v7290_v37  ;;  %v3062_v21 = vmul.f32 %v6686_v47, %v8618_v10  ;;  %v8619_v40 = vld [vmem:[#allocation109_spill] sm:$0xff] }
 0x2bc   : > { %v2806_v9 = vpop.f32.mrf.mxu0  ;;  %v3063_v46 = vmul.f32 %v8619_v40, %v6686_v47  ;;  %v3199_v40 = vmul.f32 %v7622_v55, %v6688_v48 }
 0x2bd   : > { %v3450_v49 = vmul.f32 %v7290_v37, %v2806_v9  ;;  %6054 = vmatprep.mubr.f32.mxu1 %v3576_v33  ;;  %v3579_v1 = vadd.f32 %v3451_v60, %v3319_v17  ;;  %v8620_v33 = vld [vmem:[#allocation114_spill] sm:$0xff]  ;;  %v3322_v45 = vadd.f32 %v3194_v31, %v3062_v21 }
 0x2be   : > { %v5838_v3 = vpop.f32.mrf.mxu0  ;;  %v5912_v57 = vpop.f32.mrf.mxu1  ;;  %6055 = vmatmul.mubr.f32.gmra.mxu1 %v3577_v41  ;;  %v3064_v42 = vmul.f32 %v6686_v47, %v8620_v33  ;;  %v3323_v17 = vadd.f32 %v3195_v7, %v3063_v46 }
 0x2bf   : > { %v3578_v63 = vadd.f32 %v3450_v49, %v3318_v20  ;;  %v3703_v5 = vadd.f32 %v5912_v57, %v7887_v22  ;;  %v3453_v15 = vmul.f32 %v5838_v3, %v7290_v37 }
 0x2c0   : > { %v2816_v29 = vpop.f32.mrf.mxu0  ;;  %v3697_v53 = vpop.f32.mrf.mxu1 }
 0x2c1   : > { %4337 = vst [vmem:[%s7900_s16 + $0x8] sm:$0xff] %v3703_v5  ;;  %v3452_v26 = vmul.f32 %v7290_v37, %v2816_v29  ;;  %v3698_v54 = vadd.f32 %v7887_v22, %v3697_v53  ;;  %6057 = vmatprep.mubr.f32.mxu1 %v3578_v63  ;;  %v3581_v28 = vadd.f32 %v3453_v15, %v3321_v43  ;;  %v8622_v53 = vld [vmem:[#allocation117_spill] sm:$0xff] }
 0x2c2   : > { %v5841_v36 = vpop.f32.mrf.mxu0  ;;  %v5915_v18 = vpop.f32.mrf.mxu1  ;;  %6058 = vmatmul.mubr.f32.gmra.mxu1 %v3579_v1  ;;  %v3324_v5 = vadd.f32 %v3196_v11, %v3064_v42  ;;  %v3066_v10 = vmul.f32 %v6686_v47, %v8622_v53  ;;  %v8627_v53 = vld [vmem:[#allocation121_spill] sm:$0xff] }
 0x2c3   : > { %v3580_v24 = vadd.f32 %v3452_v26, %v3320_v0  ;;  %4336 = vst [vmem:[%s7900_s16] sm:$0xff] %v3698_v54  ;;  %v3713_v12 = vadd.f32 %v5915_v18, %v7887_v22  ;;  %v3455_v41 = vmul.f32 %v5841_v36, %v7290_v37  ;;  %v3325_v26 = vadd.f32 %v3197_v6, %v3065_v61  ;;  %v8623_v54 = vld [vmem:[#allocation115_spill] sm:$0xff]  ;;  %v8624_v18 = vld [vmem:[#allocation120_spill] sm:$0xff] }
 0x2c4   : > { %v2826_v60 = vpop.f32.mrf.mxu0  ;;  %v3707_v9 = vpop.f32.mrf.mxu1  ;;  %v3067_v43 = vmul.f32 %v8623_v54, %v6686_v47  ;;  %v3326_v55 = vadd.f32 %v3198_v59, %v3066_v10  ;;  %v3071_v10 = vmul.f32 %v8627_v53, %v6686_v47  ;;  %v3203_v59 = vmul.f32 %v7670_v44, %v6688_v48  ;;  %v8628_v54 = vld [vmem:[#allocation126_spill] sm:$0xff] }
 0x2c5   : > { %4339 = vst [vmem:[%s7900_s16 + $0x18] sm:$0xff] %v3713_v12  ;;  %v3454_v20 = vmul.f32 %v7290_v37, %v2826_v60  ;;  %v3708_v49 = vadd.f32 %v7887_v22, %v3707_v9  ;;  %6060 = vmatprep.mubr.f32.mxu1 %v3580_v24  ;;  %v3583_v0 = vadd.f32 %v3455_v41, %v3323_v17 }
 0x2c6   : > { %v5844_v13 = vpop.f32.mrf.mxu0  ;;  %v5918_v3 = vpop.f32.mrf.mxu1  ;;  %6061 = vmatmul.mubr.f32.gmra.mxu1 %v3581_v28  ;;  %v3068_v24 = vmul.f32 %v6686_v47, %v8624_v18  ;;  %v3200_v12 = vmul.f32 %v6688_v48, %v7658_v50  ;;  %v3327_v9 = vadd.f32 %v3199_v40, %v3067_v43  ;;  %v3201_v50 = vmul.f32 %v7646_v56, %v6688_v48 }
 0x2c7   : > { %v3582_v57 = vadd.f32 %v3454_v20, %v3322_v45  ;;  %4338 = vst [vmem:[%s7900_s16 + $0x10] sm:$0xff] %v3708_v49  ;;  %v3723_v63 = vadd.f32 %v5918_v3, %v7887_v22  ;;  %v3457_v1 = vmul.f32 %v5844_v13, %v7290_v37  ;;  %v8625_v45 = vld [vmem:[#allocation118_spill] sm:$0xff]  ;;  %v3202_v56 = vmul.f32 %v6688_v48, %v7682_v39 }
 0x2c8   : > { %v2836_v15 = vpop.f32.mrf.mxu0  ;;  %v3717_v29 = vpop.f32.mrf.mxu1  ;;  %v3069_v20 = vmul.f32 %v8625_v45, %v6686_v47  ;;  %v3328_v6 = vadd.f32 %v3200_v12, %v3068_v24  ;;  %v3072_v43 = vmul.f32 %v6686_v47, %v8628_v54  ;;  %v3204_v40 = vmul.f32 %v6688_v48, %v7706_v35 }
 0x2c9   : > { %4341 = vst [vmem:[%s7900_s16 + $0x28] sm:$0xff] %v3723_v63  ;;  %v3456_v21 = vmul.f32 %v7290_v37, %v2836_v15  ;;  %v3718_v31 = vadd.f32 %v7887_v22, %v3717_v29  ;;  %6063 = vmatprep.mubr.f32.mxu1 %v3582_v57  ;;  %v3585_v33 = vadd.f32 %v3457_v1, %v3325_v26 }
 0x2ca   : > { %v5847_v46 = vpop.f32.mrf.mxu0  ;;  %v5921_v7 = vpop.f32.mrf.mxu1  ;;  %6064 = vmatmul.mubr.f32.gmra.mxu1 %v3583_v0  ;;  %v3329_v29 = vadd.f32 %v3201_v50, %v3069_v20  ;;  %v3331_v12 = vadd.f32 %v3203_v59, %v3071_v10  ;;  %v3205_v35 = vmul.f32 %v7694_v30, %v6688_v48  ;;  %v3206_v30 = vmul.f32 %v6688_v48, %v7730_v52 }
 0x2cb   : > { %v3584_v36 = vadd.f32 %v3456_v21, %v3324_v5  ;;  %4340 = vst [vmem:[%s7900_s16 + $0x20] sm:$0xff] %v3718_v31  ;;  %v3733_v23 = vadd.f32 %v5921_v7, %v7887_v22  ;;  %v3459_v42 = vmul.f32 %v5847_v46, %v7290_v37  ;;  %v8626_v5 = vld [vmem:[#allocation123_spill] sm:$0xff] }
 0x2cc   : > { %v2846_v11 = vpop.f32.mrf.mxu0  ;;  %v3727_v28 = vpop.f32.mrf.mxu1  ;;  %v3070_v0 = vmul.f32 %v6686_v47, %v8626_v5 }
 0x2cd   : > { %4343 = vst [vmem:[%s7900_s16 + $0x38] sm:$0xff] %v3733_v23  ;;  %v3458_v41 = vmul.f32 %v7290_v37, %v2846_v11  ;;  %v3728_v60 = vadd.f32 %v7887_v22, %v3727_v28  ;;  %6066 = vmatprep.mubr.f32.mxu1 %v3584_v36  ;;  %v3587_v13 = vadd.f32 %v3459_v42, %v3327_v9 }
 0x2ce   : > { %v5850_v49 = vpop.f32.mrf.mxu0  ;;  %v5924_v17 = vpop.f32.mrf.mxu1  ;;  %6067 = vmatmul.mubr.f32.gmra.mxu1 %v3585_v33  ;;  %v3330_v44 = vadd.f32 %v3202_v56, %v3070_v0  ;;  %v8629_v33 = vld [vmem:[#allocation124_spill] sm:$0xff] }
 0x2cf   : > { %v3586_v4 = vadd.f32 %v3458_v41, %v3326_v55  ;;  %4342 = vst [vmem:[%s7900_s16 + $0x30] sm:$0xff] %v3728_v60  ;;  %v3743_v61 = vadd.f32 %v5924_v17, %v7887_v22  ;;  %v3461_v3 = vmul.f32 %v5850_v49, %v7290_v37  ;;  %v3073_v42 = vmul.f32 %v8629_v33, %v6686_v47  ;;  %v8630_v49 = vld [vmem:[#allocation129_spill] sm:$0xff]  ;;  %v8632_v56 = vld [vmem:[#allocation132_spill] sm:$0xff] }
 0x2d0   : > { %v2856_v57 = vpop.f32.mrf.mxu0  ;;  %v3737_v63 = vpop.f32.mrf.mxu1  ;;  %v3332_v60 = vadd.f32 %v3204_v40, %v3072_v43  ;;  %v3074_v17 = vmul.f32 %v6686_v47, %v8630_v49  ;;  %v3212_v49 = vmul.f32 %v6688_v48, %v7802_v25  ;;  %v3213_v25 = vmul.f32 %v7790_v14, %v6688_v48 }
 0x2d1   : > { %4345 = vst [vmem:[%s7900_s16 + $0x48] sm:$0xff] %v3743_v61  ;;  %v3460_v1 = vmul.f32 %v7290_v37, %v2856_v57  ;;  %v3738_v15 = vadd.f32 %v7887_v22, %v3737_v63  ;;  %6069 = vmatprep.mubr.f32.mxu1 %v3586_v4  ;;  %v3589_v46 = vadd.f32 %v3461_v3, %v3329_v29 }
 0x2d2   : > { %v5853_v21 = vpop.f32.mrf.mxu0  ;;  %v5927_v31 = vpop.f32.mrf.mxu1  ;;  %6070 = vmatmul.mubr.f32.gmra.mxu1 %v3587_v13  ;;  %v8631_v13 = vld [vmem:[#allocation127_spill] sm:$0xff]  ;;  %v3207_v57 = vmul.f32 %v7718_v2, %v6688_v48  ;;  %v3334_v2 = vadd.f32 %v3206_v30, %v3074_v17  ;;  %v3214_v14 = vmul.f32 %v6688_v48, %v7826_v38 }
 0x2d3   : > { %v3588_v26 = vadd.f32 %v3460_v1, %v3328_v6  ;;  %4344 = vst [vmem:[%s7900_s16 + $0x40] sm:$0xff] %v3738_v15  ;;  %v3753_v39 = vadd.f32 %v5927_v31, %v7887_v22  ;;  %v3463_v7 = vmul.f32 %v5853_v21, %v7290_v37  ;;  %v3333_v6 = vadd.f32 %v3205_v35, %v3073_v42 }
 0x2d4   : > { %v2866_v36 = vpop.f32.mrf.mxu0  ;;  %v3747_v23 = vpop.f32.mrf.mxu1  ;;  %v3075_v3 = vmul.f32 %v8631_v13, %v6686_v47  ;;  %v3076_v1 = vmul.f32 %v6686_v47, %v8632_v56  ;;  %v3208_v15 = vmul.f32 %v6688_v48, %v7754_v8  ;;  %v3209_v8 = vmul.f32 %v7742_v34, %v6688_v48 }
 0x2d5   : > { %4347 = vst [vmem:[%s7900_s16 + $0x58] sm:$0xff] %v3753_v39  ;;  %v3462_v18 = vmul.f32 %v7290_v37, %v2866_v36  ;;  %v3748_v24 = vadd.f32 %v7887_v22, %v3747_v23  ;;  %6072 = vmatprep.mubr.f32.mxu1 %v3588_v26  ;;  %v3591_v9 = vadd.f32 %v3463_v7, %v3331_v12  ;;  %v8633_v39 = vld [vmem:[#allocation130_spill] sm:$0xff]  ;;  %v8634_v12 = vld [vmem:[#allocation135_spill] sm:$0xff] }
 0x2d6   : > { %v5856_v11 = vpop.f32.mrf.mxu0  ;;  %v5930_v28 = vpop.f32.mrf.mxu1  ;;  %6073 = vmatmul.mubr.f32.gmra.mxu1 %v3589_v46  ;;  %v3335_v26 = vadd.f32 %v3207_v57, %v3075_v3  ;;  %v3077_v54 = vmul.f32 %v8633_v39, %v6686_v47  ;;  %v3336_v36 = vadd.f32 %v3208_v15, %v3076_v1  ;;  %v3078_v33 = vmul.f32 %v6686_v47, %v8634_v12  ;;  %v8637_v57 = vld [vmem:[#allocation136_spill] sm:$0xff]  ;;  %v8639_v39 = vld [vmem:[#allocation139_spill] sm:$0xff] }
 0x2d7   : > { %v3590_v55 = vadd.f32 %v3462_v18, %v3330_v44  ;;  %4346 = vst [vmem:[%s7900_s16 + $0x50] sm:$0xff] %v3748_v24  ;;  %v3763_v41 = vadd.f32 %v5930_v28, %v7887_v22  ;;  %v3465_v45 = vmul.f32 %v5856_v11, %v7290_v37  ;;  %v3210_v34 = vmul.f32 %v6688_v48, %v7778_v32  ;;  %v8635_v28 = vld [vmem:[#allocation133_spill] sm:$0xff] }
 0x2d8   : > { %v2876_v20 = vpop.f32.mrf.mxu0  ;;  %v3757_v50 = vpop.f32.mrf.mxu1  ;;  %v3337_v11 = vadd.f32 %v3209_v8, %v3077_v54  ;;  %v3083_v54 = vmul.f32 %v8639_v39, %v6686_v47  ;;  %v3215_v8 = vmul.f32 %v7814_v62, %v6688_v48 }
 0x2d9   : > { %4349 = vst [vmem:[%s7900_s16 + $0x68] sm:$0xff] %v3763_v41  ;;  %v3464_v4 = vmul.f32 %v7290_v37, %v2876_v20  ;;  %v3758_v61 = vadd.f32 %v7887_v22, %v3757_v50  ;;  %6075 = vmatprep.mubr.f32.mxu1 %v3590_v55  ;;  %v3593_v29 = vadd.f32 %v3465_v45, %v3333_v6  ;;  %v8636_v20 = vld [vmem:[#allocation138_spill] sm:$0xff] }
 0x2da   : > { %v5859_v63 = vpop.f32.mrf.mxu0  ;;  %v5933_v5 = vpop.f32.mrf.mxu1  ;;  %6076 = vmatmul.mubr.f32.gmra.mxu1 %v3591_v9  ;;  %v3079_v55 = vmul.f32 %v8635_v28, %v6686_v47  ;;  %v3211_v41 = vmul.f32 %v7766_v27, %v6688_v48  ;;  %v3080_v50 = vmul.f32 %v6686_v47, %v8636_v20  ;;  %v3338_v27 = vadd.f32 %v3210_v34, %v3078_v33 }
 0x2db   : > { %v3592_v0 = vadd.f32 %v3464_v4, %v3332_v60  ;;  %4348 = vst [vmem:[%s7900_s16 + $0x60] sm:$0xff] %v3758_v61  ;;  %v3773_v52 = vadd.f32 %v5933_v5, %v7887_v22  ;;  %v3467_v53 = vmul.f32 %v5859_v63, %v7290_v37  ;;  %v3081_v63 = vmul.f32 %v8637_v57, %v6686_v47 }
 0x2dc   : > { %v2886_v10 = vpop.f32.mrf.mxu0  ;;  %v3767_v59 = vpop.f32.mrf.mxu1  ;;  %v3339_v3 = vadd.f32 %v3211_v41, %v3079_v55  ;;  %v3340_v1 = vadd.f32 %v3212_v49, %v3080_v50  ;;  %v8642_v49 = vld [vmem:[#allocation147_spill] sm:$0xff] }
 0x2dd   : > { %4351 = vst [vmem:[%s7900_s16 + $0x78] sm:$0xff] %v3773_v52  ;;  %v3466_v21 = vmul.f32 %v7290_v37, %v2886_v10  ;;  %v3768_v31 = vadd.f32 %v7887_v22, %v3767_v59  ;;  %6078 = vmatprep.mubr.f32.mxu1 %v3592_v0  ;;  %v3595_v23 = vadd.f32 %v3467_v53, %v3335_v26  ;;  %v8638_v59 = vld [vmem:[#allocation141_spill] sm:$0xff] }
 0x2de   : > { %v5862_v43 = vpop.f32.mrf.mxu0  ;;  %v5936_v40 = vpop.f32.mrf.mxu1  ;;  %6079 = vmatmul.mubr.f32.gmra.mxu1 %v3593_v29  ;;  %v3341_v26 = vadd.f32 %v3213_v25, %v3081_v63 }
 0x2df   : > { %v3594_v46 = vadd.f32 %v3466_v21, %v3334_v2  ;;  %4350 = vst [vmem:[%s7900_s16 + $0x70] sm:$0xff] %v3768_v31  ;;  %v3783_v7 = vadd.f32 %v5936_v40, %v7887_v22  ;;  %v3469_v44 = vmul.f32 %v5862_v43, %v7290_v37  ;;  %v3082_v2 = vmul.f32 %v6686_v47, %v8638_v59 }
 0x2e0   : > { %v2896_v18 = vpop.f32.mrf.mxu0  ;;  %v3777_v24 = vpop.f32.mrf.mxu1 }
 0x2e1   : > { %4353 = vst [vmem:[%s7900_s16 + $0x88] sm:$0xff] %v3783_v7  ;;  %v3468_v42 = vmul.f32 %v7290_v37, %v2896_v18  ;;  %v3778_v35 = vadd.f32 %v7887_v22, %v3777_v24  ;;  %6081 = vmatprep.mubr.f32.mxu1 %v3594_v46  ;;  %v3597_v17 = vadd.f32 %v3469_v44, %v3337_v11  ;;  %v8640_v7 = vld [vmem:[#allocation144_spill] sm:$0xff] }
 0x2e2   : > { %v5865_v60 = vpop.f32.mrf.mxu0  ;;  %v5939_v9 = vpop.f32.mrf.mxu1  ;;  %6082 = vmatmul.mubr.f32.gmra.mxu1 %v3595_v23  ;;  %v3216_v23 = vmul.f32 %v6688_v48, %v7850_v16  ;;  %v3342_v62 = vadd.f32 %v3214_v14, %v3082_v2  ;;  %v3217_v16 = vmul.f32 %v7838_v19, %v6688_v48  ;;  %v3218_v19 = vmul.f32 %v6688_v48, %v7881_v51 }
 0x2e3   : > { %v3596_v45 = vadd.f32 %v3468_v42, %v3336_v36  ;;  %4352 = vst [vmem:[%s7900_s16 + $0x80] sm:$0xff] %v3778_v35  ;;  %v3793_v32 = vadd.f32 %v5939_v9, %v7887_v22  ;;  %v3471_v30 = vmul.f32 %v5865_v60, %v7290_v37  ;;  %v3084_v36 = vmul.f32 %v6686_v47, %v8640_v7  ;;  %v8641_v35 = vld [vmem:[#allocation142_spill] sm:$0xff] }
 0x2e4   : > { %v2906_v4 = vpop.f32.mrf.mxu0  ;;  %v3787_v61 = vpop.f32.mrf.mxu1  ;;  %v3343_v42 = vadd.f32 %v3215_v8, %v3083_v54  ;;  %v3085_v11 = vmul.f32 %v8641_v35, %v6686_v47 }
 0x2e5   : > { %4355 = vst [vmem:[%s7900_s16 + $0x98] sm:$0xff] %v3793_v32  ;;  %v3470_v6 = vmul.f32 %v7290_v37, %v2906_v4  ;;  %v3788_v13 = vadd.f32 %v7887_v22, %v3787_v61  ;;  %6084 = vmatprep.mubr.f32.mxu1 %v3596_v45  ;;  %v3599_v15 = vadd.f32 %v3471_v30, %v3339_v3 }
 0x2e6   : > { %v5868_v5 = vpop.f32.mrf.mxu0  ;;  %v5942_v0 = vpop.f32.mrf.mxu1  ;;  %6085 = vmatmul.mubr.f32.gmra.mxu1 %v3597_v17  ;;  %v3344_v9 = vadd.f32 %v3216_v23, %v3084_v36  ;;  %v3086_v17 = vmul.f32 %v6686_v47, %v8642_v49  ;;  %v3345_v61 = vadd.f32 %v3217_v16, %v3085_v11 }
 0x2e7   : > { %v3598_v52 = vadd.f32 %v3470_v6, %v3338_v27  ;;  %4354 = vst [vmem:[%s7900_s16 + $0x90] sm:$0xff] %v3788_v13  ;;  %v3803_v56 = vadd.f32 %v5942_v0, %v7887_v22  ;;  %v3473_v29 = vmul.f32 %v5868_v5, %v7290_v37  ;;  %v8643_v27 = vld [vmem:[#allocation145_spill] sm:$0xff]  ;;  %v3219_v13 = vmul.f32 %v7862_v58, %v6688_v48 }
 0x2e8   : > { %v2916_v53 = vpop.f32.mrf.mxu0  ;;  %v3797_v10 = vpop.f32.mrf.mxu1  ;;  %v3087_v6 = vmul.f32 %v8643_v27, %v6686_v47 }
 0x2e9   : > { %4357 = vst [vmem:[%s7900_s16 + $0xa8] sm:$0xff] %v3803_v56  ;;  %v3472_v21 = vmul.f32 %v7290_v37, %v2916_v53  ;;  %v3798_v31 = vadd.f32 %v7887_v22, %v3797_v10  ;;  %6087 = vmatprep.mubr.f32.mxu1 %v3598_v52  ;;  %v3601_v44 = vadd.f32 %v3473_v29, %v3341_v26 }
 0x2ea   : > { %v5871_v43 = vpop.f32.mrf.mxu0  ;;  %v5945_v40 = vpop.f32.mrf.mxu1  ;;  %6088 = vmatmul.mubr.f32.gmra.mxu1 %v3599_v15  ;;  %v3346_v56 = vadd.f32 %v3218_v19, %v3086_v17  ;;  %v3347_v58 = vadd.f32 %v3219_v13, %v3087_v6 }
 0x2eb   : > { %v3600_v46 = vadd.f32 %v3472_v21, %v3340_v1  ;;  %4356 = vst [vmem:[%s7900_s16 + $0xa0] sm:$0xff] %v3798_v31  ;;  %v3813_v38 = vadd.f32 %v5945_v40, %v7887_v22  ;;  %v3475_v18 = vmul.f32 %v5871_v43, %v7290_v37 }
 0x2ec   : > { %v2926_v24 = vpop.f32.mrf.mxu0  ;;  %v3807_v12 = vpop.f32.mrf.mxu1 }
 0x2ed   : > { %4359 = vst [vmem:[%s7900_s16 + $0xb8] sm:$0xff] %v3813_v38  ;;  %v3474_v33 = vmul.f32 %v7290_v37, %v2926_v24  ;;  %v3808_v34 = vadd.f32 %v7887_v22, %v3807_v12  ;;  %6090 = vmatprep.mubr.f32.mxu1 %v3600_v46  ;;  %v3603_v45 = vadd.f32 %v3475_v18, %v3343_v42 }
 0x2ee   : > { %v5874_v28 = vpop.f32.mrf.mxu0  ;;  %v5948_v55 = vpop.f32.mrf.mxu1  ;;  %6091 = vmatmul.mubr.f32.gmra.mxu1 %v3601_v44 }
 0x2ef   : > { %v3602_v41 = vadd.f32 %v3474_v33, %v3342_v62  ;;  %4358 = vst [vmem:[%s7900_s16 + $0xb0] sm:$0xff] %v3808_v34  ;;  %v3823_v60 = vadd.f32 %v5948_v55, %v7887_v22  ;;  %v3477_v32 = vmul.f32 %v5874_v28, %v7290_v37 }
 0x2f0   : > { %v2936_v20 = vpop.f32.mrf.mxu0  ;;  %v3817_v50 = vpop.f32.mrf.mxu1 }
 0x2f1   : > { %4361 = vst [vmem:[%s7900_s16 + $0xc8] sm:$0xff] %v3823_v60  ;;  %v3476_v30 = vmul.f32 %v7290_v37, %v2936_v20  ;;  %v3818_v4 = vadd.f32 %v7887_v22, %v3817_v50  ;;  %6093 = vmatprep.mubr.f32.mxu1 %v3602_v41  ;;  %v3605_v25 = vadd.f32 %v3477_v32, %v3345_v61 }
 0x2f2   : > { %v5877_v3 = vpop.f32.mrf.mxu0  ;;  %v5951_v57 = vpop.f32.mrf.mxu1  ;;  %6094 = vmatmul.mubr.f32.gmra.mxu1 %v3603_v45 }
 0x2f3   : > { %v3604_v63 = vadd.f32 %v3476_v30, %v3344_v9  ;;  %4360 = vst [vmem:[%s7900_s16 + $0xc0] sm:$0xff] %v3818_v4  ;;  %v3833_v51 = vadd.f32 %v5951_v57, %v7887_v22  ;;  %v3479_v5 = vmul.f32 %v5877_v3, %v7290_v37 }
 0x2f4   : > { %v2946_v0 = vpop.f32.mrf.mxu0  ;;  %v3827_v52 = vpop.f32.mrf.mxu1 }
 0x2f5   : > { %4363 = vst [vmem:[%s7900_s16 + $0xd8] sm:$0xff] %v3833_v51  ;;  %v3478_v47 = vmul.f32 %v7290_v37, %v2946_v0  ;;  %v3828_v48 = vadd.f32 %v7887_v22, %v3827_v52  ;;  %6096 = vmatprep.mubr.f32.mxu1 %v3604_v63  ;;  %v3607_v53 = vadd.f32 %v3479_v5, %v3347_v58 }
 0x2f6   : > { %v5954_v1 = vpop.f32.mrf.mxu1  ;;  %6097 = vmatmul.mubr.f32.gmra.mxu1 %v3605_v25 }
 0x2f7   : > { %v3606_v15 = vadd.f32 %v3478_v47, %v3346_v56  ;;  %4362 = vst [vmem:[%s7900_s16 + $0xd0] sm:$0xff] %v3828_v48  ;;  %v3843_v29 = vadd.f32 %v5954_v1, %v7887_v22 }
 0x2f8   : > { %v3837_v10 = vpop.f32.mrf.mxu1 }
 0x2f9   : > { %4365 = vst [vmem:[%s7900_s16 + $0xe8] sm:$0xff] %v3843_v29  ;;  %v3838_v59 = vadd.f32 %v7887_v22, %v3837_v10  ;;  %6099 = vmatprep.mubr.f32.mxu1 %v3606_v15 }
 0x2fa   : > { %v5957_v37 = vpop.f32.mrf.mxu1  ;;  %6100 = vmatmul.mubr.f32.gmra.mxu1 %v3607_v53 }
 0x2fb   : > { %4364 = vst [vmem:[%s7900_s16 + $0xe0] sm:$0xff] %v3838_v59  ;;  %v3853_v2 = vadd.f32 %v5957_v37, %v7887_v22 }
 0x2fc   : > { %v3847_v14 = vpop.f32.mrf.mxu1 }
 0x2fd   : > { %4367 = vst [vmem:[%s7900_s16 + $0xf8] sm:$0xff] %v3853_v2  ;;  %v3848_v21 = vadd.f32 %v7887_v22, %v3847_v14 }
 0x2fe   : > { %v5960_v31 = vpop.f32.mrf.mxu1 }
 0x2ff   : > { %4366 = vst [vmem:[%s7900_s16 + $0xf0] sm:$0xff] %v3848_v21  ;;  %v3863_v26 = vadd.f32 %v5960_v31, %v7887_v22 }
 0x300   : > { %v3857_v39 = vpop.f32.mrf.mxu1 }
 0x301   : > { %4369 = vst [vmem:[%s7900_s16 + $0x108] sm:$0xff] %v3863_v26  ;;  %v3858_v54 = vadd.f32 %v7887_v22, %v3857_v39 }
 0x302   : > { %v5963_v8 = vpop.f32.mrf.mxu1 }
 0x303   : > { %4368 = vst [vmem:[%s7900_s16 + $0x100] sm:$0xff] %v3858_v54  ;;  %v3873_v43 = vadd.f32 %v5963_v8, %v7887_v22 }
 0x304   : > { %v3867_v40 = vpop.f32.mrf.mxu1 }
 0x305   : > { %4371 = vst [vmem:[%s7900_s16 + $0x118] sm:$0xff] %v3873_v43  ;;  %v3868_v46 = vadd.f32 %v7887_v22, %v3867_v40 }
 0x306   : > { %v5966_v38 = vpop.f32.mrf.mxu1 }
 0x307   : > { %4370 = vst [vmem:[%s7900_s16 + $0x110] sm:$0xff] %v3868_v46  ;;  %v3883_v7 = vadd.f32 %v5966_v38, %v7887_v22 }
 0x308   : > { %v3877_v36 = vpop.f32.mrf.mxu1 }
 0x309   : > { %4373 = vst [vmem:[%s7900_s16 + $0x128] sm:$0xff] %v3883_v7  ;;  %v3878_v23 = vadd.f32 %v7887_v22, %v3877_v36 }
 0x30a   : > { %v5969_v44 = vpop.f32.mrf.mxu1 }
 0x30b   : > { %4372 = vst [vmem:[%s7900_s16 + $0x120] sm:$0xff] %v3878_v23  ;;  %v3893_v18 = vadd.f32 %v5969_v44, %v7887_v22 }
 0x30c   : > { %v3887_v24 = vpop.f32.mrf.mxu1 }
 0x30d   : > { %4375 = vst [vmem:[%s7900_s16 + $0x138] sm:$0xff] %v3893_v18  ;;  %v3888_v12 = vadd.f32 %v7887_v22, %v3887_v24 }
 0x30e   : > { %v5972_v62 = vpop.f32.mrf.mxu1 }
 0x30f   : > { %4374 = vst [vmem:[%s7900_s16 + $0x130] sm:$0xff] %v3888_v12  ;;  %v3903_v33 = vadd.f32 %v5972_v62, %v7887_v22 }
 0x310   : > { %v3897_v34 = vpop.f32.mrf.mxu1 }
 0x311   : > { %4377 = vst [vmem:[%s7900_s16 + $0x148] sm:$0xff] %v3903_v33  ;;  %v3898_v42 = vadd.f32 %v7887_v22, %v3897_v34 }
 0x312   : > { %v5975_v35 = vpop.f32.mrf.mxu1 }
 0x313   : > { %4376 = vst [vmem:[%s7900_s16 + $0x140] sm:$0xff] %v3898_v42  ;;  %v3913_v11 = vadd.f32 %v5975_v35, %v7887_v22 }
 0x314   : > { %v3907_v16 = vpop.f32.mrf.mxu1 }
 0x315   : > { %4379 = vst [vmem:[%s7900_s16 + $0x158] sm:$0xff] %v3913_v11  ;;  %v3908_v28 = vadd.f32 %v7887_v22, %v3907_v16 }
 0x316   : > { %v5978_v55 = vpop.f32.mrf.mxu1 }
 0x317   : > { %4378 = vst [vmem:[%s7900_s16 + $0x150] sm:$0xff] %v3908_v28  ;;  %v3923_v41 = vadd.f32 %v5978_v55, %v7887_v22 }
 0x318   : > { %v3917_v60 = vpop.f32.mrf.mxu1 }
 0x319   : > { %4381 = vst [vmem:[%s7900_s16 + $0x168] sm:$0xff] %v3923_v41  ;;  %v3918_v9 = vadd.f32 %v7887_v22, %v3917_v60 }
 0x31a   : > { %v5981_v45 = vpop.f32.mrf.mxu1 }
 0x31b   : > { %4380 = vst [vmem:[%s7900_s16 + $0x160] sm:$0xff] %v3918_v9  ;;  %v3933_v32 = vadd.f32 %v5981_v45, %v7887_v22 }
 0x31c   : > { %v3927_v20 = vpop.f32.mrf.mxu1 }
 0x31d   : > { %4383 = vst [vmem:[%s7900_s16 + $0x178] sm:$0xff] %v3933_v32  ;;  %v3928_v50 = vadd.f32 %v7887_v22, %v3927_v20 }
 0x31e   : > { %v5984_v49 = vpop.f32.mrf.mxu1 }
 0x31f   : > { %4382 = vst [vmem:[%s7900_s16 + $0x170] sm:$0xff] %v3928_v50  ;;  %v3943_v17 = vadd.f32 %v5984_v49, %v7887_v22 }
 0x320   : > { %v3937_v19 = vpop.f32.mrf.mxu1 }
 0x321   : > { %4385 = vst [vmem:[%s7900_s16 + $0x188] sm:$0xff] %v3943_v17  ;;  %v3938_v30 = vadd.f32 %v7887_v22, %v3937_v19 }
 0x322   : > { %v5987_v4 = vpop.f32.mrf.mxu1 }
 0x323   : > { %4384 = vst [vmem:[%s7900_s16 + $0x180] sm:$0xff] %v3938_v30  ;;  %v3953_v61 = vadd.f32 %v5987_v4, %v7887_v22 }
 0x324   : > { %v3947_v27 = vpop.f32.mrf.mxu1 }
 0x325   : > { %4387 = vst [vmem:[%s7900_s16 + $0x198] sm:$0xff] %v3953_v61  ;;  %v3948_v6 = vadd.f32 %v7887_v22, %v3947_v27 }
 0x326   : > { %v5990_v13 = vpop.f32.mrf.mxu1 }
 0x327   : > { %4386 = vst [vmem:[%s7900_s16 + $0x190] sm:$0xff] %v3948_v6  ;;  %v3963_v3 = vadd.f32 %v5990_v13, %v7887_v22 }
 0x328   : > { %v3957_v57 = vpop.f32.mrf.mxu1 }
 0x329   : > { %4389 = vst [vmem:[%s7900_s16 + $0x1a8] sm:$0xff] %v3963_v3  ;;  %v3958_v63 = vadd.f32 %v7887_v22, %v3957_v57 }
 0x32a   : > { %v5993_v51 = vpop.f32.mrf.mxu1 }
 0x32b   : > { %4388 = vst [vmem:[%s7900_s16 + $0x1a0] sm:$0xff] %v3958_v63  ;;  %v3973_v25 = vadd.f32 %v5993_v51, %v7887_v22 }
 0x32c   : > { %v3967_v5 = vpop.f32.mrf.mxu1 }
 0x32d   : > { %4391 = vst [vmem:[%s7900_s16 + $0x1b8] sm:$0xff] %v3973_v25  ;;  %v3968_v0 = vadd.f32 %v7887_v22, %v3967_v5 }
 0x32e   : > { %v5996_v52 = vpop.f32.mrf.mxu1 }
 0x32f   : > { %4390 = vst [vmem:[%s7900_s16 + $0x1b0] sm:$0xff] %v3968_v0  ;;  %v3983_v56 = vadd.f32 %v5996_v52, %v7887_v22 }
 0x330   : > { %v3977_v47 = vpop.f32.mrf.mxu1 }
 0x331   : > { %4393 = vst [vmem:[%s7900_s16 + $0x1c8] sm:$0xff] %v3983_v56  ;;  %v3978_v48 = vadd.f32 %v7887_v22, %v3977_v47 }
 0x332   : > { %v5999_v58 = vpop.f32.mrf.mxu1 }
 0x333   : > { %4392 = vst [vmem:[%s7900_s16 + $0x1c0] sm:$0xff] %v3978_v48  ;;  %v3993_v1 = vadd.f32 %v5999_v58, %v7887_v22 }
 0x334   : > { %v3987_v15 = vpop.f32.mrf.mxu1 }
 0x335   : > { %4395 = vst [vmem:[%s7900_s16 + $0x1d8] sm:$0xff] %v3993_v1  ;;  %v3988_v29 = vadd.f32 %v7887_v22, %v3987_v15 }
 0x336   : > { %v6002_v53 = vpop.f32.mrf.mxu1 }
 0x337   : > { %4394 = vst [vmem:[%s7900_s16 + $0x1d0] sm:$0xff] %v3988_v29  ;;  %v4003_v10 = vadd.f32 %v6002_v53, %v7887_v22 }
 0x338   : > { %v3997_v59 = vpop.f32.mrf.mxu1 }
 0x339   : > { %4397 = vst [vmem:[%s7900_s16 + $0x1e8] sm:$0xff] %v4003_v10  ;;  %v3998_v37 = vadd.f32 %v7887_v22, %v3997_v59 }
 0x33a   : > { %v6005_v2 = vpop.f32.mrf.mxu1 }
 0x33b   : > { %4396 = vst [vmem:[%s7900_s16 + $0x1e0] sm:$0xff] %v3998_v37  ;;  %v4013_v14 = vadd.f32 %v6005_v2, %v7887_v22 }
 0x33c   : > { %v4007_v21 = vpop.f32.mrf.mxu1 }
 0x33d   : > { %4399 = vst [vmem:[%s7900_s16 + $0x1f8] sm:$0xff] %v4013_v14  ;;  %v4008_v31 = vadd.f32 %v7887_v22, %v4007_v21 }
 0x33e   : > { %v6008_v26 = vpop.f32.mrf.mxu1 }
 0x33f   : > { %4398 = vst [vmem:[%s7900_s16 + $0x1f0] sm:$0xff] %v4008_v31  ;;  %v4023_v39 = vadd.f32 %v6008_v26, %v7887_v22 }
 0x340   : > { %v4017_v54 = vpop.f32.mrf.mxu1 }
 0x341   : > { %4401 = vst [vmem:[%s7900_s16 + $0x208] sm:$0xff] %v4023_v39  ;;  %v4018_v8 = vadd.f32 %v7887_v22, %v4017_v54 }
 0x342   : > { %v6011_v43 = vpop.f32.mrf.mxu1 }
 0x343   : > { %4400 = vst [vmem:[%s7900_s16 + $0x200] sm:$0xff] %v4018_v8  ;;  %v4033_v40 = vadd.f32 %v6011_v43, %v7887_v22 }
 0x344   : > { %v4027_v46 = vpop.f32.mrf.mxu1 }
 0x345   : > { %4403 = vst [vmem:[%s7900_s16 + $0x218] sm:$0xff] %v4033_v40  ;;  %v4028_v38 = vadd.f32 %v7887_v22, %v4027_v46 }
 0x346   : > { %v6014_v7 = vpop.f32.mrf.mxu1 }
 0x347   : > { %4402 = vst [vmem:[%s7900_s16 + $0x210] sm:$0xff] %v4028_v38  ;;  %v4043_v36 = vadd.f32 %v6014_v7, %v7887_v22 }
 0x348   : > { %v4037_v23 = vpop.f32.mrf.mxu1 }
 0x349   : > { %4405 = vst [vmem:[%s7900_s16 + $0x228] sm:$0xff] %v4043_v36  ;;  %v4038_v44 = vadd.f32 %v7887_v22, %v4037_v23 }
 0x34a   : > { %v6017_v18 = vpop.f32.mrf.mxu1 }
 0x34b   : > { %4404 = vst [vmem:[%s7900_s16 + $0x220] sm:$0xff] %v4038_v44  ;;  %v4053_v24 = vadd.f32 %v6017_v18, %v7887_v22 }
 0x34c   : > { %v4047_v12 = vpop.f32.mrf.mxu1 }
 0x34d   : > { %4407 = vst [vmem:[%s7900_s16 + $0x238] sm:$0xff] %v4053_v24  ;;  %v4048_v62 = vadd.f32 %v7887_v22, %v4047_v12  ;;  %v8235_v12 = vld [vmem:[%s8352_s7] ss:$0 sm:$0xff] }
 0x34e   : > { %v6020_v33 = vpop.f32.mrf.mxu1 }
 0x34f   : > { %4406 = vst [vmem:[%s7900_s16 + $0x230] sm:$0xff] %v4048_v62  ;;  %v4063_v34 = vadd.f32 %v6020_v33, %v7887_v22 }
 0x350   : > { %v4057_v42 = vpop.f32.mrf.mxu1 }
 0x351   : > { %4409 = vst [vmem:[%s7900_s16 + $0x248] sm:$0xff] %v4063_v34  ;;  %v4058_v35 = vadd.f32 %v7887_v22, %v4057_v42 }
 0x352   : > { %v6023_v11 = vpop.f32.mrf.mxu1 }
 0x353   : > { %4408 = vst [vmem:[%s7900_s16 + $0x240] sm:$0xff] %v4058_v35  ;;  %v4073_v16 = vadd.f32 %v6023_v11, %v7887_v22 }
 0x354   : > { %v4067_v28 = vpop.f32.mrf.mxu1 }
 0x355   : > { %4411 = vst [vmem:[%s7900_s16 + $0x258] sm:$0xff] %v4073_v16  ;;  %v4068_v55 = vadd.f32 %v7887_v22, %v4067_v28 }
 0x356   : > { %v6026_v41 = vpop.f32.mrf.mxu1 }
 0x357   : > { %4410 = vst [vmem:[%s7900_s16 + $0x250] sm:$0xff] %v4068_v55  ;;  %v4083_v60 = vadd.f32 %v6026_v41, %v7887_v22 }
 0x358   : > { %v4077_v9 = vpop.f32.mrf.mxu1 }
 0x359   : > { %4413 = vst [vmem:[%s7900_s16 + $0x268] sm:$0xff] %v4083_v60  ;;  %v4078_v45 = vadd.f32 %v7887_v22, %v4077_v9 }
 0x35a   : > { %v6029_v32 = vpop.f32.mrf.mxu1 }
 0x35b   : > { %4412 = vst [vmem:[%s7900_s16 + $0x260] sm:$0xff] %v4078_v45  ;;  %v4093_v20 = vadd.f32 %v6029_v32, %v7887_v22 }
 0x35c   : > { %v4087_v50 = vpop.f32.mrf.mxu1 }
 0x35d   : > { %4415 = vst [vmem:[%s7900_s16 + $0x278] sm:$0xff] %v4093_v20  ;;  %v4088_v49 = vadd.f32 %v7887_v22, %v4087_v50 }
 0x35e   : > { %v6032_v17 = vpop.f32.mrf.mxu1 }
 0x35f   : > { %4414 = vst [vmem:[%s7900_s16 + $0x270] sm:$0xff] %v4088_v49  ;;  %v4103_v19 = vadd.f32 %v6032_v17, %v7887_v22 }
 0x360   : > { %v4097_v30 = vpop.f32.mrf.mxu1 }
 0x361   : > { %4417 = vst [vmem:[%s7900_s16 + $0x288] sm:$0xff] %v4103_v19  ;;  %v4098_v4 = vadd.f32 %v7887_v22, %v4097_v30 }
 0x362   : > { %v6035_v61 = vpop.f32.mrf.mxu1 }
 0x363   : > { %4416 = vst [vmem:[%s7900_s16 + $0x280] sm:$0xff] %v4098_v4  ;;  %v4113_v27 = vadd.f32 %v6035_v61, %v7887_v22 }
 0x364   : > { %v4107_v6 = vpop.f32.mrf.mxu1 }
 0x365   : > { %4419 = vst [vmem:[%s7900_s16 + $0x298] sm:$0xff] %v4113_v27  ;;  %v4108_v13 = vadd.f32 %v7887_v22, %v4107_v6 }
 0x366   : > { %v6038_v3 = vpop.f32.mrf.mxu1 }
 0x367   : > { %4418 = vst [vmem:[%s7900_s16 + $0x290] sm:$0xff] %v4108_v13  ;;  %v4123_v57 = vadd.f32 %v6038_v3, %v7887_v22 }
 0x368   : > { %v4117_v63 = vpop.f32.mrf.mxu1 }
 0x369   : > { %4421 = vst [vmem:[%s7900_s16 + $0x2a8] sm:$0xff] %v4123_v57  ;;  %v4118_v51 = vadd.f32 %v7887_v22, %v4117_v63 }
 0x36a   : > { %v6041_v25 = vpop.f32.mrf.mxu1 }
 0x36b   : > { %4420 = vst [vmem:[%s7900_s16 + $0x2a0] sm:$0xff] %v4118_v51  ;;  %v4133_v5 = vadd.f32 %v6041_v25, %v7887_v22 }
 0x36c   : > { %v4127_v0 = vpop.f32.mrf.mxu1 }
 0x36d   : > { %4423 = vst [vmem:[%s7900_s16 + $0x2b8] sm:$0xff] %v4133_v5  ;;  %v4128_v52 = vadd.f32 %v7887_v22, %v4127_v0 }
 0x36e   : > { %v6044_v56 = vpop.f32.mrf.mxu1 }
 0x36f   : > { %4422 = vst [vmem:[%s7900_s16 + $0x2b0] sm:$0xff] %v4128_v52  ;;  %v4143_v47 = vadd.f32 %v6044_v56, %v7887_v22 }
 0x370   : > { %v4137_v48 = vpop.f32.mrf.mxu1 }
 0x371   : > { %4425 = vst [vmem:[%s7900_s16 + $0x2c8] sm:$0xff] %v4143_v47  ;;  %v4138_v58 = vadd.f32 %v7887_v22, %v4137_v48 }
 0x372   : > { %v6047_v1 = vpop.f32.mrf.mxu1 }
 0x373   : > { %4424 = vst [vmem:[%s7900_s16 + $0x2c0] sm:$0xff] %v4138_v58  ;;  %v4153_v15 = vadd.f32 %v6047_v1, %v7887_v22 }
 0x374   : > { %v4147_v29 = vpop.f32.mrf.mxu1 }
 0x375   : > { %4427 = vst [vmem:[%s7900_s16 + $0x2d8] sm:$0xff] %v4153_v15  ;;  %v4148_v53 = vadd.f32 %v7887_v22, %v4147_v29 }
 0x376   : > { %v6050_v10 = vpop.f32.mrf.mxu1 }
 0x377   : > { %4426 = vst [vmem:[%s7900_s16 + $0x2d0] sm:$0xff] %v4148_v53  ;;  %v4163_v59 = vadd.f32 %v6050_v10, %v7887_v22 }
 0x378   : > { %v4157_v37 = vpop.f32.mrf.mxu1 }
 0x379   : > { %4429 = vst [vmem:[%s7900_s16 + $0x2e8] sm:$0xff] %v4163_v59  ;;  %v4158_v2 = vadd.f32 %v7887_v22, %v4157_v37 }
 0x37a   : > { %v6053_v14 = vpop.f32.mrf.mxu1 }
 0x37b   : > { %4428 = vst [vmem:[%s7900_s16 + $0x2e0] sm:$0xff] %v4158_v2  ;;  %v4173_v21 = vadd.f32 %v6053_v14, %v7887_v22 }
 0x37c   : > { %v4167_v31 = vpop.f32.mrf.mxu1 }
 0x37d   : > { %4431 = vst [vmem:[%s7900_s16 + $0x2f8] sm:$0xff] %v4173_v21  ;;  %v4168_v26 = vadd.f32 %v7887_v22, %v4167_v31 }
 0x37e   : > { %v6056_v39 = vpop.f32.mrf.mxu1 }
 0x37f   : > { %4430 = vst [vmem:[%s7900_s16 + $0x2f0] sm:$0xff] %v4168_v26  ;;  %v4183_v54 = vadd.f32 %v6056_v39, %v7887_v22 }
 0x380   : > { %v4177_v8 = vpop.f32.mrf.mxu1 }
 0x381   : > { %4433 = vst [vmem:[%s7900_s16 + $0x308] sm:$0xff] %v4183_v54  ;;  %v4178_v43 = vadd.f32 %v7887_v22, %v4177_v8 }
 0x382   : > { %v6059_v40 = vpop.f32.mrf.mxu1 }
 0x383   : > { %4432 = vst [vmem:[%s7900_s16 + $0x300] sm:$0xff] %v4178_v43  ;;  %v4193_v46 = vadd.f32 %v6059_v40, %v7887_v22 }
 0x384   : > { %v4187_v38 = vpop.f32.mrf.mxu1 }
 0x385   : > { %4435 = vst [vmem:[%s7900_s16 + $0x318] sm:$0xff] %v4193_v46  ;;  %v4188_v7 = vadd.f32 %v7887_v22, %v4187_v38 }
 0x386   : > { %v6062_v36 = vpop.f32.mrf.mxu1 }
 0x387   : > { %4434 = vst [vmem:[%s7900_s16 + $0x310] sm:$0xff] %v4188_v7  ;;  %v4203_v23 = vadd.f32 %v6062_v36, %v7887_v22 }
 0x388   : > { %v4197_v44 = vpop.f32.mrf.mxu1 }
 0x389   : > { %4437 = vst [vmem:[%s7900_s16 + $0x328] sm:$0xff] %v4203_v23  ;;  %v4198_v18 = vadd.f32 %v7887_v22, %v4197_v44 }
 0x38a   : > { %v6065_v24 = vpop.f32.mrf.mxu1 }
 0x38b   : > { %4436 = vst [vmem:[%s7900_s16 + $0x320] sm:$0xff] %v4198_v18  ;;  %v4213_v62 = vadd.f32 %v8235_v12, %v6065_v24 }
 0x38c   : > { %v4207_v33 = vpop.f32.mrf.mxu1 }
 0x38d   : > { %4439 = vst [vmem:[%s7900_s16 + $0x338] sm:$0xff] %v4213_v62  ;;  %v4208_v34 = vadd.f32 %v8235_v12, %v4207_v33 }
 0x38e   : > { %v6068_v42 = vpop.f32.mrf.mxu1 }
 0x38f   : > { %4438 = vst [vmem:[%s7900_s16 + $0x330] sm:$0xff] %v4208_v34  ;;  %v4223_v22 = vadd.f32 %v8235_v12, %v6068_v42 }
 0x390   : > { %v4217_v35 = vpop.f32.mrf.mxu1 }
 0x391   : > { %4441 = vst [vmem:[%s7900_s16 + $0x348] sm:$0xff] %v4223_v22  ;;  %v4218_v11 = vadd.f32 %v8235_v12, %v4217_v35 }
 0x392   : > { %v6071_v16 = vpop.f32.mrf.mxu1 }
 0x393   : > { %4440 = vst [vmem:[%s7900_s16 + $0x340] sm:$0xff] %v4218_v11  ;;  %v4233_v28 = vadd.f32 %v8235_v12, %v6071_v16 }
 0x394   : > { %v4227_v55 = vpop.f32.mrf.mxu1 }
 0x395   : > { %4443 = vst [vmem:[%s7900_s16 + $0x358] sm:$0xff] %v4233_v28  ;;  %v4228_v41 = vadd.f32 %v8235_v12, %v4227_v55 }
 0x396   : > { %v6074_v60 = vpop.f32.mrf.mxu1 }
 0x397   : > { %4442 = vst [vmem:[%s7900_s16 + $0x350] sm:$0xff] %v4228_v41  ;;  %v4243_v9 = vadd.f32 %v8235_v12, %v6074_v60 }
 0x398   : > { %v4237_v45 = vpop.f32.mrf.mxu1 }
 0x399   : > { %4445 = vst [vmem:[%s7900_s16 + $0x368] sm:$0xff] %v4243_v9  ;;  %v4238_v32 = vadd.f32 %v8235_v12, %v4237_v45 }
 0x39a   : > { %v6077_v20 = vpop.f32.mrf.mxu1 }
 0x39b   : > { %4444 = vst [vmem:[%s7900_s16 + $0x360] sm:$0xff] %v4238_v32  ;;  %v4253_v50 = vadd.f32 %v8235_v12, %v6077_v20 }
 0x39c   : > { %v4247_v49 = vpop.f32.mrf.mxu1 }
 0x39d   : > { %4447 = vst [vmem:[%s7900_s16 + $0x378] sm:$0xff] %v4253_v50  ;;  %v4248_v17 = vadd.f32 %v8235_v12, %v4247_v49 }
 0x39e   : > { %v6080_v19 = vpop.f32.mrf.mxu1 }
 0x39f   : > { %4446 = vst [vmem:[%s7900_s16 + $0x370] sm:$0xff] %v4248_v17  ;;  %v4263_v30 = vadd.f32 %v8235_v12, %v6080_v19 }
 0x3a0   : > { %v4257_v4 = vpop.f32.mrf.mxu1 }
 0x3a1   : > { %4449 = vst [vmem:[%s7900_s16 + $0x388] sm:$0xff] %v4263_v30  ;;  %v4258_v61 = vadd.f32 %v8235_v12, %v4257_v4 }
 0x3a2   : > { %v6083_v27 = vpop.f32.mrf.mxu1 }
 0x3a3   : > { %4448 = vst [vmem:[%s7900_s16 + $0x380] sm:$0xff] %v4258_v61  ;;  %v4273_v6 = vadd.f32 %v8235_v12, %v6083_v27 }
 0x3a4   : > { %v4267_v13 = vpop.f32.mrf.mxu1 }
 0x3a5   : > { %4451 = vst [vmem:[%s7900_s16 + $0x398] sm:$0xff] %v4273_v6  ;;  %v4268_v3 = vadd.f32 %v8235_v12, %v4267_v13 }
 0x3a6   : > { %v6086_v57 = vpop.f32.mrf.mxu1 }
 0x3a7   : > { %4450 = vst [vmem:[%s7900_s16 + $0x390] sm:$0xff] %v4268_v3  ;;  %v4283_v63 = vadd.f32 %v8235_v12, %v6086_v57 }
 0x3a8   : > { %v4277_v51 = vpop.f32.mrf.mxu1 }
 0x3a9   : > { %4453 = vst [vmem:[%s7900_s16 + $0x3a8] sm:$0xff] %v4283_v63  ;;  %v4278_v25 = vadd.f32 %v8235_v12, %v4277_v51 }
 0x3aa   : > { %v6089_v5 = vpop.f32.mrf.mxu1 }
 0x3ab   : > { %4452 = vst [vmem:[%s7900_s16 + $0x3a0] sm:$0xff] %v4278_v25  ;;  %v4293_v0 = vadd.f32 %v8235_v12, %v6089_v5 }
 0x3ac   : > { %v4287_v52 = vpop.f32.mrf.mxu1 }
 0x3ad   : > { %4455 = vst [vmem:[%s7900_s16 + $0x3b8] sm:$0xff] %v4293_v0  ;;  %v4288_v56 = vadd.f32 %v8235_v12, %v4287_v52 }
 0x3ae   : > { %v6092_v47 = vpop.f32.mrf.mxu1 }
 0x3af   : > { %4454 = vst [vmem:[%s7900_s16 + $0x3b0] sm:$0xff] %v4288_v56  ;;  %v4303_v48 = vadd.f32 %v8235_v12, %v6092_v47 }
 0x3b0   : > { %v4297_v58 = vpop.f32.mrf.mxu1 }
 0x3b1   : > { %4457 = vst [vmem:[%s7900_s16 + $0x3c8] sm:$0xff] %v4303_v48  ;;  %v4298_v1 = vadd.f32 %v8235_v12, %v4297_v58 }
 0x3b2   : > { %v6095_v15 = vpop.f32.mrf.mxu1 }
 0x3b3   : > { %4456 = vst [vmem:[%s7900_s16 + $0x3c0] sm:$0xff] %v4298_v1  ;;  %v4313_v29 = vadd.f32 %v8235_v12, %v6095_v15 }
 0x3b4   : > { %v4307_v53 = vpop.f32.mrf.mxu1 }
 0x3b5   : > { %4459 = vst [vmem:[%s7900_s16 + $0x3d8] sm:$0xff] %v4313_v29  ;;  %v4308_v10 = vadd.f32 %v8235_v12, %v4307_v53 }
 0x3b6   : > { %v6098_v59 = vpop.f32.mrf.mxu1 }
 0x3b7   : > { %4458 = vst [vmem:[%s7900_s16 + $0x3d0] sm:$0xff] %v4308_v10  ;;  %v4323_v37 = vadd.f32 %v8235_v12, %v6098_v59 }
 0x3b8   : > { %v4317_v2 = vpop.f32.mrf.mxu1 }
 0x3b9   : > { %4461 = vst [vmem:[%s7900_s16 + $0x3e8] sm:$0xff] %v4323_v37  ;;  %v4318_v14 = vadd.f32 %v8235_v12, %v4317_v2 }
 0x3ba   : > { %v6101_v21 = vpop.f32.mrf.mxu1 }
 0x3bb   : > { %4460 = vst [vmem:[%s7900_s16 + $0x3e0] sm:$0xff] %v4318_v14  ;;  %v4333_v31 = vadd.f32 %v8235_v12, %v6101_v21 }
 0x3bc   : > { %v4327_v26 = vpop.f32.mrf.mxu1 }
 0x3bd   : > { %4463 = vst [vmem:[%s7900_s16 + $0x3f8] sm:$0xff] %v4333_v31  ;;  %v4328_v39 = vadd.f32 %v8235_v12, %v4327_v26 }
 0x3bf   : > { %4462 = vst [vmem:[%s7900_s16 + $0x3f0] sm:$0xff] %v4328_v39 }
 0x3c0   : > { %6174 = shalt.err (!%p6171_p5)
}
 0x3c1   : > { %s6175_s26 = scalar_lea.hbm %s8291_s11, 16384  ;;  %s6179_s23 = scalar_lea.hbm %s8353_s8, 32768 }
 0x3c2   : > { %p6176_p6 = scmp.ne.s32.totalorder %s8291_s11, %s6175_s26  ;;  %p6180_p10 = scmp.lt.s32.totalorder %s8291_s11, %s8353_s8 }
 0x3c3   : > { %p6181_p11 = scmp.lt.s32.totalorder %s6179_s23, %s6175_s26 }
 0x3c4   : > { %p6177_p7 = pnand %p6176_p6, %p6327_p4 }
 0x3c5   : > { %p6182_p12 = por %p6181_p11, %p6180_p10 }
 0x3c6   : > { %p6178_p9 = pneg %p6177_p7 }
 0x3c8   : > { %p6183_p13 = pnand %p6182_p12, %p6178_p9 }
 0x3ca   : > { %6186 = shalt.err (!%p6183_p13)
}
 0x3cb   : > { %s6240_s12 = smov 128   ;;  %s6241_s19 = smov 8  }
 0x3cc   : > { %6102 = dma.vmem_to_hbm [thread:$0]  (%p6327_p4), %s8293_s24, 16384, %s8291_s11, %s8300_s30, %s6240_s12, %s6240_s12, %s6241_s19  }
 0x3cd PF: > { %p6108_p0 = scmp.ge.s32.totalorder %s6237_s10, 2  ;;  %s4495_s22 = sand.u32 1, %s6217_s27  }
 0x3ce   : > { %s4496_s21 = scalar_lea.sflag [#allocation3], %s4495_s22 }
 0x3cf   : > { %p6105_p1 = pnand %p6108_p0, %p6334_p8 }
 0x3d1   : > { %p6106_p2 = pneg %p6105_p1 }
 0x3d3   : > { %6212 = dma.done.wait (%p6106_p2), %s4496_s21, 16384  }
 0x3d4   : > { %6214 = vsyncadd (%p6106_p2), %s4496_s21, 4294950912  ;;  %s21_s10 = sadd.s32 1, %s6237_s10   ;;  %s8644_s27 = smov %s6221_s28 }
 0x3d5   : > { %p18_p3 = scmp.ge.s32.totalorder %s21_s10, 4   ;;  %s8645_s28 = smov %s6225_s29 }
 0x3d6   : > { %s8646_s29 = smov %s6340_s18  ;;  %s8647_s30 = smov %s6233_s9 }
 0x3d7   : > { %s8648_s9 = smov %s8650_s13  ;;  %20 = sbr.rel (!%p18_p3) target bundleno = 4 (0x4), region = 96 }
 0x3dc   :  { %4501 = vsyncpa [#allocation3], 1 }
 0x3dd   :  { %4503 = vsyncpa [#allocation3 + $0x1], 1 }

</bundles_post_ra>
